<compile_context>
chip_gen: v7x
topology: tpu7x:2x2x1
jax: 0.10.0
libtpu: 0.0.40
codegen_flags: <defaults>
</compile_context>

<pallas_src>
import jax
import jax.numpy as jnp
import numpy as np
from jax.experimental import pallas as pl
from jax.experimental.pallas import tpu as pltpu


NDF = 16          # smaller than the default 64, consistent with the tiny example
INPUT_NC = 3
N_IMG = 2         # batch
# 32x32 input is required by the module's fc (4*4*4*ndf): spatial 32 -> 16 -> 8 -> 4.


def _leaky(v):
    return jnp.where(v > 0, v, 0.2 * v)


# ------------------------------ fused kernel --------------------------------

def _egan_fused_kernel(p1_ref, w1_ref, b1_ref,
                       w2g_ref, g2_ref, be2_ref,
                       gather3_ref, w3_ref, g3_ref, be3_ref,
                       fcw_ref, fcb_ref,
                       o_ref, s1_ref):
    n_img = s1_ref.shape[1]
    c1 = s1_ref.shape[4]
    c2 = w2g_ref.shape[2]
    c3 = w3_ref.shape[2]
    rpc = n_img * 64                      # rows per space-to-depth class (N * 8 * 8)

    # ---- conv1 (4x4 s2 p1) as one matmul on pre-built patches + bias + LeakyReLU
    y1 = jnp.dot(p1_ref[...], w1_ref[...], preferred_element_type=jnp.float32)
    y1 = _leaky(y1 + b1_ref[...])                                   # [N*256, C1]

    # ---- scatter conv1 activations into the zero-padded space-to-depth scratch:
    #      s1[g, n, bh, bw, c] = a1[n, 2*bh-1+dh, 2*bw-1+dw, c]  with g = 2*dh + dw,
    #      halo blocks (conv padding) stay zero.
    s1_ref[...] = jnp.zeros_like(s1_ref)
    for g in range(4):
        dh, dw = g // 2, g % 2
        chunk = y1[g * rpc:(g + 1) * rpc, :].reshape(n_img, 8, 8, c1)
        s1_ref[g, :, 1 - dh:9 - dh, 1 - dw:9 - dw, :] = chunk

    # ---- conv2: k4 s2 p1 == k2 s1 over the s2d grid -> 16 tap matmuls on
    #      contiguous slices.  Conv bias dropped (cancelled by train-mode BN).
    y2 = jnp.zeros((rpc, c2), jnp.float32)
    for t in range(4):                    # t = 2*a + b : k2-s1 tap offset
        a, b = t // 2, t % 2
        for g in range(4):                # s2d sub-position (channel block)
            slab = s1_ref[g, :, a:a + 8, b:b + 8, :].reshape(rpc, c1)
            y2 = y2 + jnp.dot(slab, w2g_ref[t * 4 + g],
                              preferred_element_type=jnp.float32)

    # ---- BatchNorm2d (training-mode batch stats over N*H*W) + LeakyReLU
    mu2 = jnp.mean(y2, axis=0, keepdims=True)
    var2 = jnp.mean((y2 - mu2) ** 2, axis=0, keepdims=True)
    y2 = (y2 - mu2) * jax.lax.rsqrt(var2 + 1e-5) * g2_ref[...] + be2_ref[...]
    y2 = _leaky(y2)                                                  # [N*64, C2]

    # ---- conv3 per image: batch-independent 0/1 gather builds all 16 tap inputs
    #      in one matmul, then 16 tap matmuls accumulate.  Bias dropped (BN cancels).
    gat = gather3_ref[...]                                           # [256, 64]
    y3_blocks = []
    for n in range(n_img):
        y2n = y2[n * 64:(n + 1) * 64, :]                             # [64, C2]
        taps = jnp.dot(gat, y2n, preferred_element_type=jnp.float32) # [256, C2]
        y3n = jnp.zeros((16, c3), jnp.float32)
        for t in range(16):
            y3n = y3n + jnp.dot(taps[t * 16:(t + 1) * 16, :], w3_ref[t],
                                preferred_element_type=jnp.float32)
        y3_blocks.append(y3n)                                        # [16, C3]

    # ---- BatchNorm3 over all N*16 rows: single-pass sum / sum-of-squares
    cnt = float(n_img * 16)
    s = jnp.zeros((1, c3), jnp.float32)
    ss = jnp.zeros((1, c3), jnp.float32)
    for y3n in y3_blocks:
        s = s + jnp.sum(y3n, axis=0, keepdims=True)
        ss = ss + jnp.sum(y3n * y3n, axis=0, keepdims=True)
    mu3 = s / cnt
    var3 = ss / cnt - mu3 * mu3
    inv3 = jax.lax.rsqrt(var3 + 1e-5) * g3_ref[...]

    # ---- LeakyReLU + fused fc epilogue (one [1, 1] result per image)
    for n in range(n_img):
        a3 = _leaky((y3_blocks[n] - mu3) * inv3 + be3_ref[...])      # [16, C3]
        v = jnp.sum(a3 * fcw_ref[...], axis=1, keepdims=True)        # [16, 1]
        v = jnp.sum(v, axis=0, keepdims=True)                        # [1, 1]
        o_ref[n:n + 1, :] = v + fcb_ref[...]


# ------------------------------- JAX wrapper ---------------------------------

def _im2col_4x4_s2_p1(x_nhwc):
    """Output-position-indexed patches [N, Ho, Wo, 16*C], columns ordered (kh, kw, ci)."""
    n, h, w, c = x_nhwc.shape
    ho, wo = h // 2, w // 2
    xp = jnp.pad(x_nhwc, ((0, 0), (1, 1), (1, 1), (0, 0)))
    taps = [xp[:, kh:kh + 2 * ho - 1:2, kw:kw + 2 * wo - 1:2, :]
            for kh in range(4) for kw in range(4)]
    return jnp.concatenate(taps, axis=-1)


def _class_grouped_patches(p_full):
    """Reorder conv1 patches into the 4 space-to-depth class chunks the kernel stores."""
    n, h, _, k = p_full.shape
    rows = n * (h // 2) ** 2
    chunks = []
    for g in range(4):
        dh, dw = g // 2, g % 2
        chunks.append(p_full[:, 1 - dh::2, 1 - dw::2, :].reshape(rows, k))
    return jnp.concatenate(chunks, axis=0)


def _prep_params(params):
    """Pre-permute PyTorch-layout weights to match the kernel's patch orderings."""
    c1 = params["w1"].shape[0]
    c2 = params["w2"].shape[0]
    c3 = params["w3"].shape[0]
    w1m = params["w1"].transpose(2, 3, 1, 0).reshape(-1, c1)                  # [16*Cin, C1]
    # conv2 regrouped for the k2-s1-over-s2d formulation:
    #   w2g[(2a+b)*4 + (2dh+dw)] = W2[:, :, 2a+dh, 2b+dw].T    ([C1, C2])
    w2g = (params["w2"].reshape(c2, c1, 2, 2, 2, 2)
           .transpose(2, 4, 3, 5, 1, 0).reshape(16, c1, c2))
    # conv3 per original tap t = kh*4 + kw                      ([C2, C3])
    w3m = params["w3"].transpose(2, 3, 1, 0).reshape(16, c2, c3)
    # fc weight reindexed from PyTorch's (c, h, w) flatten to rows (h*4+w), cols c
    fcw_r = params["fcw"].reshape(c3, 16).T                                   # [16, C3]
    return w1m, w2g, w3m, fcw_r


def _conv3_gather_matrix():
    """[256, 64] 0/1 matrix (batch independent): row t*16 + (ho*4+wo) picks conv2-grid
    position (2*ho-1+kh, 2*wo-1+kw) of one image; padding taps are all-zero rows."""
    g = np.zeros((256, 64), np.float32)
    for kh in range(4):
        for kw in range(4):
            t = kh * 4 + kw
            for ho in range(4):
                for wo in range(4):
                    h2, w2 = 2 * ho - 1 + kh, 2 * wo - 1 + kw
                    if 0 <= h2 < 8 and 0 <= w2 < 8:
                        g[t * 16 + ho * 4 + wo, h2 * 8 + w2] = 1.0
    return jnp.asarray(g)


def egan_discriminator_32(x_nchw, params):
    n = x_nchw.shape[0]
    c1 = params["w1"].shape[0]
    c2 = params["w2"].shape[0]
    c3 = params["w3"].shape[0]

    x = x_nchw.transpose(0, 2, 3, 1)                       # single NHWC conversion
    p1 = _class_grouped_patches(_im2col_4x4_s2_p1(x))      # [N*256, 16*Cin]
    w1m, w2g, w3m, fcw_r = _prep_params(params)            # cheap, one-time permutes
    gather3 = _conv3_gather_matrix()

    def spec(shape):
        nd = len(shape)
        return pl.BlockSpec(shape, lambda i, nd=nd: (0,) * nd)

    inputs = (p1, w1m, params["b1"].reshape(1, c1),
              w2g, params["g2"].reshape(1, c2), params["be2"].reshape(1, c2),
              gather3, w3m, params["g3"].reshape(1, c3), params["be3"].reshape(1, c3),
              fcw_r, params["fcb"].reshape(1, 1))

    out = pl.pallas_call(
        _egan_fused_kernel,
        out_shape=jax.ShapeDtypeStruct((n, 1), jnp.float32),
        grid=(1,),
        in_specs=[spec(a.shape) for a in inputs],
        out_specs=spec((n, 1)),
        scratch_shapes=[pltpu.VMEM((4, n, 9, 9, c1), jnp.float32)],
        compiler_params=pltpu.CompilerParams(
            dimension_semantics=("arbitrary",),
            vmem_limit_bytes=32 * 1024 * 1024),
    )(*inputs)
    return out[:, 0]


# ------------------------------ pure-JAX reference ---------------------------

def egan_reference(x_nchw, params):
    hi = jax.lax.Precision.HIGHEST

    def conv(x, w, b):
        y = jax.lax.conv_general_dilated(
            x, w, window_strides=(2, 2), padding=((1, 1), (1, 1)),
            dimension_numbers=("NCHW", "OIHW", "NCHW"), precision=hi)
        return y + b[None, :, None, None]

    def bn(y, g, be):
        mu = jnp.mean(y, axis=(0, 2, 3), keepdims=True)
        var = jnp.mean((y - mu) ** 2, axis=(0, 2, 3), keepdims=True)
        return ((y - mu) * jax.lax.rsqrt(var + 1e-5) * g[None, :, None, None]
                + be[None, :, None, None])

    h = _leaky(conv(x_nchw, params["w1"], params["b1"]))
    h = _leaky(bn(conv(h, params["w2"], params["b2"]), params["g2"], params["be2"]))
    h = _leaky(bn(conv(h, params["w3"], params["b3"]), params["g3"], params["be3"]))
    flat = h.reshape(h.shape[0], -1)                       # (N, C3*4*4), (c, h, w) order
    return (jnp.dot(flat, params["fcw"].T, precision=hi) + params["fcb"])[:, 0]


def init_params(key, ndf=16, input_nc=3):
    ks = jax.random.split(key, 12)
    n = jax.random.normal
    return {
        "w1": 0.05 * n(ks[0], (ndf, input_nc, 4, 4), jnp.float32),
        "b1": 0.01 * n(ks[1], (ndf,), jnp.float32),
        "w2": 0.05 * n(ks[2], (2 * ndf, ndf, 4, 4), jnp.float32),
        "b2": 0.01 * n(ks[3], (2 * ndf,), jnp.float32),
        "g2": 1.0 + 0.1 * n(ks[4], (2 * ndf,), jnp.float32),
        "be2": 0.1 * n(ks[5], (2 * ndf,), jnp.float32),
        "w3": 0.05 * n(ks[6], (4 * ndf, 2 * ndf, 4, 4), jnp.float32),
        "b3": 0.01 * n(ks[7], (4 * ndf,), jnp.float32),
        "g3": 1.0 + 0.1 * n(ks[8], (4 * ndf,), jnp.float32),
        "be3": 0.1 * n(ks[9], (4 * ndf,), jnp.float32),
        "fcw": 0.05 * n(ks[10], (1, 4 * 4 * 4 * ndf), jnp.float32),
        "fcb": 0.01 * n(ks[11], (1,), jnp.float32),
    }


if __name__ == "__main__":
    key = jax.random.PRNGKey(0)
    kx, kp = jax.random.split(key)
    x = jax.random.normal(kx, (N_IMG, INPUT_NC, 32, 32), jnp.float32)
    params = init_params(kp, ndf=NDF, input_nc=INPUT_NC)

    out = jax.block_until_ready(jax.jit(egan_discriminator_32)(x, params))
    assert out.shape == (N_IMG,), out.shape
    assert bool(jnp.all(jnp.isfinite(out)))

    ref = jax.block_until_ready(jax.jit(egan_reference)(x, params))
    assert bool(jnp.allclose(out, ref, atol=1e-2, rtol=1e-2)), (out, ref)
    print("KERNEL_OK")
</pallas_src>

<mosaic_0001>
module attributes {stable_mosaic.version = 11 : i64} {
  func.func @_egan_fused_kernel(%arg0: i32, %arg1: memref<512x48xf32, #tpu.memory_space<vmem>>, %arg2: memref<48x16xf32, #tpu.memory_space<vmem>>, %arg3: memref<1x16xf32, #tpu.memory_space<vmem>>, %arg4: memref<16x16x32xf32, #tpu.memory_space<vmem>>, %arg5: memref<1x32xf32, #tpu.memory_space<vmem>>, %arg6: memref<1x32xf32, #tpu.memory_space<vmem>>, %arg7: memref<256x64xf32, #tpu.memory_space<vmem>>, %arg8: memref<16x32x64xf32, #tpu.memory_space<vmem>>, %arg9: memref<1x64xf32, #tpu.memory_space<vmem>>, %arg10: memref<1x64xf32, #tpu.memory_space<vmem>>, %arg11: memref<16x64xf32, #tpu.memory_space<vmem>>, %arg12: memref<1x1xf32, #tpu.memory_space<vmem>>, %arg13: memref<2x1xf32, #tpu.memory_space<vmem>>, %arg14: memref<4x2x9x9x16xf32, #tpu.memory_space<vmem>>) attributes {dimension_semantics = [#tpu.dimension_semantics<arbitrary>], iteration_bounds = array<i64: 1>, scalar_prefetch = 0 : i64, scratch_operands = 1 : i64, tpu.core_type = #tpu.core_type<tc>, window_params = [{pipeline_mode = #tpu.pipeline_mode<synchronous>, transform_indices = @transform_0, window_bounds = array<i64: 512, 48>}, {pipeline_mode = #tpu.pipeline_mode<synchronous>, transform_indices = @transform_1, window_bounds = array<i64: 48, 16>}, {pipeline_mode = #tpu.pipeline_mode<synchronous>, transform_indices = @transform_2, window_bounds = array<i64: 1, 16>}, {pipeline_mode = #tpu.pipeline_mode<synchronous>, transform_indices = @transform_3, window_bounds = array<i64: 16, 16, 32>}, {pipeline_mode = #tpu.pipeline_mode<synchronous>, transform_indices = @transform_4, window_bounds = array<i64: 1, 32>}, {pipeline_mode = #tpu.pipeline_mode<synchronous>, transform_indices = @transform_5, window_bounds = array<i64: 1, 32>}, {pipeline_mode = #tpu.pipeline_mode<synchronous>, transform_indices = @transform_6, window_bounds = array<i64: 256, 64>}, {pipeline_mode = #tpu.pipeline_mode<synchronous>, transform_indices = @transform_7, window_bounds = array<i64: 16, 32, 64>}, {pipeline_mode = #tpu.pipeline_mode<synchronous>, transform_indices = @transform_8, window_bounds = array<i64: 1, 64>}, {pipeline_mode = #tpu.pipeline_mode<synchronous>, transform_indices = @transform_9, window_bounds = array<i64: 1, 64>}, {pipeline_mode = #tpu.pipeline_mode<synchronous>, transform_indices = @transform_10, window_bounds = array<i64: 16, 64>}, {pipeline_mode = #tpu.pipeline_mode<synchronous>, transform_indices = @transform_11, window_bounds = array<i64: 1, 1>}, {pipeline_mode = #tpu.pipeline_mode<synchronous>, transform_indices = @transform_12, window_bounds = array<i64: 2, 1>}]} {
    %c0 = arith.constant 0 : index
    %c0_0 = arith.constant 0 : index
    %0 = vector.load %arg1[%c0, %c0_0] : memref<512x48xf32, #tpu.memory_space<vmem>>, vector<512x48xf32>
    %c0_1 = arith.constant 0 : index
    %c0_2 = arith.constant 0 : index
    %1 = vector.load %arg2[%c0_1, %c0_2] : memref<48x16xf32, #tpu.memory_space<vmem>>, vector<48x16xf32>
    %cst = arith.constant dense<0.000000e+00> : vector<512x16xf32>
    %2 = tpu.matmul %0, %1, %cst {dimension_numbers = #tpu.dot_dimension_numbers<[1], [0], [0], [1], [0, 0, 1, 1], [], []>} : vector<512x48xf32>, vector<48x16xf32>, vector<512x16xf32> -> vector<512x16xf32>
    %c0_3 = arith.constant 0 : index
    %c0_4 = arith.constant 0 : index
    %3 = vector.load %arg3[%c0_3, %c0_4] : memref<1x16xf32, #tpu.memory_space<vmem>>, vector<1x16xf32>
    %4 = vector.broadcast %3 : vector<1x16xf32> to vector<512x16xf32>
    %5 = arith.addf %2, %4 : vector<512x16xf32>
    %cst_5 = arith.constant 0.000000e+00 : f32
    %6 = vector.broadcast %cst_5 : f32 to vector<512x16xf32>
    %7 = arith.cmpf ogt, %5, %6 : vector<512x16xf32>
    %cst_6 = arith.constant 2.000000e-01 : f32
    %8 = vector.broadcast %cst_6 : f32 to vector<512x16xf32>
    %9 = arith.mulf %8, %5 : vector<512x16xf32>
    %10 = arith.select %7, %5, %9 : vector<512x16xi1>, vector<512x16xf32>
    %cst_7 = arith.constant 0.000000e+00 : f32
    %11 = vector.broadcast %cst_7 : f32 to vector<4x2x9x9x16xf32>
    %c0_8 = arith.constant 0 : index
    %c0_9 = arith.constant 0 : index
    %c0_10 = arith.constant 0 : index
    %c0_11 = arith.constant 0 : index
    %c0_12 = arith.constant 0 : index
    %12 = vector.load %arg14[%c0_8, %c0_9, %c0_10, %c0_11, %c0_12] : memref<4x2x9x9x16xf32, #tpu.memory_space<vmem>>, vector<4x2x9x9x16xf32>
    tpu.vector_store %arg14[%c0_8, %c0_9, %c0_10, %c0_11, %c0_12], %11 {strides = array<i32>} : memref<4x2x9x9x16xf32, #tpu.memory_space<vmem>>, vector<4x2x9x9x16xf32>,
    %13 = vector.extract_strided_slice %10 {offsets = [0, 0], sizes = [128, 16], strides = [1, 1]} : vector<512x16xf32> to vector<128x16xf32>
    %14 = vector.shape_cast %13 : vector<128x16xf32> to vector<2x8x8x16xf32>
    %c0_13 = arith.constant 0 : index
    %c0_14 = arith.constant 0 : index
    %c1 = arith.constant 1 : index
    %c1_15 = arith.constant 1 : index
    %c0_16 = arith.constant 0 : index
    %15 = vector.load %arg14[%c0_13, %c0_14, %c1, %c1_15, %c0_16] : memref<4x2x9x9x16xf32, #tpu.memory_space<vmem>>, vector<1x2x8x8x16xf32>
    %16 = vector.shape_cast %15 : vector<1x2x8x8x16xf32> to vector<2x8x8x16xf32>
    %17 = vector.shape_cast %14 : vector<2x8x8x16xf32> to vector<1x2x8x8x16xf32>
    tpu.vector_store %arg14[%c0_13, %c0_14, %c1, %c1_15, %c0_16], %17 {strides = array<i32>} : memref<4x2x9x9x16xf32, #tpu.memory_space<vmem>>, vector<1x2x8x8x16xf32>,
    %18 = vector.extract_strided_slice %10 {offsets = [128, 0], sizes = [128, 16], strides = [1, 1]} : vector<512x16xf32> to vector<128x16xf32>
    %19 = vector.shape_cast %18 : vector<128x16xf32> to vector<2x8x8x16xf32>
    %c1_17 = arith.constant 1 : index
    %c0_18 = arith.constant 0 : index
    %c1_19 = arith.constant 1 : index
    %c0_20 = arith.constant 0 : index
    %c0_21 = arith.constant 0 : index
    %20 = vector.load %arg14[%c1_17, %c0_18, %c1_19, %c0_20, %c0_21] : memref<4x2x9x9x16xf32, #tpu.memory_space<vmem>>, vector<1x2x8x8x16xf32>
    %21 = vector.shape_cast %20 : vector<1x2x8x8x16xf32> to vector<2x8x8x16xf32>
    %22 = vector.shape_cast %19 : vector<2x8x8x16xf32> to vector<1x2x8x8x16xf32>
    tpu.vector_store %arg14[%c1_17, %c0_18, %c1_19, %c0_20, %c0_21], %22 {strides = array<i32>} : memref<4x2x9x9x16xf32, #tpu.memory_space<vmem>>, vector<1x2x8x8x16xf32>,
    %23 = vector.extract_strided_slice %10 {offsets = [256, 0], sizes = [128, 16], strides = [1, 1]} : vector<512x16xf32> to vector<128x16xf32>
    %24 = vector.shape_cast %23 : vector<128x16xf32> to vector<2x8x8x16xf32>
    %c2 = arith.constant 2 : index
    %c0_22 = arith.constant 0 : index
    %c0_23 = arith.constant 0 : index
    %c1_24 = arith.constant 1 : index
    %c0_25 = arith.constant 0 : index
    %25 = vector.load %arg14[%c2, %c0_22, %c0_23, %c1_24, %c0_25] : memref<4x2x9x9x16xf32, #tpu.memory_space<vmem>>, vector<1x2x8x8x16xf32>
    %26 = vector.shape_cast %25 : vector<1x2x8x8x16xf32> to vector<2x8x8x16xf32>
    %27 = vector.shape_cast %24 : vector<2x8x8x16xf32> to vector<1x2x8x8x16xf32>
    tpu.vector_store %arg14[%c2, %c0_22, %c0_23, %c1_24, %c0_25], %27 {strides = array<i32>} : memref<4x2x9x9x16xf32, #tpu.memory_space<vmem>>, vector<1x2x8x8x16xf32>,
    %28 = vector.extract_strided_slice %10 {offsets = [384, 0], sizes = [128, 16], strides = [1, 1]} : vector<512x16xf32> to vector<128x16xf32>
    %29 = vector.shape_cast %28 : vector<128x16xf32> to vector<2x8x8x16xf32>
    %c3 = arith.constant 3 : index
    %c0_26 = arith.constant 0 : index
    %c0_27 = arith.constant 0 : index
    %c0_28 = arith.constant 0 : index
    %c0_29 = arith.constant 0 : index
    %30 = vector.load %arg14[%c3, %c0_26, %c0_27, %c0_28, %c0_29] : memref<4x2x9x9x16xf32, #tpu.memory_space<vmem>>, vector<1x2x8x8x16xf32>
    %31 = vector.shape_cast %30 : vector<1x2x8x8x16xf32> to vector<2x8x8x16xf32>
    %32 = vector.shape_cast %29 : vector<2x8x8x16xf32> to vector<1x2x8x8x16xf32>
    tpu.vector_store %arg14[%c3, %c0_26, %c0_27, %c0_28, %c0_29], %32 {strides = array<i32>} : memref<4x2x9x9x16xf32, #tpu.memory_space<vmem>>, vector<1x2x8x8x16xf32>,
    %cst_30 = arith.constant 0.000000e+00 : f32
    %33 = vector.broadcast %cst_30 : f32 to vector<128x32xf32>
    %c0_31 = arith.constant 0 : index
    %c0_32 = arith.constant 0 : index
    %c0_33 = arith.constant 0 : index
    %c0_34 = arith.constant 0 : index
    %c0_35 = arith.constant 0 : index
    %34 = vector.load %arg14[%c0_31, %c0_32, %c0_33, %c0_34, %c0_35] : memref<4x2x9x9x16xf32, #tpu.memory_space<vmem>>, vector<1x2x8x8x16xf32>
    %35 = vector.shape_cast %34 : vector<1x2x8x8x16xf32> to vector<2x8x8x16xf32>
    %36 = vector.shape_cast %35 : vector<2x8x8x16xf32> to vector<128x16xf32>
    %c0_36 = arith.constant 0 : index
    %c0_37 = arith.constant 0 : index
    %c0_38 = arith.constant 0 : index
    %37 = vector.load %arg4[%c0_36, %c0_37, %c0_38] : memref<16x16x32xf32, #tpu.memory_space<vmem>>, vector<1x16x32xf32>
    %38 = vector.shape_cast %37 : vector<1x16x32xf32> to vector<16x32xf32>
    %cst_39 = arith.constant dense<0.000000e+00> : vector<128x32xf32>
    %39 = tpu.matmul %36, %38, %cst_39 {dimension_numbers = #tpu.dot_dimension_numbers<[1], [0], [0], [1], [0, 0, 1, 1], [], []>} : vector<128x16xf32>, vector<16x32xf32>, vector<128x32xf32> -> vector<128x32xf32>
    %40 = arith.addf %33, %39 : vector<128x32xf32>
    %c1_40 = arith.constant 1 : index
    %c0_41 = arith.constant 0 : index
    %c0_42 = arith.constant 0 : index
    %c0_43 = arith.constant 0 : index
    %c0_44 = arith.constant 0 : index
    %41 = vector.load %arg14[%c1_40, %c0_41, %c0_42, %c0_43, %c0_44] : memref<4x2x9x9x16xf32, #tpu.memory_space<vmem>>, vector<1x2x8x8x16xf32>
    %42 = vector.shape_cast %41 : vector<1x2x8x8x16xf32> to vector<2x8x8x16xf32>
    %43 = vector.shape_cast %42 : vector<2x8x8x16xf32> to vector<128x16xf32>
    %c1_45 = arith.constant 1 : index
    %c0_46 = arith.constant 0 : index
    %c0_47 = arith.constant 0 : index
    %44 = vector.load %arg4[%c1_45, %c0_46, %c0_47] : memref<16x16x32xf32, #tpu.memory_space<vmem>>, vector<1x16x32xf32>
    %45 = vector.shape_cast %44 : vector<1x16x32xf32> to vector<16x32xf32>
    %cst_48 = arith.constant dense<0.000000e+00> : vector<128x32xf32>
    %46 = tpu.matmul %43, %45, %cst_48 {dimension_numbers = #tpu.dot_dimension_numbers<[1], [0], [0], [1], [0, 0, 1, 1], [], []>} : vector<128x16xf32>, vector<16x32xf32>, vector<128x32xf32> -> vector<128x32xf32>
    %47 = arith.addf %40, %46 : vector<128x32xf32>
    %c2_49 = arith.constant 2 : index
    %c0_50 = arith.constant 0 : index
    %c0_51 = arith.constant 0 : index
    %c0_52 = arith.constant 0 : index
    %c0_53 = arith.constant 0 : index
    %48 = vector.load %arg14[%c2_49, %c0_50, %c0_51, %c0_52, %c0_53] : memref<4x2x9x9x16xf32, #tpu.memory_space<vmem>>, vector<1x2x8x8x16xf32>
    %49 = vector.shape_cast %48 : vector<1x2x8x8x16xf32> to vector<2x8x8x16xf32>
    %50 = vector.shape_cast %49 : vector<2x8x8x16xf32> to vector<128x16xf32>
    %c2_54 = arith.constant 2 : index
    %c0_55 = arith.constant 0 : index
    %c0_56 = arith.constant 0 : index
    %51 = vector.load %arg4[%c2_54, %c0_55, %c0_56] : memref<16x16x32xf32, #tpu.memory_space<vmem>>, vector<1x16x32xf32>
    %52 = vector.shape_cast %51 : vector<1x16x32xf32> to vector<16x32xf32>
    %cst_57 = arith.constant dense<0.000000e+00> : vector<128x32xf32>
    %53 = tpu.matmul %50, %52, %cst_57 {dimension_numbers = #tpu.dot_dimension_numbers<[1], [0], [0], [1], [0, 0, 1, 1], [], []>} : vector<128x16xf32>, vector<16x32xf32>, vector<128x32xf32> -> vector<128x32xf32>
    %54 = arith.addf %47, %53 : vector<128x32xf32>
    %c3_58 = arith.constant 3 : index
    %c0_59 = arith.constant 0 : index
    %c0_60 = arith.constant 0 : index
    %c0_61 = arith.constant 0 : index
    %c0_62 = arith.constant 0 : index
    %55 = vector.load %arg14[%c3_58, %c0_59, %c0_60, %c0_61, %c0_62] : memref<4x2x9x9x16xf32, #tpu.memory_space<vmem>>, vector<1x2x8x8x16xf32>
    %56 = vector.shape_cast %55 : vector<1x2x8x8x16xf32> to vector<2x8x8x16xf32>
    %57 = vector.shape_cast %56 : vector<2x8x8x16xf32> to vector<128x16xf32>
    %c3_63 = arith.constant 3 : index
    %c0_64 = arith.constant 0 : index
    %c0_65 = arith.constant 0 : index
    %58 = vector.load %arg4[%c3_63, %c0_64, %c0_65] : memref<16x16x32xf32, #tpu.memory_space<vmem>>, vector<1x16x32xf32>
    %59 = vector.shape_cast %58 : vector<1x16x32xf32> to vector<16x32xf32>
    %cst_66 = arith.constant dense<0.000000e+00> : vector<128x32xf32>
    %60 = tpu.matmul %57, %59, %cst_66 {dimension_numbers = #tpu.dot_dimension_numbers<[1], [0], [0], [1], [0, 0, 1, 1], [], []>} : vector<128x16xf32>, vector<16x32xf32>, vector<128x32xf32> -> vector<128x32xf32>
    %61 = arith.addf %54, %60 : vector<128x32xf32>
    %c0_67 = arith.constant 0 : index
    %c0_68 = arith.constant 0 : index
    %c0_69 = arith.constant 0 : index
    %c1_70 = arith.constant 1 : index
    %c0_71 = arith.constant 0 : index
    %62 = vector.load %arg14[%c0_67, %c0_68, %c0_69, %c1_70, %c0_71] : memref<4x2x9x9x16xf32, #tpu.memory_space<vmem>>, vector<1x2x8x8x16xf32>
    %63 = vector.shape_cast %62 : vector<1x2x8x8x16xf32> to vector<2x8x8x16xf32>
    %64 = vector.shape_cast %63 : vector<2x8x8x16xf32> to vector<128x16xf32>
    %c4 = arith.constant 4 : index
    %c0_72 = arith.constant 0 : index
    %c0_73 = arith.constant 0 : index
    %65 = vector.load %arg4[%c4, %c0_72, %c0_73] : memref<16x16x32xf32, #tpu.memory_space<vmem>>, vector<1x16x32xf32>
    %66 = vector.shape_cast %65 : vector<1x16x32xf32> to vector<16x32xf32>
    %cst_74 = arith.constant dense<0.000000e+00> : vector<128x32xf32>
    %67 = tpu.matmul %64, %66, %cst_74 {dimension_numbers = #tpu.dot_dimension_numbers<[1], [0], [0], [1], [0, 0, 1, 1], [], []>} : vector<128x16xf32>, vector<16x32xf32>, vector<128x32xf32> -> vector<128x32xf32>
    %68 = arith.addf %61, %67 : vector<128x32xf32>
    %c1_75 = arith.constant 1 : index
    %c0_76 = arith.constant 0 : index
    %c0_77 = arith.constant 0 : index
    %c1_78 = arith.constant 1 : index
    %c0_79 = arith.constant 0 : index
    %69 = vector.load %arg14[%c1_75, %c0_76, %c0_77, %c1_78, %c0_79] : memref<4x2x9x9x16xf32, #tpu.memory_space<vmem>>, vector<1x2x8x8x16xf32>
    %70 = vector.shape_cast %69 : vector<1x2x8x8x16xf32> to vector<2x8x8x16xf32>
    %71 = vector.shape_cast %70 : vector<2x8x8x16xf32> to vector<128x16xf32>
    %c5 = arith.constant 5 : index
    %c0_80 = arith.constant 0 : index
    %c0_81 = arith.constant 0 : index
    %72 = vector.load %arg4[%c5, %c0_80, %c0_81] : memref<16x16x32xf32, #tpu.memory_space<vmem>>, vector<1x16x32xf32>
    %73 = vector.shape_cast %72 : vector<1x16x32xf32> to vector<16x32xf32>
    %cst_82 = arith.constant dense<0.000000e+00> : vector<128x32xf32>
    %74 = tpu.matmul %71, %73, %cst_82 {dimension_numbers = #tpu.dot_dimension_numbers<[1], [0], [0], [1], [0, 0, 1, 1], [], []>} : vector<128x16xf32>, vector<16x32xf32>, vector<128x32xf32> -> vector<128x32xf32>
    %75 = arith.addf %68, %74 : vector<128x32xf32>
    %c2_83 = arith.constant 2 : index
    %c0_84 = arith.constant 0 : index
    %c0_85 = arith.constant 0 : index
    %c1_86 = arith.constant 1 : index
    %c0_87 = arith.constant 0 : index
    %76 = vector.load %arg14[%c2_83, %c0_84, %c0_85, %c1_86, %c0_87] : memref<4x2x9x9x16xf32, #tpu.memory_space<vmem>>, vector<1x2x8x8x16xf32>
    %77 = vector.shape_cast %76 : vector<1x2x8x8x16xf32> to vector<2x8x8x16xf32>
    %78 = vector.shape_cast %77 : vector<2x8x8x16xf32> to vector<128x16xf32>
    %c6 = arith.constant 6 : index
    %c0_88 = arith.constant 0 : index
    %c0_89 = arith.constant 0 : index
    %79 = vector.load %arg4[%c6, %c0_88, %c0_89] : memref<16x16x32xf32, #tpu.memory_space<vmem>>, vector<1x16x32xf32>
    %80 = vector.shape_cast %79 : vector<1x16x32xf32> to vector<16x32xf32>
    %cst_90 = arith.constant dense<0.000000e+00> : vector<128x32xf32>
    %81 = tpu.matmul %78, %80, %cst_90 {dimension_numbers = #tpu.dot_dimension_numbers<[1], [0], [0], [1], [0, 0, 1, 1], [], []>} : vector<128x16xf32>, vector<16x32xf32>, vector<128x32xf32> -> vector<128x32xf32>
    %82 = arith.addf %75, %81 : vector<128x32xf32>
    %c3_91 = arith.constant 3 : index
    %c0_92 = arith.constant 0 : index
    %c0_93 = arith.constant 0 : index
    %c1_94 = arith.constant 1 : index
    %c0_95 = arith.constant 0 : index
    %83 = vector.load %arg14[%c3_91, %c0_92, %c0_93, %c1_94, %c0_95] : memref<4x2x9x9x16xf32, #tpu.memory_space<vmem>>, vector<1x2x8x8x16xf32>
    %84 = vector.shape_cast %83 : vector<1x2x8x8x16xf32> to vector<2x8x8x16xf32>
    %85 = vector.shape_cast %84 : vector<2x8x8x16xf32> to vector<128x16xf32>
    %c7 = arith.constant 7 : index
    %c0_96 = arith.constant 0 : index
    %c0_97 = arith.constant 0 : index
    %86 = vector.load %arg4[%c7, %c0_96, %c0_97] : memref<16x16x32xf32, #tpu.memory_space<vmem>>, vector<1x16x32xf32>
    %87 = vector.shape_cast %86 : vector<1x16x32xf32> to vector<16x32xf32>
    %cst_98 = arith.constant dense<0.000000e+00> : vector<128x32xf32>
    %88 = tpu.matmul %85, %87, %cst_98 {dimension_numbers = #tpu.dot_dimension_numbers<[1], [0], [0], [1], [0, 0, 1, 1], [], []>} : vector<128x16xf32>, vector<16x32xf32>, vector<128x32xf32> -> vector<128x32xf32>
    %89 = arith.addf %82, %88 : vector<128x32xf32>
    %c0_99 = arith.constant 0 : index
    %c0_100 = arith.constant 0 : index
    %c1_101 = arith.constant 1 : index
    %c0_102 = arith.constant 0 : index
    %c0_103 = arith.constant 0 : index
    %90 = vector.load %arg14[%c0_99, %c0_100, %c1_101, %c0_102, %c0_103] : memref<4x2x9x9x16xf32, #tpu.memory_space<vmem>>, vector<1x2x8x8x16xf32>
    %91 = vector.shape_cast %90 : vector<1x2x8x8x16xf32> to vector<2x8x8x16xf32>
    %92 = vector.shape_cast %91 : vector<2x8x8x16xf32> to vector<128x16xf32>
    %c8 = arith.constant 8 : index
    %c0_104 = arith.constant 0 : index
    %c0_105 = arith.constant 0 : index
    %93 = vector.load %arg4[%c8, %c0_104, %c0_105] : memref<16x16x32xf32, #tpu.memory_space<vmem>>, vector<1x16x32xf32>
    %94 = vector.shape_cast %93 : vector<1x16x32xf32> to vector<16x32xf32>
    %cst_106 = arith.constant dense<0.000000e+00> : vector<128x32xf32>
    %95 = tpu.matmul %92, %94, %cst_106 {dimension_numbers = #tpu.dot_dimension_numbers<[1], [0], [0], [1], [0, 0, 1, 1], [], []>} : vector<128x16xf32>, vector<16x32xf32>, vector<128x32xf32> -> vector<128x32xf32>
    %96 = arith.addf %89, %95 : vector<128x32xf32>
    %c1_107 = arith.constant 1 : index
    %c0_108 = arith.constant 0 : index
    %c1_109 = arith.constant 1 : index
    %c0_110 = arith.constant 0 : index
    %c0_111 = arith.constant 0 : index
    %97 = vector.load %arg14[%c1_107, %c0_108, %c1_109, %c0_110, %c0_111] : memref<4x2x9x9x16xf32, #tpu.memory_space<vmem>>, vector<1x2x8x8x16xf32>
    %98 = vector.shape_cast %97 : vector<1x2x8x8x16xf32> to vector<2x8x8x16xf32>
    %99 = vector.shape_cast %98 : vector<2x8x8x16xf32> to vector<128x16xf32>
    %c9 = arith.constant 9 : index
    %c0_112 = arith.constant 0 : index
    %c0_113 = arith.constant 0 : index
    %100 = vector.load %arg4[%c9, %c0_112, %c0_113] : memref<16x16x32xf32, #tpu.memory_space<vmem>>, vector<1x16x32xf32>
    %101 = vector.shape_cast %100 : vector<1x16x32xf32> to vector<16x32xf32>
    %cst_114 = arith.constant dense<0.000000e+00> : vector<128x32xf32>
    %102 = tpu.matmul %99, %101, %cst_114 {dimension_numbers = #tpu.dot_dimension_numbers<[1], [0], [0], [1], [0, 0, 1, 1], [], []>} : vector<128x16xf32>, vector<16x32xf32>, vector<128x32xf32> -> vector<128x32xf32>
    %103 = arith.addf %96, %102 : vector<128x32xf32>
    %c2_115 = arith.constant 2 : index
    %c0_116 = arith.constant 0 : index
    %c1_117 = arith.constant 1 : index
    %c0_118 = arith.constant 0 : index
    %c0_119 = arith.constant 0 : index
    %104 = vector.load %arg14[%c2_115, %c0_116, %c1_117, %c0_118, %c0_119] : memref<4x2x9x9x16xf32, #tpu.memory_space<vmem>>, vector<1x2x8x8x16xf32>
    %105 = vector.shape_cast %104 : vector<1x2x8x8x16xf32> to vector<2x8x8x16xf32>
    %106 = vector.shape_cast %105 : vector<2x8x8x16xf32> to vector<128x16xf32>
    %c10 = arith.constant 10 : index
    %c0_120 = arith.constant 0 : index
    %c0_121 = arith.constant 0 : index
    %107 = vector.load %arg4[%c10, %c0_120, %c0_121] : memref<16x16x32xf32, #tpu.memory_space<vmem>>, vector<1x16x32xf32>
    %108 = vector.shape_cast %107 : vector<1x16x32xf32> to vector<16x32xf32>
    %cst_122 = arith.constant dense<0.000000e+00> : vector<128x32xf32>
    %109 = tpu.matmul %106, %108, %cst_122 {dimension_numbers = #tpu.dot_dimension_numbers<[1], [0], [0], [1], [0, 0, 1, 1], [], []>} : vector<128x16xf32>, vector<16x32xf32>, vector<128x32xf32> -> vector<128x32xf32>
    %110 = arith.addf %103, %109 : vector<128x32xf32>
    %c3_123 = arith.constant 3 : index
    %c0_124 = arith.constant 0 : index
    %c1_125 = arith.constant 1 : index
    %c0_126 = arith.constant 0 : index
    %c0_127 = arith.constant 0 : index
    %111 = vector.load %arg14[%c3_123, %c0_124, %c1_125, %c0_126, %c0_127] : memref<4x2x9x9x16xf32, #tpu.memory_space<vmem>>, vector<1x2x8x8x16xf32>
    %112 = vector.shape_cast %111 : vector<1x2x8x8x16xf32> to vector<2x8x8x16xf32>
    %113 = vector.shape_cast %112 : vector<2x8x8x16xf32> to vector<128x16xf32>
    %c11 = arith.constant 11 : index
    %c0_128 = arith.constant 0 : index
    %c0_129 = arith.constant 0 : index
    %114 = vector.load %arg4[%c11, %c0_128, %c0_129] : memref<16x16x32xf32, #tpu.memory_space<vmem>>, vector<1x16x32xf32>
    %115 = vector.shape_cast %114 : vector<1x16x32xf32> to vector<16x32xf32>
    %cst_130 = arith.constant dense<0.000000e+00> : vector<128x32xf32>
    %116 = tpu.matmul %113, %115, %cst_130 {dimension_numbers = #tpu.dot_dimension_numbers<[1], [0], [0], [1], [0, 0, 1, 1], [], []>} : vector<128x16xf32>, vector<16x32xf32>, vector<128x32xf32> -> vector<128x32xf32>
    %117 = arith.addf %110, %116 : vector<128x32xf32>
    %c0_131 = arith.constant 0 : index
    %c0_132 = arith.constant 0 : index
    %c1_133 = arith.constant 1 : index
    %c1_134 = arith.constant 1 : index
    %c0_135 = arith.constant 0 : index
    %118 = vector.load %arg14[%c0_131, %c0_132, %c1_133, %c1_134, %c0_135] : memref<4x2x9x9x16xf32, #tpu.memory_space<vmem>>, vector<1x2x8x8x16xf32>
    %119 = vector.shape_cast %118 : vector<1x2x8x8x16xf32> to vector<2x8x8x16xf32>
    %120 = vector.shape_cast %119 : vector<2x8x8x16xf32> to vector<128x16xf32>
    %c12 = arith.constant 12 : index
    %c0_136 = arith.constant 0 : index
    %c0_137 = arith.constant 0 : index
    %121 = vector.load %arg4[%c12, %c0_136, %c0_137] : memref<16x16x32xf32, #tpu.memory_space<vmem>>, vector<1x16x32xf32>
    %122 = vector.shape_cast %121 : vector<1x16x32xf32> to vector<16x32xf32>
    %cst_138 = arith.constant dense<0.000000e+00> : vector<128x32xf32>
    %123 = tpu.matmul %120, %122, %cst_138 {dimension_numbers = #tpu.dot_dimension_numbers<[1], [0], [0], [1], [0, 0, 1, 1], [], []>} : vector<128x16xf32>, vector<16x32xf32>, vector<128x32xf32> -> vector<128x32xf32>
    %124 = arith.addf %117, %123 : vector<128x32xf32>
    %c1_139 = arith.constant 1 : index
    %c0_140 = arith.constant 0 : index
    %c1_141 = arith.constant 1 : index
    %c1_142 = arith.constant 1 : index
    %c0_143 = arith.constant 0 : index
    %125 = vector.load %arg14[%c1_139, %c0_140, %c1_141, %c1_142, %c0_143] : memref<4x2x9x9x16xf32, #tpu.memory_space<vmem>>, vector<1x2x8x8x16xf32>
    %126 = vector.shape_cast %125 : vector<1x2x8x8x16xf32> to vector<2x8x8x16xf32>
    %127 = vector.shape_cast %126 : vector<2x8x8x16xf32> to vector<128x16xf32>
    %c13 = arith.constant 13 : index
    %c0_144 = arith.constant 0 : index
    %c0_145 = arith.constant 0 : index
    %128 = vector.load %arg4[%c13, %c0_144, %c0_145] : memref<16x16x32xf32, #tpu.memory_space<vmem>>, vector<1x16x32xf32>
    %129 = vector.shape_cast %128 : vector<1x16x32xf32> to vector<16x32xf32>
    %cst_146 = arith.constant dense<0.000000e+00> : vector<128x32xf32>
    %130 = tpu.matmul %127, %129, %cst_146 {dimension_numbers = #tpu.dot_dimension_numbers<[1], [0], [0], [1], [0, 0, 1, 1], [], []>} : vector<128x16xf32>, vector<16x32xf32>, vector<128x32xf32> -> vector<128x32xf32>
    %131 = arith.addf %124, %130 : vector<128x32xf32>
    %c2_147 = arith.constant 2 : index
    %c0_148 = arith.constant 0 : index
    %c1_149 = arith.constant 1 : index
    %c1_150 = arith.constant 1 : index
    %c0_151 = arith.constant 0 : index
    %132 = vector.load %arg14[%c2_147, %c0_148, %c1_149, %c1_150, %c0_151] : memref<4x2x9x9x16xf32, #tpu.memory_space<vmem>>, vector<1x2x8x8x16xf32>
    %133 = vector.shape_cast %132 : vector<1x2x8x8x16xf32> to vector<2x8x8x16xf32>
    %134 = vector.shape_cast %133 : vector<2x8x8x16xf32> to vector<128x16xf32>
    %c14 = arith.constant 14 : index
    %c0_152 = arith.constant 0 : index
    %c0_153 = arith.constant 0 : index
    %135 = vector.load %arg4[%c14, %c0_152, %c0_153] : memref<16x16x32xf32, #tpu.memory_space<vmem>>, vector<1x16x32xf32>
    %136 = vector.shape_cast %135 : vector<1x16x32xf32> to vector<16x32xf32>
    %cst_154 = arith.constant dense<0.000000e+00> : vector<128x32xf32>
    %137 = tpu.matmul %134, %136, %cst_154 {dimension_numbers = #tpu.dot_dimension_numbers<[1], [0], [0], [1], [0, 0, 1, 1], [], []>} : vector<128x16xf32>, vector<16x32xf32>, vector<128x32xf32> -> vector<128x32xf32>
    %138 = arith.addf %131, %137 : vector<128x32xf32>
    %c3_155 = arith.constant 3 : index
    %c0_156 = arith.constant 0 : index
    %c1_157 = arith.constant 1 : index
    %c1_158 = arith.constant 1 : index
    %c0_159 = arith.constant 0 : index
    %139 = vector.load %arg14[%c3_155, %c0_156, %c1_157, %c1_158, %c0_159] : memref<4x2x9x9x16xf32, #tpu.memory_space<vmem>>, vector<1x2x8x8x16xf32>
    %140 = vector.shape_cast %139 : vector<1x2x8x8x16xf32> to vector<2x8x8x16xf32>
    %141 = vector.shape_cast %140 : vector<2x8x8x16xf32> to vector<128x16xf32>
    %c15 = arith.constant 15 : index
    %c0_160 = arith.constant 0 : index
    %c0_161 = arith.constant 0 : index
    %142 = vector.load %arg4[%c15, %c0_160, %c0_161] : memref<16x16x32xf32, #tpu.memory_space<vmem>>, vector<1x16x32xf32>
    %143 = vector.shape_cast %142 : vector<1x16x32xf32> to vector<16x32xf32>
    %cst_162 = arith.constant dense<0.000000e+00> : vector<128x32xf32>
    %144 = tpu.matmul %141, %143, %cst_162 {dimension_numbers = #tpu.dot_dimension_numbers<[1], [0], [0], [1], [0, 0, 1, 1], [], []>} : vector<128x16xf32>, vector<16x32xf32>, vector<128x32xf32> -> vector<128x32xf32>
    %145 = arith.addf %138, %144 : vector<128x32xf32>
    %cst_163 = arith.constant dense<0.000000e+00> : vector<32xf32>
    %146 = vector.multi_reduction <add>, %145, %cst_163 [0] : vector<128x32xf32> to vector<32xf32>
    %147 = vector.shape_cast %146 : vector<32xf32> to vector<1x32xf32>
    %cst_164 = arith.constant 1.280000e+02 : f32
    %148 = vector.broadcast %cst_164 : f32 to vector<1x32xf32>
    %149 = arith.divf %147, %148 : vector<1x32xf32>
    %150 = vector.broadcast %149 : vector<1x32xf32> to vector<128x32xf32>
    %151 = arith.subf %145, %150 : vector<128x32xf32>
    %152 = arith.mulf %151, %151 : vector<128x32xf32>
    %cst_165 = arith.constant dense<0.000000e+00> : vector<32xf32>
    %153 = vector.multi_reduction <add>, %152, %cst_165 [0] : vector<128x32xf32> to vector<32xf32>
    %154 = vector.shape_cast %153 : vector<32xf32> to vector<1x32xf32>
    %cst_166 = arith.constant 1.280000e+02 : f32
    %155 = vector.broadcast %cst_166 : f32 to vector<1x32xf32>
    %156 = arith.divf %154, %155 : vector<1x32xf32>
    %157 = vector.broadcast %149 : vector<1x32xf32> to vector<128x32xf32>
    %158 = arith.subf %145, %157 : vector<128x32xf32>
    %cst_167 = arith.constant 9.99999974E-6 : f32
    %159 = vector.broadcast %cst_167 : f32 to vector<1x32xf32>
    %160 = arith.addf %156, %159 : vector<1x32xf32>
    %161 = math.rsqrt %160 : vector<1x32xf32>
    %162 = vector.broadcast %161 : vector<1x32xf32> to vector<128x32xf32>
    %163 = arith.mulf %158, %162 : vector<128x32xf32>
    %c0_168 = arith.constant 0 : index
    %c0_169 = arith.constant 0 : index
    %164 = vector.load %arg5[%c0_168, %c0_169] : memref<1x32xf32, #tpu.memory_space<vmem>>, vector<1x32xf32>
    %165 = vector.broadcast %164 : vector<1x32xf32> to vector<128x32xf32>
    %166 = arith.mulf %163, %165 : vector<128x32xf32>
    %c0_170 = arith.constant 0 : index
    %c0_171 = arith.constant 0 : index
    %167 = vector.load %arg6[%c0_170, %c0_171] : memref<1x32xf32, #tpu.memory_space<vmem>>, vector<1x32xf32>
    %168 = vector.broadcast %167 : vector<1x32xf32> to vector<128x32xf32>
    %169 = arith.addf %166, %168 : vector<128x32xf32>
    %cst_172 = arith.constant 0.000000e+00 : f32
    %170 = vector.broadcast %cst_172 : f32 to vector<128x32xf32>
    %171 = arith.cmpf ogt, %169, %170 : vector<128x32xf32>
    %cst_173 = arith.constant 2.000000e-01 : f32
    %172 = vector.broadcast %cst_173 : f32 to vector<128x32xf32>
    %173 = arith.mulf %172, %169 : vector<128x32xf32>
    %174 = arith.select %171, %169, %173 : vector<128x32xi1>, vector<128x32xf32>
    %c0_174 = arith.constant 0 : index
    %c0_175 = arith.constant 0 : index
    %175 = vector.load %arg7[%c0_174, %c0_175] : memref<256x64xf32, #tpu.memory_space<vmem>>, vector<256x64xf32>
    %176 = vector.extract_strided_slice %174 {offsets = [0, 0], sizes = [64, 32], strides = [1, 1]} : vector<128x32xf32> to vector<64x32xf32>
    %cst_176 = arith.constant dense<0.000000e+00> : vector<256x32xf32>
    %177 = tpu.matmul %175, %176, %cst_176 {dimension_numbers = #tpu.dot_dimension_numbers<[1], [0], [0], [1], [0, 0, 1, 1], [], []>} : vector<256x64xf32>, vector<64x32xf32>, vector<256x32xf32> -> vector<256x32xf32>
    %cst_177 = arith.constant 0.000000e+00 : f32
    %178 = vector.broadcast %cst_177 : f32 to vector<16x64xf32>
    %179 = vector.extract_strided_slice %177 {offsets = [0, 0], sizes = [16, 32], strides = [1, 1]} : vector<256x32xf32> to vector<16x32xf32>
    %c0_178 = arith.constant 0 : index
    %c0_179 = arith.constant 0 : index
    %c0_180 = arith.constant 0 : index
    %180 = vector.load %arg8[%c0_178, %c0_179, %c0_180] : memref<16x32x64xf32, #tpu.memory_space<vmem>>, vector<1x32x64xf32>
    %181 = vector.shape_cast %180 : vector<1x32x64xf32> to vector<32x64xf32>
    %cst_181 = arith.constant dense<0.000000e+00> : vector<16x64xf32>
    %182 = tpu.matmul %179, %181, %cst_181 {dimension_numbers = #tpu.dot_dimension_numbers<[1], [0], [0], [1], [0, 0, 1, 1], [], []>} : vector<16x32xf32>, vector<32x64xf32>, vector<16x64xf32> -> vector<16x64xf32>
    %183 = arith.addf %178, %182 : vector<16x64xf32>
    %184 = vector.extract_strided_slice %177 {offsets = [16, 0], sizes = [16, 32], strides = [1, 1]} : vector<256x32xf32> to vector<16x32xf32>
    %c1_182 = arith.constant 1 : index
    %c0_183 = arith.constant 0 : index
    %c0_184 = arith.constant 0 : index
    %185 = vector.load %arg8[%c1_182, %c0_183, %c0_184] : memref<16x32x64xf32, #tpu.memory_space<vmem>>, vector<1x32x64xf32>
    %186 = vector.shape_cast %185 : vector<1x32x64xf32> to vector<32x64xf32>
    %cst_185 = arith.constant dense<0.000000e+00> : vector<16x64xf32>
    %187 = tpu.matmul %184, %186, %cst_185 {dimension_numbers = #tpu.dot_dimension_numbers<[1], [0], [0], [1], [0, 0, 1, 1], [], []>} : vector<16x32xf32>, vector<32x64xf32>, vector<16x64xf32> -> vector<16x64xf32>
    %188 = arith.addf %183, %187 : vector<16x64xf32>
    %189 = vector.extract_strided_slice %177 {offsets = [32, 0], sizes = [16, 32], strides = [1, 1]} : vector<256x32xf32> to vector<16x32xf32>
    %c2_186 = arith.constant 2 : index
    %c0_187 = arith.constant 0 : index
    %c0_188 = arith.constant 0 : index
    %190 = vector.load %arg8[%c2_186, %c0_187, %c0_188] : memref<16x32x64xf32, #tpu.memory_space<vmem>>, vector<1x32x64xf32>
    %191 = vector.shape_cast %190 : vector<1x32x64xf32> to vector<32x64xf32>
    %cst_189 = arith.constant dense<0.000000e+00> : vector<16x64xf32>
    %192 = tpu.matmul %189, %191, %cst_189 {dimension_numbers = #tpu.dot_dimension_numbers<[1], [0], [0], [1], [0, 0, 1, 1], [], []>} : vector<16x32xf32>, vector<32x64xf32>, vector<16x64xf32> -> vector<16x64xf32>
    %193 = arith.addf %188, %192 : vector<16x64xf32>
    %194 = vector.extract_strided_slice %177 {offsets = [48, 0], sizes = [16, 32], strides = [1, 1]} : vector<256x32xf32> to vector<16x32xf32>
    %c3_190 = arith.constant 3 : index
    %c0_191 = arith.constant 0 : index
    %c0_192 = arith.constant 0 : index
    %195 = vector.load %arg8[%c3_190, %c0_191, %c0_192] : memref<16x32x64xf32, #tpu.memory_space<vmem>>, vector<1x32x64xf32>
    %196 = vector.shape_cast %195 : vector<1x32x64xf32> to vector<32x64xf32>
    %cst_193 = arith.constant dense<0.000000e+00> : vector<16x64xf32>
    %197 = tpu.matmul %194, %196, %cst_193 {dimension_numbers = #tpu.dot_dimension_numbers<[1], [0], [0], [1], [0, 0, 1, 1], [], []>} : vector<16x32xf32>, vector<32x64xf32>, vector<16x64xf32> -> vector<16x64xf32>
    %198 = arith.addf %193, %197 : vector<16x64xf32>
    %199 = vector.extract_strided_slice %177 {offsets = [64, 0], sizes = [16, 32], strides = [1, 1]} : vector<256x32xf32> to vector<16x32xf32>
    %c4_194 = arith.constant 4 : index
    %c0_195 = arith.constant 0 : index
    %c0_196 = arith.constant 0 : index
    %200 = vector.load %arg8[%c4_194, %c0_195, %c0_196] : memref<16x32x64xf32, #tpu.memory_space<vmem>>, vector<1x32x64xf32>
    %201 = vector.shape_cast %200 : vector<1x32x64xf32> to vector<32x64xf32>
    %cst_197 = arith.constant dense<0.000000e+00> : vector<16x64xf32>
    %202 = tpu.matmul %199, %201, %cst_197 {dimension_numbers = #tpu.dot_dimension_numbers<[1], [0], [0], [1], [0, 0, 1, 1], [], []>} : vector<16x32xf32>, vector<32x64xf32>, vector<16x64xf32> -> vector<16x64xf32>
    %203 = arith.addf %198, %202 : vector<16x64xf32>
    %204 = vector.extract_strided_slice %177 {offsets = [80, 0], sizes = [16, 32], strides = [1, 1]} : vector<256x32xf32> to vector<16x32xf32>
    %c5_198 = arith.constant 5 : index
    %c0_199 = arith.constant 0 : index
    %c0_200 = arith.constant 0 : index
    %205 = vector.load %arg8[%c5_198, %c0_199, %c0_200] : memref<16x32x64xf32, #tpu.memory_space<vmem>>, vector<1x32x64xf32>
    %206 = vector.shape_cast %205 : vector<1x32x64xf32> to vector<32x64xf32>
    %cst_201 = arith.constant dense<0.000000e+00> : vector<16x64xf32>
    %207 = tpu.matmul %204, %206, %cst_201 {dimension_numbers = #tpu.dot_dimension_numbers<[1], [0], [0], [1], [0, 0, 1, 1], [], []>} : vector<16x32xf32>, vector<32x64xf32>, vector<16x64xf32> -> vector<16x64xf32>
    %208 = arith.addf %203, %207 : vector<16x64xf32>
    %209 = vector.extract_strided_slice %177 {offsets = [96, 0], sizes = [16, 32], strides = [1, 1]} : vector<256x32xf32> to vector<16x32xf32>
    %c6_202 = arith.constant 6 : index
    %c0_203 = arith.constant 0 : index
    %c0_204 = arith.constant 0 : index
    %210 = vector.load %arg8[%c6_202, %c0_203, %c0_204] : memref<16x32x64xf32, #tpu.memory_space<vmem>>, vector<1x32x64xf32>
    %211 = vector.shape_cast %210 : vector<1x32x64xf32> to vector<32x64xf32>
    %cst_205 = arith.constant dense<0.000000e+00> : vector<16x64xf32>
    %212 = tpu.matmul %209, %211, %cst_205 {dimension_numbers = #tpu.dot_dimension_numbers<[1], [0], [0], [1], [0, 0, 1, 1], [], []>} : vector<16x32xf32>, vector<32x64xf32>, vector<16x64xf32> -> vector<16x64xf32>
    %213 = arith.addf %208, %212 : vector<16x64xf32>
    %214 = vector.extract_strided_slice %177 {offsets = [112, 0], sizes = [16, 32], strides = [1, 1]} : vector<256x32xf32> to vector<16x32xf32>
    %c7_206 = arith.constant 7 : index
    %c0_207 = arith.constant 0 : index
    %c0_208 = arith.constant 0 : index
    %215 = vector.load %arg8[%c7_206, %c0_207, %c0_208] : memref<16x32x64xf32, #tpu.memory_space<vmem>>, vector<1x32x64xf32>
    %216 = vector.shape_cast %215 : vector<1x32x64xf32> to vector<32x64xf32>
    %cst_209 = arith.constant dense<0.000000e+00> : vector<16x64xf32>
    %217 = tpu.matmul %214, %216, %cst_209 {dimension_numbers = #tpu.dot_dimension_numbers<[1], [0], [0], [1], [0, 0, 1, 1], [], []>} : vector<16x32xf32>, vector<32x64xf32>, vector<16x64xf32> -> vector<16x64xf32>
    %218 = arith.addf %213, %217 : vector<16x64xf32>
    %219 = vector.extract_strided_slice %177 {offsets = [128, 0], sizes = [16, 32], strides = [1, 1]} : vector<256x32xf32> to vector<16x32xf32>
    %c8_210 = arith.constant 8 : index
    %c0_211 = arith.constant 0 : index
    %c0_212 = arith.constant 0 : index
    %220 = vector.load %arg8[%c8_210, %c0_211, %c0_212] : memref<16x32x64xf32, #tpu.memory_space<vmem>>, vector<1x32x64xf32>
    %221 = vector.shape_cast %220 : vector<1x32x64xf32> to vector<32x64xf32>
    %cst_213 = arith.constant dense<0.000000e+00> : vector<16x64xf32>
    %222 = tpu.matmul %219, %221, %cst_213 {dimension_numbers = #tpu.dot_dimension_numbers<[1], [0], [0], [1], [0, 0, 1, 1], [], []>} : vector<16x32xf32>, vector<32x64xf32>, vector<16x64xf32> -> vector<16x64xf32>
    %223 = arith.addf %218, %222 : vector<16x64xf32>
    %224 = vector.extract_strided_slice %177 {offsets = [144, 0], sizes = [16, 32], strides = [1, 1]} : vector<256x32xf32> to vector<16x32xf32>
    %c9_214 = arith.constant 9 : index
    %c0_215 = arith.constant 0 : index
    %c0_216 = arith.constant 0 : index
    %225 = vector.load %arg8[%c9_214, %c0_215, %c0_216] : memref<16x32x64xf32, #tpu.memory_space<vmem>>, vector<1x32x64xf32>
    %226 = vector.shape_cast %225 : vector<1x32x64xf32> to vector<32x64xf32>
    %cst_217 = arith.constant dense<0.000000e+00> : vector<16x64xf32>
    %227 = tpu.matmul %224, %226, %cst_217 {dimension_numbers = #tpu.dot_dimension_numbers<[1], [0], [0], [1], [0, 0, 1, 1], [], []>} : vector<16x32xf32>, vector<32x64xf32>, vector<16x64xf32> -> vector<16x64xf32>
    %228 = arith.addf %223, %227 : vector<16x64xf32>
    %229 = vector.extract_strided_slice %177 {offsets = [160, 0], sizes = [16, 32], strides = [1, 1]} : vector<256x32xf32> to vector<16x32xf32>
    %c10_218 = arith.constant 10 : index
    %c0_219 = arith.constant 0 : index
    %c0_220 = arith.constant 0 : index
    %230 = vector.load %arg8[%c10_218, %c0_219, %c0_220] : memref<16x32x64xf32, #tpu.memory_space<vmem>>, vector<1x32x64xf32>
    %231 = vector.shape_cast %230 : vector<1x32x64xf32> to vector<32x64xf32>
    %cst_221 = arith.constant dense<0.000000e+00> : vector<16x64xf32>
    %232 = tpu.matmul %229, %231, %cst_221 {dimension_numbers = #tpu.dot_dimension_numbers<[1], [0], [0], [1], [0, 0, 1, 1], [], []>} : vector<16x32xf32>, vector<32x64xf32>, vector<16x64xf32> -> vector<16x64xf32>
    %233 = arith.addf %228, %232 : vector<16x64xf32>
    %234 = vector.extract_strided_slice %177 {offsets = [176, 0], sizes = [16, 32], strides = [1, 1]} : vector<256x32xf32> to vector<16x32xf32>
    %c11_222 = arith.constant 11 : index
    %c0_223 = arith.constant 0 : index
    %c0_224 = arith.constant 0 : index
    %235 = vector.load %arg8[%c11_222, %c0_223, %c0_224] : memref<16x32x64xf32, #tpu.memory_space<vmem>>, vector<1x32x64xf32>
    %236 = vector.shape_cast %235 : vector<1x32x64xf32> to vector<32x64xf32>
    %cst_225 = arith.constant dense<0.000000e+00> : vector<16x64xf32>
    %237 = tpu.matmul %234, %236, %cst_225 {dimension_numbers = #tpu.dot_dimension_numbers<[1], [0], [0], [1], [0, 0, 1, 1], [], []>} : vector<16x32xf32>, vector<32x64xf32>, vector<16x64xf32> -> vector<16x64xf32>
    %238 = arith.addf %233, %237 : vector<16x64xf32>
    %239 = vector.extract_strided_slice %177 {offsets = [192, 0], sizes = [16, 32], strides = [1, 1]} : vector<256x32xf32> to vector<16x32xf32>
    %c12_226 = arith.constant 12 : index
    %c0_227 = arith.constant 0 : index
    %c0_228 = arith.constant 0 : index
    %240 = vector.load %arg8[%c12_226, %c0_227, %c0_228] : memref<16x32x64xf32, #tpu.memory_space<vmem>>, vector<1x32x64xf32>
    %241 = vector.shape_cast %240 : vector<1x32x64xf32> to vector<32x64xf32>
    %cst_229 = arith.constant dense<0.000000e+00> : vector<16x64xf32>
    %242 = tpu.matmul %239, %241, %cst_229 {dimension_numbers = #tpu.dot_dimension_numbers<[1], [0], [0], [1], [0, 0, 1, 1], [], []>} : vector<16x32xf32>, vector<32x64xf32>, vector<16x64xf32> -> vector<16x64xf32>
    %243 = arith.addf %238, %242 : vector<16x64xf32>
    %244 = vector.extract_strided_slice %177 {offsets = [208, 0], sizes = [16, 32], strides = [1, 1]} : vector<256x32xf32> to vector<16x32xf32>
    %c13_230 = arith.constant 13 : index
    %c0_231 = arith.constant 0 : index
    %c0_232 = arith.constant 0 : index
    %245 = vector.load %arg8[%c13_230, %c0_231, %c0_232] : memref<16x32x64xf32, #tpu.memory_space<vmem>>, vector<1x32x64xf32>
    %246 = vector.shape_cast %245 : vector<1x32x64xf32> to vector<32x64xf32>
    %cst_233 = arith.constant dense<0.000000e+00> : vector<16x64xf32>
    %247 = tpu.matmul %244, %246, %cst_233 {dimension_numbers = #tpu.dot_dimension_numbers<[1], [0], [0], [1], [0, 0, 1, 1], [], []>} : vector<16x32xf32>, vector<32x64xf32>, vector<16x64xf32> -> vector<16x64xf32>
    %248 = arith.addf %243, %247 : vector<16x64xf32>
    %249 = vector.extract_strided_slice %177 {offsets = [224, 0], sizes = [16, 32], strides = [1, 1]} : vector<256x32xf32> to vector<16x32xf32>
    %c14_234 = arith.constant 14 : index
    %c0_235 = arith.constant 0 : index
    %c0_236 = arith.constant 0 : index
    %250 = vector.load %arg8[%c14_234, %c0_235, %c0_236] : memref<16x32x64xf32, #tpu.memory_space<vmem>>, vector<1x32x64xf32>
    %251 = vector.shape_cast %250 : vector<1x32x64xf32> to vector<32x64xf32>
    %cst_237 = arith.constant dense<0.000000e+00> : vector<16x64xf32>
    %252 = tpu.matmul %249, %251, %cst_237 {dimension_numbers = #tpu.dot_dimension_numbers<[1], [0], [0], [1], [0, 0, 1, 1], [], []>} : vector<16x32xf32>, vector<32x64xf32>, vector<16x64xf32> -> vector<16x64xf32>
    %253 = arith.addf %248, %252 : vector<16x64xf32>
    %254 = vector.extract_strided_slice %177 {offsets = [240, 0], sizes = [16, 32], strides = [1, 1]} : vector<256x32xf32> to vector<16x32xf32>
    %c15_238 = arith.constant 15 : index
    %c0_239 = arith.constant 0 : index
    %c0_240 = arith.constant 0 : index
    %255 = vector.load %arg8[%c15_238, %c0_239, %c0_240] : memref<16x32x64xf32, #tpu.memory_space<vmem>>, vector<1x32x64xf32>
    %256 = vector.shape_cast %255 : vector<1x32x64xf32> to vector<32x64xf32>
    %cst_241 = arith.constant dense<0.000000e+00> : vector<16x64xf32>
    %257 = tpu.matmul %254, %256, %cst_241 {dimension_numbers = #tpu.dot_dimension_numbers<[1], [0], [0], [1], [0, 0, 1, 1], [], []>} : vector<16x32xf32>, vector<32x64xf32>, vector<16x64xf32> -> vector<16x64xf32>
    %258 = arith.addf %253, %257 : vector<16x64xf32>
    %259 = vector.extract_strided_slice %174 {offsets = [64, 0], sizes = [64, 32], strides = [1, 1]} : vector<128x32xf32> to vector<64x32xf32>
    %cst_242 = arith.constant dense<0.000000e+00> : vector<256x32xf32>
    %260 = tpu.matmul %175, %259, %cst_242 {dimension_numbers = #tpu.dot_dimension_numbers<[1], [0], [0], [1], [0, 0, 1, 1], [], []>} : vector<256x64xf32>, vector<64x32xf32>, vector<256x32xf32> -> vector<256x32xf32>
    %cst_243 = arith.constant 0.000000e+00 : f32
    %261 = vector.broadcast %cst_243 : f32 to vector<16x64xf32>
    %262 = vector.extract_strided_slice %260 {offsets = [0, 0], sizes = [16, 32], strides = [1, 1]} : vector<256x32xf32> to vector<16x32xf32>
    %c0_244 = arith.constant 0 : index
    %c0_245 = arith.constant 0 : index
    %c0_246 = arith.constant 0 : index
    %263 = vector.load %arg8[%c0_244, %c0_245, %c0_246] : memref<16x32x64xf32, #tpu.memory_space<vmem>>, vector<1x32x64xf32>
    %264 = vector.shape_cast %263 : vector<1x32x64xf32> to vector<32x64xf32>
    %cst_247 = arith.constant dense<0.000000e+00> : vector<16x64xf32>
    %265 = tpu.matmul %262, %264, %cst_247 {dimension_numbers = #tpu.dot_dimension_numbers<[1], [0], [0], [1], [0, 0, 1, 1], [], []>} : vector<16x32xf32>, vector<32x64xf32>, vector<16x64xf32> -> vector<16x64xf32>
    %266 = arith.addf %261, %265 : vector<16x64xf32>
    %267 = vector.extract_strided_slice %260 {offsets = [16, 0], sizes = [16, 32], strides = [1, 1]} : vector<256x32xf32> to vector<16x32xf32>
    %c1_248 = arith.constant 1 : index
    %c0_249 = arith.constant 0 : index
    %c0_250 = arith.constant 0 : index
    %268 = vector.load %arg8[%c1_248, %c0_249, %c0_250] : memref<16x32x64xf32, #tpu.memory_space<vmem>>, vector<1x32x64xf32>
    %269 = vector.shape_cast %268 : vector<1x32x64xf32> to vector<32x64xf32>
    %cst_251 = arith.constant dense<0.000000e+00> : vector<16x64xf32>
    %270 = tpu.matmul %267, %269, %cst_251 {dimension_numbers = #tpu.dot_dimension_numbers<[1], [0], [0], [1], [0, 0, 1, 1], [], []>} : vector<16x32xf32>, vector<32x64xf32>, vector<16x64xf32> -> vector<16x64xf32>
    %271 = arith.addf %266, %270 : vector<16x64xf32>
    %272 = vector.extract_strided_slice %260 {offsets = [32, 0], sizes = [16, 32], strides = [1, 1]} : vector<256x32xf32> to vector<16x32xf32>
    %c2_252 = arith.constant 2 : index
    %c0_253 = arith.constant 0 : index
    %c0_254 = arith.constant 0 : index
    %273 = vector.load %arg8[%c2_252, %c0_253, %c0_254] : memref<16x32x64xf32, #tpu.memory_space<vmem>>, vector<1x32x64xf32>
    %274 = vector.shape_cast %273 : vector<1x32x64xf32> to vector<32x64xf32>
    %cst_255 = arith.constant dense<0.000000e+00> : vector<16x64xf32>
    %275 = tpu.matmul %272, %274, %cst_255 {dimension_numbers = #tpu.dot_dimension_numbers<[1], [0], [0], [1], [0, 0, 1, 1], [], []>} : vector<16x32xf32>, vector<32x64xf32>, vector<16x64xf32> -> vector<16x64xf32>
    %276 = arith.addf %271, %275 : vector<16x64xf32>
    %277 = vector.extract_strided_slice %260 {offsets = [48, 0], sizes = [16, 32], strides = [1, 1]} : vector<256x32xf32> to vector<16x32xf32>
    %c3_256 = arith.constant 3 : index
    %c0_257 = arith.constant 0 : index
    %c0_258 = arith.constant 0 : index
    %278 = vector.load %arg8[%c3_256, %c0_257, %c0_258] : memref<16x32x64xf32, #tpu.memory_space<vmem>>, vector<1x32x64xf32>
    %279 = vector.shape_cast %278 : vector<1x32x64xf32> to vector<32x64xf32>
    %cst_259 = arith.constant dense<0.000000e+00> : vector<16x64xf32>
    %280 = tpu.matmul %277, %279, %cst_259 {dimension_numbers = #tpu.dot_dimension_numbers<[1], [0], [0], [1], [0, 0, 1, 1], [], []>} : vector<16x32xf32>, vector<32x64xf32>, vector<16x64xf32> -> vector<16x64xf32>
    %281 = arith.addf %276, %280 : vector<16x64xf32>
    %282 = vector.extract_strided_slice %260 {offsets = [64, 0], sizes = [16, 32], strides = [1, 1]} : vector<256x32xf32> to vector<16x32xf32>
    %c4_260 = arith.constant 4 : index
    %c0_261 = arith.constant 0 : index
    %c0_262 = arith.constant 0 : index
    %283 = vector.load %arg8[%c4_260, %c0_261, %c0_262] : memref<16x32x64xf32, #tpu.memory_space<vmem>>, vector<1x32x64xf32>
    %284 = vector.shape_cast %283 : vector<1x32x64xf32> to vector<32x64xf32>
    %cst_263 = arith.constant dense<0.000000e+00> : vector<16x64xf32>
    %285 = tpu.matmul %282, %284, %cst_263 {dimension_numbers = #tpu.dot_dimension_numbers<[1], [0], [0], [1], [0, 0, 1, 1], [], []>} : vector<16x32xf32>, vector<32x64xf32>, vector<16x64xf32> -> vector<16x64xf32>
    %286 = arith.addf %281, %285 : vector<16x64xf32>
    %287 = vector.extract_strided_slice %260 {offsets = [80, 0], sizes = [16, 32], strides = [1, 1]} : vector<256x32xf32> to vector<16x32xf32>
    %c5_264 = arith.constant 5 : index
    %c0_265 = arith.constant 0 : index
    %c0_266 = arith.constant 0 : index
    %288 = vector.load %arg8[%c5_264, %c0_265, %c0_266] : memref<16x32x64xf32, #tpu.memory_space<vmem>>, vector<1x32x64xf32>
    %289 = vector.shape_cast %288 : vector<1x32x64xf32> to vector<32x64xf32>
    %cst_267 = arith.constant dense<0.000000e+00> : vector<16x64xf32>
    %290 = tpu.matmul %287, %289, %cst_267 {dimension_numbers = #tpu.dot_dimension_numbers<[1], [0], [0], [1], [0, 0, 1, 1], [], []>} : vector<16x32xf32>, vector<32x64xf32>, vector<16x64xf32> -> vector<16x64xf32>
    %291 = arith.addf %286, %290 : vector<16x64xf32>
    %292 = vector.extract_strided_slice %260 {offsets = [96, 0], sizes = [16, 32], strides = [1, 1]} : vector<256x32xf32> to vector<16x32xf32>
    %c6_268 = arith.constant 6 : index
    %c0_269 = arith.constant 0 : index
    %c0_270 = arith.constant 0 : index
    %293 = vector.load %arg8[%c6_268, %c0_269, %c0_270] : memref<16x32x64xf32, #tpu.memory_space<vmem>>, vector<1x32x64xf32>
    %294 = vector.shape_cast %293 : vector<1x32x64xf32> to vector<32x64xf32>
    %cst_271 = arith.constant dense<0.000000e+00> : vector<16x64xf32>
    %295 = tpu.matmul %292, %294, %cst_271 {dimension_numbers = #tpu.dot_dimension_numbers<[1], [0], [0], [1], [0, 0, 1, 1], [], []>} : vector<16x32xf32>, vector<32x64xf32>, vector<16x64xf32> -> vector<16x64xf32>
    %296 = arith.addf %291, %295 : vector<16x64xf32>
    %297 = vector.extract_strided_slice %260 {offsets = [112, 0], sizes = [16, 32], strides = [1, 1]} : vector<256x32xf32> to vector<16x32xf32>
    %c7_272 = arith.constant 7 : index
    %c0_273 = arith.constant 0 : index
    %c0_274 = arith.constant 0 : index
    %298 = vector.load %arg8[%c7_272, %c0_273, %c0_274] : memref<16x32x64xf32, #tpu.memory_space<vmem>>, vector<1x32x64xf32>
    %299 = vector.shape_cast %298 : vector<1x32x64xf32> to vector<32x64xf32>
    %cst_275 = arith.constant dense<0.000000e+00> : vector<16x64xf32>
    %300 = tpu.matmul %297, %299, %cst_275 {dimension_numbers = #tpu.dot_dimension_numbers<[1], [0], [0], [1], [0, 0, 1, 1], [], []>} : vector<16x32xf32>, vector<32x64xf32>, vector<16x64xf32> -> vector<16x64xf32>
    %301 = arith.addf %296, %300 : vector<16x64xf32>
    %302 = vector.extract_strided_slice %260 {offsets = [128, 0], sizes = [16, 32], strides = [1, 1]} : vector<256x32xf32> to vector<16x32xf32>
    %c8_276 = arith.constant 8 : index
    %c0_277 = arith.constant 0 : index
    %c0_278 = arith.constant 0 : index
    %303 = vector.load %arg8[%c8_276, %c0_277, %c0_278] : memref<16x32x64xf32, #tpu.memory_space<vmem>>, vector<1x32x64xf32>
    %304 = vector.shape_cast %303 : vector<1x32x64xf32> to vector<32x64xf32>
    %cst_279 = arith.constant dense<0.000000e+00> : vector<16x64xf32>
    %305 = tpu.matmul %302, %304, %cst_279 {dimension_numbers = #tpu.dot_dimension_numbers<[1], [0], [0], [1], [0, 0, 1, 1], [], []>} : vector<16x32xf32>, vector<32x64xf32>, vector<16x64xf32> -> vector<16x64xf32>
    %306 = arith.addf %301, %305 : vector<16x64xf32>
    %307 = vector.extract_strided_slice %260 {offsets = [144, 0], sizes = [16, 32], strides = [1, 1]} : vector<256x32xf32> to vector<16x32xf32>
    %c9_280 = arith.constant 9 : index
    %c0_281 = arith.constant 0 : index
    %c0_282 = arith.constant 0 : index
    %308 = vector.load %arg8[%c9_280, %c0_281, %c0_282] : memref<16x32x64xf32, #tpu.memory_space<vmem>>, vector<1x32x64xf32>
    %309 = vector.shape_cast %308 : vector<1x32x64xf32> to vector<32x64xf32>
    %cst_283 = arith.constant dense<0.000000e+00> : vector<16x64xf32>
    %310 = tpu.matmul %307, %309, %cst_283 {dimension_numbers = #tpu.dot_dimension_numbers<[1], [0], [0], [1], [0, 0, 1, 1], [], []>} : vector<16x32xf32>, vector<32x64xf32>, vector<16x64xf32> -> vector<16x64xf32>
    %311 = arith.addf %306, %310 : vector<16x64xf32>
    %312 = vector.extract_strided_slice %260 {offsets = [160, 0], sizes = [16, 32], strides = [1, 1]} : vector<256x32xf32> to vector<16x32xf32>
    %c10_284 = arith.constant 10 : index
    %c0_285 = arith.constant 0 : index
    %c0_286 = arith.constant 0 : index
    %313 = vector.load %arg8[%c10_284, %c0_285, %c0_286] : memref<16x32x64xf32, #tpu.memory_space<vmem>>, vector<1x32x64xf32>
    %314 = vector.shape_cast %313 : vector<1x32x64xf32> to vector<32x64xf32>
    %cst_287 = arith.constant dense<0.000000e+00> : vector<16x64xf32>
    %315 = tpu.matmul %312, %314, %cst_287 {dimension_numbers = #tpu.dot_dimension_numbers<[1], [0], [0], [1], [0, 0, 1, 1], [], []>} : vector<16x32xf32>, vector<32x64xf32>, vector<16x64xf32> -> vector<16x64xf32>
    %316 = arith.addf %311, %315 : vector<16x64xf32>
    %317 = vector.extract_strided_slice %260 {offsets = [176, 0], sizes = [16, 32], strides = [1, 1]} : vector<256x32xf32> to vector<16x32xf32>
    %c11_288 = arith.constant 11 : index
    %c0_289 = arith.constant 0 : index
    %c0_290 = arith.constant 0 : index
    %318 = vector.load %arg8[%c11_288, %c0_289, %c0_290] : memref<16x32x64xf32, #tpu.memory_space<vmem>>, vector<1x32x64xf32>
    %319 = vector.shape_cast %318 : vector<1x32x64xf32> to vector<32x64xf32>
    %cst_291 = arith.constant dense<0.000000e+00> : vector<16x64xf32>
    %320 = tpu.matmul %317, %319, %cst_291 {dimension_numbers = #tpu.dot_dimension_numbers<[1], [0], [0], [1], [0, 0, 1, 1], [], []>} : vector<16x32xf32>, vector<32x64xf32>, vector<16x64xf32> -> vector<16x64xf32>
    %321 = arith.addf %316, %320 : vector<16x64xf32>
    %322 = vector.extract_strided_slice %260 {offsets = [192, 0], sizes = [16, 32], strides = [1, 1]} : vector<256x32xf32> to vector<16x32xf32>
    %c12_292 = arith.constant 12 : index
    %c0_293 = arith.constant 0 : index
    %c0_294 = arith.constant 0 : index
    %323 = vector.load %arg8[%c12_292, %c0_293, %c0_294] : memref<16x32x64xf32, #tpu.memory_space<vmem>>, vector<1x32x64xf32>
    %324 = vector.shape_cast %323 : vector<1x32x64xf32> to vector<32x64xf32>
    %cst_295 = arith.constant dense<0.000000e+00> : vector<16x64xf32>
    %325 = tpu.matmul %322, %324, %cst_295 {dimension_numbers = #tpu.dot_dimension_numbers<[1], [0], [0], [1], [0, 0, 1, 1], [], []>} : vector<16x32xf32>, vector<32x64xf32>, vector<16x64xf32> -> vector<16x64xf32>
    %326 = arith.addf %321, %325 : vector<16x64xf32>
    %327 = vector.extract_strided_slice %260 {offsets = [208, 0], sizes = [16, 32], strides = [1, 1]} : vector<256x32xf32> to vector<16x32xf32>
    %c13_296 = arith.constant 13 : index
    %c0_297 = arith.constant 0 : index
    %c0_298 = arith.constant 0 : index
    %328 = vector.load %arg8[%c13_296, %c0_297, %c0_298] : memref<16x32x64xf32, #tpu.memory_space<vmem>>, vector<1x32x64xf32>
    %329 = vector.shape_cast %328 : vector<1x32x64xf32> to vector<32x64xf32>
    %cst_299 = arith.constant dense<0.000000e+00> : vector<16x64xf32>
    %330 = tpu.matmul %327, %329, %cst_299 {dimension_numbers = #tpu.dot_dimension_numbers<[1], [0], [0], [1], [0, 0, 1, 1], [], []>} : vector<16x32xf32>, vector<32x64xf32>, vector<16x64xf32> -> vector<16x64xf32>
    %331 = arith.addf %326, %330 : vector<16x64xf32>
    %332 = vector.extract_strided_slice %260 {offsets = [224, 0], sizes = [16, 32], strides = [1, 1]} : vector<256x32xf32> to vector<16x32xf32>
    %c14_300 = arith.constant 14 : index
    %c0_301 = arith.constant 0 : index
    %c0_302 = arith.constant 0 : index
    %333 = vector.load %arg8[%c14_300, %c0_301, %c0_302] : memref<16x32x64xf32, #tpu.memory_space<vmem>>, vector<1x32x64xf32>
    %334 = vector.shape_cast %333 : vector<1x32x64xf32> to vector<32x64xf32>
    %cst_303 = arith.constant dense<0.000000e+00> : vector<16x64xf32>
    %335 = tpu.matmul %332, %334, %cst_303 {dimension_numbers = #tpu.dot_dimension_numbers<[1], [0], [0], [1], [0, 0, 1, 1], [], []>} : vector<16x32xf32>, vector<32x64xf32>, vector<16x64xf32> -> vector<16x64xf32>
    %336 = arith.addf %331, %335 : vector<16x64xf32>
    %337 = vector.extract_strided_slice %260 {offsets = [240, 0], sizes = [16, 32], strides = [1, 1]} : vector<256x32xf32> to vector<16x32xf32>
    %c15_304 = arith.constant 15 : index
    %c0_305 = arith.constant 0 : index
    %c0_306 = arith.constant 0 : index
    %338 = vector.load %arg8[%c15_304, %c0_305, %c0_306] : memref<16x32x64xf32, #tpu.memory_space<vmem>>, vector<1x32x64xf32>
    %339 = vector.shape_cast %338 : vector<1x32x64xf32> to vector<32x64xf32>
    %cst_307 = arith.constant dense<0.000000e+00> : vector<16x64xf32>
    %340 = tpu.matmul %337, %339, %cst_307 {dimension_numbers = #tpu.dot_dimension_numbers<[1], [0], [0], [1], [0, 0, 1, 1], [], []>} : vector<16x32xf32>, vector<32x64xf32>, vector<16x64xf32> -> vector<16x64xf32>
    %341 = arith.addf %336, %340 : vector<16x64xf32>
    %cst_308 = arith.constant 0.000000e+00 : f32
    %342 = vector.broadcast %cst_308 : f32 to vector<1x64xf32>
    %cst_309 = arith.constant 0.000000e+00 : f32
    %343 = vector.broadcast %cst_309 : f32 to vector<1x64xf32>
    %cst_310 = arith.constant dense<0.000000e+00> : vector<64xf32>
    %344 = vector.multi_reduction <add>, %258, %cst_310 [0] : vector<16x64xf32> to vector<64xf32>
    %345 = vector.shape_cast %344 : vector<64xf32> to vector<1x64xf32>
    %346 = arith.addf %342, %345 : vector<1x64xf32>
    %347 = arith.mulf %258, %258 : vector<16x64xf32>
    %cst_311 = arith.constant dense<0.000000e+00> : vector<64xf32>
    %348 = vector.multi_reduction <add>, %347, %cst_311 [0] : vector<16x64xf32> to vector<64xf32>
    %349 = vector.shape_cast %348 : vector<64xf32> to vector<1x64xf32>
    %350 = arith.addf %343, %349 : vector<1x64xf32>
    %cst_312 = arith.constant dense<0.000000e+00> : vector<64xf32>
    %351 = vector.multi_reduction <add>, %341, %cst_312 [0] : vector<16x64xf32> to vector<64xf32>
    %352 = vector.shape_cast %351 : vector<64xf32> to vector<1x64xf32>
    %353 = arith.addf %346, %352 : vector<1x64xf32>
    %354 = arith.mulf %341, %341 : vector<16x64xf32>
    %cst_313 = arith.constant dense<0.000000e+00> : vector<64xf32>
    %355 = vector.multi_reduction <add>, %354, %cst_313 [0] : vector<16x64xf32> to vector<64xf32>
    %356 = vector.shape_cast %355 : vector<64xf32> to vector<1x64xf32>
    %357 = arith.addf %350, %356 : vector<1x64xf32>
    %cst_314 = arith.constant 3.200000e+01 : f32
    %358 = vector.broadcast %cst_314 : f32 to vector<1x64xf32>
    %359 = arith.divf %353, %358 : vector<1x64xf32>
    %cst_315 = arith.constant 3.200000e+01 : f32
    %360 = vector.broadcast %cst_315 : f32 to vector<1x64xf32>
    %361 = arith.divf %357, %360 : vector<1x64xf32>
    %362 = arith.mulf %359, %359 : vector<1x64xf32>
    %363 = arith.subf %361, %362 : vector<1x64xf32>
    %cst_316 = arith.constant 9.99999974E-6 : f32
    %364 = vector.broadcast %cst_316 : f32 to vector<1x64xf32>
    %365 = arith.addf %363, %364 : vector<1x64xf32>
    %366 = math.rsqrt %365 : vector<1x64xf32>
    %c0_317 = arith.constant 0 : index
    %c0_318 = arith.constant 0 : index
    %367 = vector.load %arg9[%c0_317, %c0_318] : memref<1x64xf32, #tpu.memory_space<vmem>>, vector<1x64xf32>
    %368 = arith.mulf %366, %367 : vector<1x64xf32>
    %369 = vector.broadcast %359 : vector<1x64xf32> to vector<16x64xf32>
    %370 = arith.subf %258, %369 : vector<16x64xf32>
    %371 = vector.broadcast %368 : vector<1x64xf32> to vector<16x64xf32>
    %372 = arith.mulf %370, %371 : vector<16x64xf32>
    %c0_319 = arith.constant 0 : index
    %c0_320 = arith.constant 0 : index
    %373 = vector.load %arg10[%c0_319, %c0_320] : memref<1x64xf32, #tpu.memory_space<vmem>>, vector<1x64xf32>
    %374 = vector.broadcast %373 : vector<1x64xf32> to vector<16x64xf32>
    %375 = arith.addf %372, %374 : vector<16x64xf32>
    %cst_321 = arith.constant 0.000000e+00 : f32
    %376 = vector.broadcast %cst_321 : f32 to vector<16x64xf32>
    %377 = arith.cmpf ogt, %375, %376 : vector<16x64xf32>
    %cst_322 = arith.constant 2.000000e-01 : f32
    %378 = vector.broadcast %cst_322 : f32 to vector<16x64xf32>
    %379 = arith.mulf %378, %375 : vector<16x64xf32>
    %380 = arith.select %377, %375, %379 : vector<16x64xi1>, vector<16x64xf32>
    %c0_323 = arith.constant 0 : index
    %c0_324 = arith.constant 0 : index
    %381 = vector.load %arg11[%c0_323, %c0_324] : memref<16x64xf32, #tpu.memory_space<vmem>>, vector<16x64xf32>
    %382 = arith.mulf %380, %381 : vector<16x64xf32>
    %cst_325 = arith.constant dense<0.000000e+00> : vector<16xf32>
    %383 = vector.multi_reduction <add>, %382, %cst_325 [1] : vector<16x64xf32> to vector<16xf32>
    %384 = vector.shape_cast %383 : vector<16xf32> to vector<16x1xf32>
    %cst_326 = arith.constant dense<0.000000e+00> : vector<1xf32>
    %385 = vector.multi_reduction <add>, %384, %cst_326 [0] : vector<16x1xf32> to vector<1xf32>
    %386 = vector.shape_cast %385 : vector<1xf32> to vector<1x1xf32>
    %c0_327 = arith.constant 0 : index
    %c0_328 = arith.constant 0 : index
    %387 = vector.load %arg12[%c0_327, %c0_328] : memref<1x1xf32, #tpu.memory_space<vmem>>, vector<1x1xf32>
    %388 = arith.addf %386, %387 : vector<1x1xf32>
    %c0_329 = arith.constant 0 : index
    %c0_330 = arith.constant 0 : index
    %389 = vector.load %arg13[%c0_329, %c0_330] : memref<2x1xf32, #tpu.memory_space<vmem>>, vector<1x1xf32>
    tpu.vector_store %arg13[%c0_329, %c0_330], %388 {strides = array<i32>} : memref<2x1xf32, #tpu.memory_space<vmem>>, vector<1x1xf32>,
    %390 = vector.broadcast %359 : vector<1x64xf32> to vector<16x64xf32>
    %391 = arith.subf %341, %390 : vector<16x64xf32>
    %392 = vector.broadcast %368 : vector<1x64xf32> to vector<16x64xf32>
    %393 = arith.mulf %391, %392 : vector<16x64xf32>
    %c0_331 = arith.constant 0 : index
    %c0_332 = arith.constant 0 : index
    %394 = vector.load %arg10[%c0_331, %c0_332] : memref<1x64xf32, #tpu.memory_space<vmem>>, vector<1x64xf32>
    %395 = vector.broadcast %394 : vector<1x64xf32> to vector<16x64xf32>
    %396 = arith.addf %393, %395 : vector<16x64xf32>
    %cst_333 = arith.constant 0.000000e+00 : f32
    %397 = vector.broadcast %cst_333 : f32 to vector<16x64xf32>
    %398 = arith.cmpf ogt, %396, %397 : vector<16x64xf32>
    %cst_334 = arith.constant 2.000000e-01 : f32
    %399 = vector.broadcast %cst_334 : f32 to vector<16x64xf32>
    %400 = arith.mulf %399, %396 : vector<16x64xf32>
    %401 = arith.select %398, %396, %400 : vector<16x64xi1>, vector<16x64xf32>
    %c0_335 = arith.constant 0 : index
    %c0_336 = arith.constant 0 : index
    %402 = vector.load %arg11[%c0_335, %c0_336] : memref<16x64xf32, #tpu.memory_space<vmem>>, vector<16x64xf32>
    %403 = arith.mulf %401, %402 : vector<16x64xf32>
    %cst_337 = arith.constant dense<0.000000e+00> : vector<16xf32>
    %404 = vector.multi_reduction <add>, %403, %cst_337 [1] : vector<16x64xf32> to vector<16xf32>
    %405 = vector.shape_cast %404 : vector<16xf32> to vector<16x1xf32>
    %cst_338 = arith.constant dense<0.000000e+00> : vector<1xf32>
    %406 = vector.multi_reduction <add>, %405, %cst_338 [0] : vector<16x1xf32> to vector<1xf32>
    %407 = vector.shape_cast %406 : vector<1xf32> to vector<1x1xf32>
    %c0_339 = arith.constant 0 : index
    %c0_340 = arith.constant 0 : index
    %408 = vector.load %arg12[%c0_339, %c0_340] : memref<1x1xf32, #tpu.memory_space<vmem>>, vector<1x1xf32>
    %409 = arith.addf %407, %408 : vector<1x1xf32>
    %c1_341 = arith.constant 1 : index
    %c0_342 = arith.constant 0 : index
    %410 = vector.load %arg13[%c1_341, %c0_342] : memref<2x1xf32, #tpu.memory_space<vmem>>, vector<1x1xf32>
    tpu.vector_store %arg13[%c1_341, %c0_342], %409 {strides = array<i32>} : memref<2x1xf32, #tpu.memory_space<vmem>>, vector<1x1xf32>,
    return
  }
  func.func @transform_0(%arg0: i32) -> (i32, i32) {
    %c0_i32 = arith.constant 0 : i32
    %c0_i32_0 = arith.constant 0 : i32
    %c0_i32_1 = arith.constant 0 : i32
    return %c0_i32, %c0_i32_0 : i32, i32
  }
  func.func @transform_1(%arg0: i32) -> (i32, i32) {
    %c0_i32 = arith.constant 0 : i32
    %c0_i32_0 = arith.constant 0 : i32
    %c0_i32_1 = arith.constant 0 : i32
    return %c0_i32, %c0_i32_0 : i32, i32
  }
  func.func @transform_2(%arg0: i32) -> (i32, i32) {
    %c0_i32 = arith.constant 0 : i32
    %c0_i32_0 = arith.constant 0 : i32
    %c0_i32_1 = arith.constant 0 : i32
    return %c0_i32, %c0_i32_0 : i32, i32
  }
  func.func @transform_3(%arg0: i32) -> (i32, i32, i32) {
    %c0_i32 = arith.constant 0 : i32
    %c0_i32_0 = arith.constant 0 : i32
    %c0_i32_1 = arith.constant 0 : i32
    %c0_i32_2 = arith.constant 0 : i32
    return %c0_i32, %c0_i32_0, %c0_i32_1 : i32, i32, i32
  }
  func.func @transform_4(%arg0: i32) -> (i32, i32) {
    %c0_i32 = arith.constant 0 : i32
    %c0_i32_0 = arith.constant 0 : i32
    %c0_i32_1 = arith.constant 0 : i32
    return %c0_i32, %c0_i32_0 : i32, i32
  }
  func.func @transform_5(%arg0: i32) -> (i32, i32) {
    %c0_i32 = arith.constant 0 : i32
    %c0_i32_0 = arith.constant 0 : i32
    %c0_i32_1 = arith.constant 0 : i32
    return %c0_i32, %c0_i32_0 : i32, i32
  }
  func.func @transform_6(%arg0: i32) -> (i32, i32) {
    %c0_i32 = arith.constant 0 : i32
    %c0_i32_0 = arith.constant 0 : i32
    %c0_i32_1 = arith.constant 0 : i32
    return %c0_i32, %c0_i32_0 : i32, i32
  }
  func.func @transform_7(%arg0: i32) -> (i32, i32, i32) {
    %c0_i32 = arith.constant 0 : i32
    %c0_i32_0 = arith.constant 0 : i32
    %c0_i32_1 = arith.constant 0 : i32
    %c0_i32_2 = arith.constant 0 : i32
    return %c0_i32, %c0_i32_0, %c0_i32_1 : i32, i32, i32
  }
  func.func @transform_8(%arg0: i32) -> (i32, i32) {
    %c0_i32 = arith.constant 0 : i32
    %c0_i32_0 = arith.constant 0 : i32
    %c0_i32_1 = arith.constant 0 : i32
    return %c0_i32, %c0_i32_0 : i32, i32
  }
  func.func @transform_9(%arg0: i32) -> (i32, i32) {
    %c0_i32 = arith.constant 0 : i32
    %c0_i32_0 = arith.constant 0 : i32
    %c0_i32_1 = arith.constant 0 : i32
    return %c0_i32, %c0_i32_0 : i32, i32
  }
  func.func @transform_10(%arg0: i32) -> (i32, i32) {
    %c0_i32 = arith.constant 0 : i32
    %c0_i32_0 = arith.constant 0 : i32
    %c0_i32_1 = arith.constant 0 : i32
    return %c0_i32, %c0_i32_0 : i32, i32
  }
  func.func @transform_11(%arg0: i32) -> (i32, i32) {
    %c0_i32 = arith.constant 0 : i32
    %c0_i32_0 = arith.constant 0 : i32
    %c0_i32_1 = arith.constant 0 : i32
    return %c0_i32, %c0_i32_0 : i32, i32
  }
  func.func @transform_12(%arg0: i32) -> (i32, i32) {
    %c0_i32 = arith.constant 0 : i32
    %c0_i32_0 = arith.constant 0 : i32
    %c0_i32_1 = arith.constant 0 : i32
    return %c0_i32, %c0_i32_0 : i32, i32
  }
}

</mosaic_0001>

<bundles_post_ra>
// kernel: egan_discriminator_32.1
= control target key start
LH: loop header
LB: loop body
LE: loop exit
PB: predicated region body
PF: predicated region fallthrough
CT: control target
= control target key end

     0   :  { %vm120_vm0 = vcmask 392192   ;;  %vm890_vm1 = vcmask 130048   ;;  %vm892_vm2 = vcmask 122880   ;;  %v11269_v56 = vmov 0.0   ;;  %s13798_s1 = inlined_call_operand.vmem [shape: f32[48,16], index: 1, kind: input, shape index: {}]   ;;  %s13799_s0 = inlined_call_operand.vmem [shape: f32[512,48], index: 0, kind: input, shape index: {}]   ;;  %s13800_s3 = inlined_call_operand.vmem [shape: f32[16,16,32], index: 3, kind: input, shape index: {}]   ;;  %s13801_s2 = inlined_call_operand.vmem [shape: f32[1,16], index: 2, kind: input, shape index: {}]   ;;  %s13802_s6 = inlined_call_operand.vmem [shape: f32[256,64], index: 6, kind: input, shape index: {}]   ;;  %s13803_s7 = inlined_call_operand.vmem [shape: f32[16,32,64], index: 7, kind: input, shape index: {}]   ;;  %s13804_s4 = inlined_call_operand.vmem [shape: f32[1,32], index: 4, kind: input, shape index: {}]   ;;  %s13805_s5 = inlined_call_operand.vmem [shape: f32[1,32], index: 5, kind: input, shape index: {}]   ;;  %s13806_s8 = inlined_call_operand.vmem [shape: f32[1,64], index: 8, kind: input, shape index: {}]   ;;  %s13807_s9 = inlined_call_operand.vmem [shape: f32[1,64], index: 9, kind: input, shape index: {}]   ;;  %s13808_s10 = inlined_call_operand.vmem [shape: f32[16,64], index: 10, kind: input, shape index: {}]   ;;  %s13809_s11 = inlined_call_operand.<no memory space> [shape: f32[1,1], index: 11, kind: input, shape index: {}]   ;;  %s13810_s12 = inlined_call_operand.vmem [shape: f32[2,1], index: 12, kind: output, shape index: {}]  }
   0x1   :  { %v107_v0 = vld [vmem:[%s13798_s1] sm:$0xff]  ;;  %v108_v1 = vld [vmem:[%s13798_s1 + $0x8] sm:$0xff]  ;;  %v109_v2 = vld [vmem:[%s13798_s1 + $0x10] sm:$0xff]  ;;  %896 = vst.msk [vmem:[#allocation2 + $0x20] sm:$0xff] %vm890_vm1, %v11269_v56 }
   0x2   :  { %v10599_v3 = vpack.c.bf16 %v108_v1, %v107_v0  ;;  %v110_v4 = vld [vmem:[%s13798_s1 + $0x18] sm:$0xff]  ;;  %v111_v6 = vld [vmem:[%s13798_s1 + $0x20] sm:$0xff]  ;;  %v112_v7 = vld [vmem:[%s13798_s1 + $0x28] sm:$0xff]  ;;  %897 = vst.msk [vmem:[#allocation2 + $0x28] sm:$0x1] %vm892_vm2, %v11269_v56 }
   0x3   :  { %v10603_v5 = vpack.c.bf16 %v110_v4, %v109_v2  ;;  %v43_v8 = vld [vmem:[%s13799_s0] sm:$0xff]  ;;  %v10607_v9 = vpack.c.bf16 %v112_v7, %v111_v6  ;;  %v44_v10 = vld [vmem:[%s13799_s0 + $0x8] sm:$0xff]  ;;  %v45_v11 = vld [vmem:[%s13799_s0 + $0x10] sm:$0xff]  ;;  %891 = vst.msk [vmem:[#allocation2] sm:$0xff] %vm890_vm1, %v11269_v56 }
   0x4   :  { %10600 = vmatprep.subr.bf16.mxu0 %v10599_v3  ;;  %9575 = vmatprep.mubr.msk.f32.mxu0 %vm120_vm0, %v43_v8  ;;  %v46_v12 = vld [vmem:[%s13799_s0 + $0x18] sm:$0xff]  ;;  %v47_v13 = vld [vmem:[%s13799_s0 + $0x20] sm:$0xff]  ;;  %v48_v14 = vld [vmem:[%s13799_s0 + $0x28] sm:$0xff]  ;;  %893 = vst.msk [vmem:[#allocation2 + $0x8] sm:$0x1] %vm892_vm2, %v11269_v56 }
   0x5   :  { %10602 = vmatpush3.bf16.msra.mxu0 %v10599_v3  ;;  %v49_v15 = vld [vmem:[%s13799_s0 + $0x30] sm:$0xff]  ;;  %v50_v16 = vld [vmem:[%s13799_s0 + $0x38] sm:$0xff]  ;;  %v51_v17 = vld [vmem:[%s13799_s0 + $0x40] sm:$0xff]  ;;  %894 = vst.msk [vmem:[#allocation2 + $0x10] sm:$0xff] %vm890_vm1, %v11269_v56 }
   0x6   :  { %10604 = vmatprep.subr.bf16.mxu0 %v10603_v5  ;;  %v52_v18 = vld [vmem:[%s13799_s0 + $0x48] sm:$0xff]  ;;  %v53_v19 = vld [vmem:[%s13799_s0 + $0x50] sm:$0xff]  ;;  %v54_v20 = vld [vmem:[%s13799_s0 + $0x58] sm:$0xff]  ;;  %895 = vst.msk [vmem:[#allocation2 + $0x18] sm:$0x1] %vm892_vm2, %v11269_v56 }
   0x7   :  { %v55_v21 = vld [vmem:[%s13799_s0 + $0x60] sm:$0xff]  ;;  %v56_v22 = vld [vmem:[%s13799_s0 + $0x68] sm:$0xff]  ;;  %v57_v23 = vld [vmem:[%s13799_s0 + $0x70] sm:$0xff]  ;;  %898 = vst.msk [vmem:[#allocation2 + $0x30] sm:$0xff] %vm890_vm1, %v11269_v56 }
   0x8   :  { %v58_v24 = vld [vmem:[%s13799_s0 + $0x78] sm:$0xff]  ;;  %v59_v25 = vld [vmem:[%s13799_s0 + $0x80] sm:$0xff]  ;;  %v60_v26 = vld [vmem:[%s13799_s0 + $0x88] sm:$0xff]  ;;  %899 = vst.msk [vmem:[#allocation2 + $0x38] sm:$0x1] %vm892_vm2, %v11269_v56 }
   0x9   :  { %10606 = vmatpush3.bf16.msra.mxu0 %v10603_v5  ;;  %v61_v27 = vld [vmem:[%s13799_s0 + $0x90] sm:$0xff]  ;;  %v62_v28 = vld [vmem:[%s13799_s0 + $0x98] sm:$0xff]  ;;  %v63_v29 = vld [vmem:[%s13799_s0 + $0xa0] sm:$0xff]  ;;  %900 = vst.msk [vmem:[#allocation2 + $0x40] sm:$0xff] %vm890_vm1, %v11269_v56 }
   0xa   :  { %10608 = vmatprep.subr.bf16.mxu0 %v10607_v9  ;;  %v64_v30 = vld [vmem:[%s13799_s0 + $0xa8] sm:$0xff]  ;;  %v65_v31 = vld [vmem:[%s13799_s0 + $0xb0] sm:$0xff]  ;;  %v66_v32 = vld [vmem:[%s13799_s0 + $0xb8] sm:$0xff]  ;;  %901 = vst.msk [vmem:[#allocation2 + $0x48] sm:$0x1] %vm892_vm2, %v11269_v56 }
   0xb   :  { %v67_v33 = vld [vmem:[%s13799_s0 + $0xc0] sm:$0xff]  ;;  %v68_v34 = vld [vmem:[%s13799_s0 + $0xc8] sm:$0xff]  ;;  %v69_v35 = vld [vmem:[%s13799_s0 + $0xd0] sm:$0xff]  ;;  %902 = vst.msk [vmem:[#allocation2 + $0x50] sm:$0xff] %vm890_vm1, %v11269_v56 }
   0xc   :  { %v70_v36 = vld [vmem:[%s13799_s0 + $0xd8] sm:$0xff]  ;;  %v71_v37 = vld [vmem:[%s13799_s0 + $0xe0] sm:$0xff]  ;;  %v72_v38 = vld [vmem:[%s13799_s0 + $0xe8] sm:$0xff]  ;;  %903 = vst.msk [vmem:[#allocation2 + $0x58] sm:$0x1] %vm892_vm2, %v11269_v56 }
   0xd   :  { %10610 = vmatpush3.bf16.msra.mxu0 %v10607_v9  ;;  %v73_v39 = vld [vmem:[%s13799_s0 + $0xf0] sm:$0xff]  ;;  %v74_v40 = vld [vmem:[%s13799_s0 + $0xf8] sm:$0xff]  ;;  %v75_v41 = vld [vmem:[%s13799_s0 + $0x100] sm:$0xff]  ;;  %904 = vst.msk [vmem:[#allocation2 + $0x60] sm:$0xff] %vm890_vm1, %v11269_v56 }
   0xe   :  { %v76_v42 = vld [vmem:[%s13799_s0 + $0x108] sm:$0xff]  ;;  %v77_v43 = vld [vmem:[%s13799_s0 + $0x110] sm:$0xff]  ;;  %v78_v44 = vld [vmem:[%s13799_s0 + $0x118] sm:$0xff]  ;;  %905 = vst.msk [vmem:[#allocation2 + $0x68] sm:$0x1] %vm892_vm2, %v11269_v56 }
   0xf   :  { %v79_v45 = vld [vmem:[%s13799_s0 + $0x120] sm:$0xff]  ;;  %v80_v46 = vld [vmem:[%s13799_s0 + $0x128] sm:$0xff]  ;;  %v81_v47 = vld [vmem:[%s13799_s0 + $0x130] sm:$0xff]  ;;  %906 = vst.msk [vmem:[#allocation2 + $0x70] sm:$0xff] %vm890_vm1, %v11269_v56 }
  0x10   :  { %9576 = vmatmul.mubr.msk.f32.vlgmr.msra.gmra.mrb[0].mxu0 %vm120_vm0, %v44_v10  ;;  %v82_v48 = vld [vmem:[%s13799_s0 + $0x138] sm:$0xff]  ;;  %v83_v49 = vld [vmem:[%s13799_s0 + $0x140] sm:$0xff]  ;;  %v84_v50 = vld [vmem:[%s13799_s0 + $0x148] sm:$0xff]  ;;  %907 = vst.msk [vmem:[#allocation2 + $0x78] sm:$0x1] %vm892_vm2, %v11269_v56 }
  0x11   :  { %9578 = vmatprep.mubr.msk.f32.mxu0 %vm120_vm0, %v45_v11  ;;  %v85_v51 = vld [vmem:[%s13799_s0 + $0x150] sm:$0xff]  ;;  %v86_v52 = vld [vmem:[%s13799_s0 + $0x158] sm:$0xff]  ;;  %v87_v53 = vld [vmem:[%s13799_s0 + $0x160] sm:$0xff]  ;;  %908 = vst.msk [vmem:[#allocation2 + $0x80] sm:$0xff] %vm890_vm1, %v11269_v56 }
  0x12   :  { %v88_v54 = vld [vmem:[%s13799_s0 + $0x168] sm:$0xff]  ;;  %v11539_v55 = vld [vmem:[%s13799_s0 + $0x170] sm:$0xff]  ;;  %909 = vst.msk [vmem:[#allocation2 + $0x88] sm:$0x1] %vm892_vm2, %v11269_v56  ;;  %911 = vst.msk [vmem:[#allocation2 + $0x98] sm:$0x1] %vm892_vm2, %v11269_v56 }
  0x13   :  { %910 = vst.msk [vmem:[#allocation2 + $0x90] sm:$0xff] %vm890_vm1, %v11269_v56  ;;  %912 = vst.msk [vmem:[#allocation2 + $0xa0] sm:$0xff] %vm890_vm1, %v11269_v56  ;;  %v90_v57 = vld [vmem:[%s13799_s0 + $0x178] sm:$0xff]  ;;  %v91_v58 = vld [vmem:[%s13799_s0 + $0x180] sm:$0xff] }
  0x14   :  { %9579 = vmatmul.mubr.msk.f32.gmra.mrb[2].mxu0 %vm120_vm0, %v46_v12  ;;  %913 = vst.msk [vmem:[#allocation2 + $0xa8] sm:$0x1] %vm892_vm2, %v11269_v56  ;;  %915 = vst.msk [vmem:[#allocation2 + $0xb8] sm:$0x1] %vm892_vm2, %v11269_v56  ;;  %v92_v59 = vld [vmem:[%s13799_s0 + $0x188] sm:$0xff]  ;;  %v93_v60 = vld [vmem:[%s13799_s0 + $0x190] sm:$0xff] }
  0x15   :  { %9581 = vmatprep.mubr.msk.f32.mxu0 %vm120_vm0, %v47_v13  ;;  %914 = vst.msk [vmem:[#allocation2 + $0xb0] sm:$0xff] %vm890_vm1, %v11269_v56  ;;  %916 = vst.msk [vmem:[#allocation2 + $0xc0] sm:$0xff] %vm890_vm1, %v11269_v56  ;;  %v94_v61 = vld [vmem:[%s13799_s0 + $0x198] sm:$0xff]  ;;  %v95_v62 = vld [vmem:[%s13799_s0 + $0x1a0] sm:$0xff] }
  0x16   :  { %917 = vst.msk [vmem:[#allocation2 + $0xc8] sm:$0x1] %vm892_vm2, %v11269_v56  ;;  %919 = vst.msk [vmem:[#allocation2 + $0xd8] sm:$0x1] %vm892_vm2, %v11269_v56  ;;  %v96_v63 = vld [vmem:[%s13799_s0 + $0x1a8] sm:$0xff]  ;;  %v97_v0 = vld [vmem:[%s13799_s0 + $0x1b0] sm:$0xff] }
  0x17   :  { %918 = vst.msk [vmem:[#allocation2 + $0xd0] sm:$0xff] %vm890_vm1, %v11269_v56  ;;  %920 = vst.msk [vmem:[#allocation2 + $0xe0] sm:$0xff] %vm890_vm1, %v11269_v56  ;;  %v98_v1 = vld [vmem:[%s13799_s0 + $0x1b8] sm:$0xff]  ;;  %v99_v2 = vld [vmem:[%s13799_s0 + $0x1c0] sm:$0xff] }
  0x18   :  { %9582 = vmatmul.mubr.msk.f32.gmra.mrb[4].mxu0 %vm120_vm0, %v48_v14  ;;  %921 = vst.msk [vmem:[#allocation2 + $0xe8] sm:$0x1] %vm892_vm2, %v11269_v56  ;;  %923 = vst.msk [vmem:[#allocation2 + $0xf8] sm:$0x1] %vm892_vm2, %v11269_v56  ;;  %v100_v3 = vld [vmem:[%s13799_s0 + $0x1c8] sm:$0xff]  ;;  %v101_v4 = vld [vmem:[%s13799_s0 + $0x1d0] sm:$0xff] }
  0x19   :  { %9584 = vmatprep.mubr.msk.f32.mxu0 %vm120_vm0, %v49_v15  ;;  %922 = vst.msk [vmem:[#allocation2 + $0xf0] sm:$0xff] %vm890_vm1, %v11269_v56  ;;  %924 = vst.msk [vmem:[#allocation2 + $0x100] sm:$0xff] %vm890_vm1, %v11269_v56  ;;  %v102_v5 = vld [vmem:[%s13799_s0 + $0x1d8] sm:$0xff]  ;;  %v103_v6 = vld [vmem:[%s13799_s0 + $0x1e0] sm:$0xff] }
  0x1a   :  { %925 = vst.msk [vmem:[#allocation2 + $0x108] sm:$0x1] %vm892_vm2, %v11269_v56  ;;  %927 = vst.msk [vmem:[#allocation2 + $0x118] sm:$0x1] %vm892_vm2, %v11269_v56  ;;  %v104_v7 = vld [vmem:[%s13799_s0 + $0x1e8] sm:$0xff]  ;;  %v105_v8 = vld [vmem:[%s13799_s0 + $0x1f0] sm:$0xff] }
  0x1b   :  { %926 = vst.msk [vmem:[#allocation2 + $0x110] sm:$0xff] %vm890_vm1, %v11269_v56  ;;  %928 = vst.msk [vmem:[#allocation2 + $0x120] sm:$0xff] %vm890_vm1, %v11269_v56  ;;  %v106_v9 = vld [vmem:[%s13799_s0 + $0x1f8] sm:$0xff]  ;;  %v8455_v10 = vld [vmem:[%s13800_s3 + $0x10] sm:$0xff] }
  0x1c   :  { %9585 = vmatmul.mubr.msk.f32.gmra.mrb[6].mxu0 %vm120_vm0, %v50_v16  ;;  %929 = vst.msk [vmem:[#allocation2 + $0x128] sm:$0x1] %vm892_vm2, %v11269_v56  ;;  %931 = vst.msk [vmem:[#allocation2 + $0x138] sm:$0x1] %vm892_vm2, %v11269_v56  ;;  %v8456_v11 = vld [vmem:[%s13800_s3 + $0x18] sm:$0xff]  ;;  %v1120_v14 = vld [vmem:[%s13800_s3] sm:$0xff] }
  0x1d   :  { %9587 = vmatprep.mubr.msk.f32.mxu0 %vm120_vm0, %v51_v17  ;;  %930 = vst.msk [vmem:[#allocation2 + $0x130] sm:$0xff] %vm890_vm1, %v11269_v56  ;;  %932 = vst.msk [vmem:[#allocation2 + $0x140] sm:$0xff] %vm890_vm1, %v11269_v56  ;;  %v10611_v12 = vpack.c.bf16 %v8456_v11, %v8455_v10  ;;  %v1121_v15 = vld [vmem:[%s13800_s3 + $0x8] sm:$0xff]  ;;  %v11919_v17 = vld [vmem:[%s13801_s2] ss:$0 sm:$0xff] }
  0x1e   :  { %933 = vst.msk [vmem:[#allocation2 + $0x148] sm:$0x1] %vm892_vm2, %v11269_v56  ;;  %935 = vst.msk [vmem:[#allocation2 + $0x158] sm:$0x1] %vm892_vm2, %v11269_v56  ;;  %v11913_v16 = vpack.c.bf16 %v1121_v15, %v1120_v14 }
  0x1f   :  { %934 = vst.msk [vmem:[#allocation2 + $0x150] sm:$0xff] %vm890_vm1, %v11269_v56  ;;  %936 = vst.msk [vmem:[#allocation2 + $0x160] sm:$0xff] %vm890_vm1, %v11269_v56  ;;  %10612 = vmatprep.subr.bf16.mxu1 %v10611_v12 }
  0x20   :  { %9588 = vmatmul.mubr.msk.f32.gmra.mrb[8].mxu0 %vm120_vm0, %v52_v18  ;;  %937 = vst.msk [vmem:[#allocation2 + $0x168] sm:$0x1] %vm892_vm2, %v11269_v56  ;;  %939 = vst.msk [vmem:[#allocation2 + $0x178] sm:$0x1] %vm892_vm2, %v11269_v56  ;;  %10614 = vmatpush3.bf16.msra.mxu1 %v10611_v12 }
  0x21   :  { %9590 = vmatprep.mubr.msk.f32.mxu0 %vm120_vm0, %v53_v19  ;;  %938 = vst.msk [vmem:[#allocation2 + $0x170] sm:$0xff] %vm890_vm1, %v11269_v56  ;;  %940 = vst.msk [vmem:[#allocation2 + $0x180] sm:$0xff] %vm890_vm1, %v11269_v56  ;;  %10616 = vmatprep.subr.bf16.mxu1 %v11913_v16 }
  0x22   :  { %941 = vst.msk [vmem:[#allocation2 + $0x188] sm:$0x1] %vm892_vm2, %v11269_v56  ;;  %943 = vst.msk [vmem:[#allocation2 + $0x198] sm:$0x1] %vm892_vm2, %v11269_v56  ;;  %v1123_v13 = vld [vmem:[#allocation2 + $0x120] sm:$0xff] }
  0x23   :  { %942 = vst.msk [vmem:[#allocation2 + $0x190] sm:$0xff] %vm890_vm1, %v11269_v56  ;;  %944 = vst.msk [vmem:[#allocation2 + $0x1a0] sm:$0xff] %vm890_vm1, %v11269_v56  ;;  %9675 = vmatprep.mubr.msk.f32.mxu1 %vm890_vm1, %v1123_v13 }
  0x24   :  { %9591 = vmatmul.mubr.msk.f32.gmra.mrb[10].mxu0 %vm120_vm0, %v54_v20  ;;  %945 = vst.msk [vmem:[#allocation2 + $0x1a8] sm:$0x1] %vm892_vm2, %v11269_v56  ;;  %947 = vst.msk [vmem:[#allocation2 + $0x1b8] sm:$0x1] %vm892_vm2, %v11269_v56 }
  0x25   :  { %9593 = vmatprep.mubr.msk.f32.mxu0 %vm120_vm0, %v55_v21  ;;  %946 = vst.msk [vmem:[#allocation2 + $0x1b0] sm:$0xff] %vm890_vm1, %v11269_v56  ;;  %948 = vst.msk [vmem:[#allocation2 + $0x1c0] sm:$0xff] %vm890_vm1, %v11269_v56 }
  0x26   :  { %949 = vst.msk [vmem:[#allocation2 + $0x1c8] sm:$0x1] %vm892_vm2, %v11269_v56  ;;  %951 = vst.msk [vmem:[#allocation2 + $0x1d8] sm:$0x1] %vm892_vm2, %v11269_v56 }
  0x27   :  { %950 = vst.msk [vmem:[#allocation2 + $0x1d0] sm:$0xff] %vm890_vm1, %v11269_v56  ;;  %952 = vst.msk [vmem:[#allocation2 + $0x1e0] sm:$0xff] %vm890_vm1, %v11269_v56 }
  0x28   :  { %9594 = vmatmul.mubr.msk.f32.gmra.mrb[12].mxu0 %vm120_vm0, %v56_v22  ;;  %953 = vst.msk [vmem:[#allocation2 + $0x1e8] sm:$0x1] %vm892_vm2, %v11269_v56  ;;  %955 = vst.msk [vmem:[#allocation2 + $0x1f8] sm:$0x1] %vm892_vm2, %v11269_v56 }
  0x29   :  { %9596 = vmatprep.mubr.msk.f32.mxu0 %vm120_vm0, %v57_v23  ;;  %954 = vst.msk [vmem:[#allocation2 + $0x1f0] sm:$0xff] %vm890_vm1, %v11269_v56  ;;  %956 = vst.msk [vmem:[#allocation2 + $0x200] sm:$0xff] %vm890_vm1, %v11269_v56 }
  0x2a   :  { %957 = vst.msk [vmem:[#allocation2 + $0x208] sm:$0x1] %vm892_vm2, %v11269_v56  ;;  %959 = vst.msk [vmem:[#allocation2 + $0x218] sm:$0x1] %vm892_vm2, %v11269_v56 }
  0x2b   :  { %958 = vst.msk [vmem:[#allocation2 + $0x210] sm:$0xff] %vm890_vm1, %v11269_v56  ;;  %960 = vst.msk [vmem:[#allocation2 + $0x220] sm:$0xff] %vm890_vm1, %v11269_v56 }
  0x2c   :  { %9597 = vmatmul.mubr.msk.f32.gmra.mrb[14].mxu0 %vm120_vm0, %v58_v24  ;;  %961 = vst.msk [vmem:[#allocation2 + $0x228] sm:$0x1] %vm892_vm2, %v11269_v56  ;;  %963 = vst.msk [vmem:[#allocation2 + $0x238] sm:$0x1] %vm892_vm2, %v11269_v56 }
  0x2d   :  { %9599 = vmatprep.mubr.msk.f32.mxu0 %vm120_vm0, %v59_v25  ;;  %962 = vst.msk [vmem:[#allocation2 + $0x230] sm:$0xff] %vm890_vm1, %v11269_v56  ;;  %964 = vst.msk [vmem:[#allocation2 + $0x240] sm:$0xff] %vm890_vm1, %v11269_v56 }
  0x2e   :  { %965 = vst.msk [vmem:[#allocation2 + $0x248] sm:$0x1] %vm892_vm2, %v11269_v56  ;;  %967 = vst.msk [vmem:[#allocation2 + $0x258] sm:$0x1] %vm892_vm2, %v11269_v56 }
  0x2f   :  { %966 = vst.msk [vmem:[#allocation2 + $0x250] sm:$0xff] %vm890_vm1, %v11269_v56  ;;  %968 = vst.msk [vmem:[#allocation2 + $0x260] sm:$0xff] %vm890_vm1, %v11269_v56 }
  0x30   :  { %9600 = vmatmul.mubr.msk.f32.gmra.mrb[16].mxu0 %vm120_vm0, %v60_v26  ;;  %969 = vst.msk [vmem:[#allocation2 + $0x268] sm:$0x1] %vm892_vm2, %v11269_v56  ;;  %971 = vst.msk [vmem:[#allocation2 + $0x278] sm:$0x1] %vm892_vm2, %v11269_v56 }
  0x31   :  { %9602 = vmatprep.mubr.msk.f32.mxu0 %vm120_vm0, %v61_v27  ;;  %970 = vst.msk [vmem:[#allocation2 + $0x270] sm:$0xff] %vm890_vm1, %v11269_v56  ;;  %972 = vst.msk [vmem:[#allocation2 + $0x280] sm:$0xff] %vm890_vm1, %v11269_v56 }
  0x32   :  { %973 = vst.msk [vmem:[#allocation2 + $0x288] sm:$0x1] %vm892_vm2, %v11269_v56  ;;  %975 = vst.msk [vmem:[#allocation2 + $0x298] sm:$0x1] %vm892_vm2, %v11269_v56 }
  0x33   :  { %974 = vst.msk [vmem:[#allocation2 + $0x290] sm:$0xff] %vm890_vm1, %v11269_v56  ;;  %976 = vst.msk [vmem:[#allocation2 + $0x2a0] sm:$0xff] %vm890_vm1, %v11269_v56 }
  0x34   :  { %9603 = vmatmul.mubr.msk.f32.gmra.mrb[18].mxu0 %vm120_vm0, %v62_v28  ;;  %977 = vst.msk [vmem:[#allocation2 + $0x2a8] sm:$0x1] %vm892_vm2, %v11269_v56  ;;  %979 = vst.msk [vmem:[#allocation2 + $0x2b8] sm:$0x1] %vm892_vm2, %v11269_v56 }
  0x35   :  { %9605 = vmatprep.mubr.msk.f32.mxu0 %vm120_vm0, %v63_v29  ;;  %978 = vst.msk [vmem:[#allocation2 + $0x2b0] sm:$0xff] %vm890_vm1, %v11269_v56  ;;  %980 = vst.msk [vmem:[#allocation2 + $0x2c0] sm:$0xff] %vm890_vm1, %v11269_v56 }
  0x36   :  { %981 = vst.msk [vmem:[#allocation2 + $0x2c8] sm:$0x1] %vm892_vm2, %v11269_v56  ;;  %983 = vst.msk [vmem:[#allocation2 + $0x2d8] sm:$0x1] %vm892_vm2, %v11269_v56 }
  0x37   :  { %982 = vst.msk [vmem:[#allocation2 + $0x2d0] sm:$0xff] %vm890_vm1, %v11269_v56  ;;  %984 = vst.msk [vmem:[#allocation2 + $0x2e0] sm:$0xff] %vm890_vm1, %v11269_v56 }
  0x38   :  { %9606 = vmatmul.mubr.msk.f32.gmra.mrb[20].mxu0 %vm120_vm0, %v64_v30  ;;  %985 = vst.msk [vmem:[#allocation2 + $0x2e8] sm:$0x1] %vm892_vm2, %v11269_v56  ;;  %987 = vst.msk [vmem:[#allocation2 + $0x2f8] sm:$0x1] %vm892_vm2, %v11269_v56 }
  0x39   :  { %9608 = vmatprep.mubr.msk.f32.mxu0 %vm120_vm0, %v65_v31  ;;  %986 = vst.msk [vmem:[#allocation2 + $0x2f0] sm:$0xff] %vm890_vm1, %v11269_v56  ;;  %988 = vst.msk [vmem:[#allocation2 + $0x300] sm:$0xff] %vm890_vm1, %v11269_v56 }
  0x3a   :  { %989 = vst.msk [vmem:[#allocation2 + $0x308] sm:$0x1] %vm892_vm2, %v11269_v56  ;;  %991 = vst.msk [vmem:[#allocation2 + $0x318] sm:$0x1] %vm892_vm2, %v11269_v56 }
  0x3b   :  { %990 = vst.msk [vmem:[#allocation2 + $0x310] sm:$0xff] %vm890_vm1, %v11269_v56  ;;  %992 = vst.msk [vmem:[#allocation2 + $0x320] sm:$0xff] %vm890_vm1, %v11269_v56 }
  0x3c   :  { %9609 = vmatmul.mubr.msk.f32.gmra.mrb[22].mxu0 %vm120_vm0, %v66_v32  ;;  %993 = vst.msk [vmem:[#allocation2 + $0x328] sm:$0x1] %vm892_vm2, %v11269_v56  ;;  %995 = vst.msk [vmem:[#allocation2 + $0x338] sm:$0x1] %vm892_vm2, %v11269_v56 }
  0x3d   :  { %9611 = vmatprep.mubr.msk.f32.mxu0 %vm120_vm0, %v67_v33  ;;  %994 = vst.msk [vmem:[#allocation2 + $0x330] sm:$0xff] %vm890_vm1, %v11269_v56  ;;  %996 = vst.msk [vmem:[#allocation2 + $0x340] sm:$0xff] %vm890_vm1, %v11269_v56 }
  0x3e   :  { %997 = vst.msk [vmem:[#allocation2 + $0x348] sm:$0x1] %vm892_vm2, %v11269_v56  ;;  %999 = vst.msk [vmem:[#allocation2 + $0x358] sm:$0x1] %vm892_vm2, %v11269_v56 }
  0x3f   :  { %998 = vst.msk [vmem:[#allocation2 + $0x350] sm:$0xff] %vm890_vm1, %v11269_v56  ;;  %1000 = vst.msk [vmem:[#allocation2 + $0x360] sm:$0xff] %vm890_vm1, %v11269_v56 }
  0x40   :  { %9612 = vmatmul.mubr.msk.f32.gmra.mrb[24].mxu0 %vm120_vm0, %v68_v34  ;;  %1001 = vst.msk [vmem:[#allocation2 + $0x368] sm:$0x1] %vm892_vm2, %v11269_v56  ;;  %1003 = vst.msk [vmem:[#allocation2 + $0x378] sm:$0x1] %vm892_vm2, %v11269_v56 }
  0x41   :  { %9614 = vmatprep.mubr.msk.f32.mxu0 %vm120_vm0, %v69_v35  ;;  %1002 = vst.msk [vmem:[#allocation2 + $0x370] sm:$0xff] %vm890_vm1, %v11269_v56  ;;  %1004 = vst.msk [vmem:[#allocation2 + $0x380] sm:$0xff] %vm890_vm1, %v11269_v56 }
  0x42   :  { %1005 = vst.msk [vmem:[#allocation2 + $0x388] sm:$0x1] %vm892_vm2, %v11269_v56  ;;  %1007 = vst.msk [vmem:[#allocation2 + $0x398] sm:$0x1] %vm892_vm2, %v11269_v56 }
  0x43   :  { %1006 = vst.msk [vmem:[#allocation2 + $0x390] sm:$0xff] %vm890_vm1, %v11269_v56  ;;  %1008 = vst.msk [vmem:[#allocation2 + $0x3a0] sm:$0xff] %vm890_vm1, %v11269_v56 }
  0x44   :  { %9615 = vmatmul.mubr.msk.f32.gmra.mrb[26].mxu0 %vm120_vm0, %v70_v36  ;;  %1009 = vst.msk [vmem:[#allocation2 + $0x3a8] sm:$0x1] %vm892_vm2, %v11269_v56  ;;  %1011 = vst.msk [vmem:[#allocation2 + $0x3b8] sm:$0x1] %vm892_vm2, %v11269_v56 }
  0x45   :  { %9617 = vmatprep.mubr.msk.f32.mxu0 %vm120_vm0, %v71_v37  ;;  %1010 = vst.msk [vmem:[#allocation2 + $0x3b0] sm:$0xff] %vm890_vm1, %v11269_v56  ;;  %1012 = vst.msk [vmem:[#allocation2 + $0x3c0] sm:$0xff] %vm890_vm1, %v11269_v56 }
  0x46   :  { %1013 = vst.msk [vmem:[#allocation2 + $0x3c8] sm:$0x1] %vm892_vm2, %v11269_v56  ;;  %1015 = vst.msk [vmem:[#allocation2 + $0x3d8] sm:$0x1] %vm892_vm2, %v11269_v56 }
  0x47   :  { %1014 = vst.msk [vmem:[#allocation2 + $0x3d0] sm:$0xff] %vm890_vm1, %v11269_v56  ;;  %1016 = vst.msk [vmem:[#allocation2 + $0x3e0] sm:$0xff] %vm890_vm1, %v11269_v56 }
  0x48   :  { %9618 = vmatmul.mubr.msk.f32.gmra.mrb[28].mxu0 %vm120_vm0, %v72_v38  ;;  %1017 = vst.msk [vmem:[#allocation2 + $0x3e8] sm:$0x1] %vm892_vm2, %v11269_v56  ;;  %1019 = vst.msk [vmem:[#allocation2 + $0x3f8] sm:$0x1] %vm892_vm2, %v11269_v56 }
  0x49   :  { %9620 = vmatprep.mubr.msk.f32.mxu0 %vm120_vm0, %v73_v39  ;;  %1018 = vst.msk [vmem:[#allocation2 + $0x3f0] sm:$0xff] %vm890_vm1, %v11269_v56  ;;  %1020 = vst.msk [vmem:[#allocation2 + $0x400] sm:$0xff] %vm890_vm1, %v11269_v56 }
  0x4a   :  { %1021 = vst.msk [vmem:[#allocation2 + $0x408] sm:$0x1] %vm892_vm2, %v11269_v56  ;;  %1023 = vst.msk [vmem:[#allocation2 + $0x418] sm:$0x1] %vm892_vm2, %v11269_v56 }
  0x4b   :  { %1022 = vst.msk [vmem:[#allocation2 + $0x410] sm:$0xff] %vm890_vm1, %v11269_v56  ;;  %1024 = vst.msk [vmem:[#allocation2 + $0x420] sm:$0xff] %vm890_vm1, %v11269_v56 }
  0x4c   :  { %9621 = vmatmul.mubr.msk.f32.gmra.mrb[30].mxu0 %vm120_vm0, %v74_v40  ;;  %1025 = vst.msk [vmem:[#allocation2 + $0x428] sm:$0x1] %vm892_vm2, %v11269_v56  ;;  %1027 = vst.msk [vmem:[#allocation2 + $0x438] sm:$0x1] %vm892_vm2, %v11269_v56 }
  0x4d   :  { %9623 = vmatprep.mubr.msk.f32.mxu0 %vm120_vm0, %v75_v41  ;;  %1026 = vst.msk [vmem:[#allocation2 + $0x430] sm:$0xff] %vm890_vm1, %v11269_v56  ;;  %1028 = vst.msk [vmem:[#allocation2 + $0x440] sm:$0xff] %vm890_vm1, %v11269_v56 }
  0x4e   :  { %1029 = vst.msk [vmem:[#allocation2 + $0x448] sm:$0x1] %vm892_vm2, %v11269_v56  ;;  %1031 = vst.msk [vmem:[#allocation2 + $0x458] sm:$0x1] %vm892_vm2, %v11269_v56 }
  0x4f   :  { %1030 = vst.msk [vmem:[#allocation2 + $0x450] sm:$0xff] %vm890_vm1, %v11269_v56  ;;  %1032 = vst.msk [vmem:[#allocation2 + $0x460] sm:$0xff] %vm890_vm1, %v11269_v56 }
  0x50   :  { %9624 = vmatmul.mubr.msk.f32.gmra.mrb[32].mxu0 %vm120_vm0, %v76_v42  ;;  %1033 = vst.msk [vmem:[#allocation2 + $0x468] sm:$0x1] %vm892_vm2, %v11269_v56  ;;  %1035 = vst.msk [vmem:[#allocation2 + $0x478] sm:$0x1] %vm892_vm2, %v11269_v56 }
  0x51   :  { %9626 = vmatprep.mubr.msk.f32.mxu0 %vm120_vm0, %v77_v43  ;;  %1034 = vst.msk [vmem:[#allocation2 + $0x470] sm:$0xff] %vm890_vm1, %v11269_v56 }
  0x54   :  { %9627 = vmatmul.mubr.msk.f32.gmra.mrb[34].mxu0 %vm120_vm0, %v78_v44 }
  0x55   :  { %9629 = vmatprep.mubr.msk.f32.mxu0 %vm120_vm0, %v79_v45 }
  0x58   :  { %9630 = vmatmul.mubr.msk.f32.gmra.mrb[36].mxu0 %vm120_vm0, %v80_v46 }
  0x59   :  { %9632 = vmatprep.mubr.msk.f32.mxu0 %vm120_vm0, %v81_v47 }
  0x5c   :  { %9633 = vmatmul.mubr.msk.f32.gmra.mrb[38].mxu0 %vm120_vm0, %v82_v48 }
  0x5d   :  { %9635 = vmatprep.mubr.msk.f32.mxu0 %vm120_vm0, %v83_v49 }
  0x60   :  { %9636 = vmatmul.mubr.msk.f32.gmra.mrb[40].mxu0 %vm120_vm0, %v84_v50 }
  0x61   :  { %9638 = vmatprep.mubr.msk.f32.mxu0 %vm120_vm0, %v85_v51 }
  0x64   :  { %9639 = vmatmul.mubr.msk.f32.gmra.mrb[42].mxu0 %vm120_vm0, %v86_v52 }
  0x65   :  { %9641 = vmatprep.mubr.msk.f32.mxu0 %vm120_vm0, %v87_v53 }
  0x68   :  { %9642 = vmatmul.mubr.msk.f32.gmra.mrb[44].mxu0 %vm120_vm0, %v88_v54 }
  0x69   :  { %9644 = vmatprep.mubr.msk.f32.mxu0 %vm120_vm0, %v11539_v55 }
  0x6c   :  { %9645 = vmatmul.mubr.msk.f32.gmra.mrb[46].mxu0 %vm120_vm0, %v90_v57 }
  0x6d   :  { %9647 = vmatprep.mubr.msk.f32.mxu0 %vm120_vm0, %v91_v58 }
  0x70   :  { %9648 = vmatmul.mubr.msk.f32.gmra.mrb[48].mxu0 %vm120_vm0, %v92_v59 }
  0x71   :  { %9650 = vmatprep.mubr.msk.f32.mxu0 %vm120_vm0, %v93_v60 }
  0x74   :  { %9651 = vmatmul.mubr.msk.f32.gmra.mrb[50].mxu0 %vm120_vm0, %v94_v61 }
  0x75   :  { %9653 = vmatprep.mubr.msk.f32.mxu0 %vm120_vm0, %v95_v62 }
  0x78   :  { %9654 = vmatmul.mubr.msk.f32.gmra.mrb[52].mxu0 %vm120_vm0, %v96_v63 }
  0x79   :  { %9656 = vmatprep.mubr.msk.f32.mxu0 %vm120_vm0, %v97_v0 }
  0x7c   :  { %9657 = vmatmul.mubr.msk.f32.gmra.mrb[54].mxu0 %vm120_vm0, %v98_v1 }
  0x7d   :  { %9659 = vmatprep.mubr.msk.f32.mxu0 %vm120_vm0, %v99_v2 }
  0x80   :  { %9660 = vmatmul.mubr.msk.f32.gmra.mrb[56].mxu0 %vm120_vm0, %v100_v3 }
  0x81   :  { %9662 = vmatprep.mubr.msk.f32.mxu0 %vm120_vm0, %v101_v4 }
  0x84   :  { %9663 = vmatmul.mubr.msk.f32.gmra.mrb[58].mxu0 %vm120_vm0, %v102_v5 }
  0x85   :  { %9665 = vmatprep.mubr.msk.f32.mxu0 %vm120_vm0, %v103_v6 }
  0x88   :  { %9666 = vmatmul.mubr.msk.f32.gmra.mrb[60].mxu0 %vm120_vm0, %v104_v7 }
  0x89   :  { %9668 = vmatprep.mubr.msk.f32.mxu0 %vm120_vm0, %v105_v8 }
  0x8c   :  { %9669 = vmatmul.mubr.msk.f32.gmra.mrb[62].mxu0 %vm120_vm0, %v106_v9 }
  0xe3   :  { %v9577_v18 = vpop.f32.mrb[0].mxu0 }
  0xe4   :  { %v385_v19 = vadd.f32 %v9577_v18, %v11919_v17  ;;  %v379_v20 = vpop.f32.mrb[1].mxu0 }
  0xe5   :  { %v380_v21 = vadd.f32 %v11919_v17, %v379_v20 }
  0xe6   :  { %vm699_vm3 = vcmp.gt.f32.partialorder %v385_v19, 0.0  ;;  %v763_v22 = vmul.f32 0.2, %v385_v19 }
  0xe7   :  { %vm698_vm4 = vcmp.gt.f32.partialorder %v380_v21, 0.0  ;;  %v762_v23 = vmul.f32 0.2, %v380_v21  ;;  %v9580_v24 = vpop.f32.mrb[2].mxu0 }
  0xe8   :  { %v827_v25 = vsel %vm699_vm3, %v385_v19, %v763_v22  ;;  %v395_v26 = vadd.f32 %v9580_v24, %v11919_v17  ;;  %v389_v27 = vpop.f32.mrb[3].mxu0 }
  0xe9   :  { %1038 = vst.msk [vmem:[#allocation2 + $0x21] sm:$0xff] %vm890_vm1, %v827_v25  ;;  %v826_v28 = vsel %vm698_vm4, %v380_v21, %v762_v23  ;;  %v390_v29 = vadd.f32 %v11919_v17, %v389_v27 }
  0xea   :  { %1037 = vst.msk [vmem:[#allocation2 + $0x11] sm:$0xff] %vm890_vm1, %v826_v28  ;;  %vm701_vm5 = vcmp.gt.f32.partialorder %v395_v26, 0.0  ;;  %v765_v30 = vmul.f32 0.2, %v395_v26 }
  0xeb   :  { %vm700_vm6 = vcmp.gt.f32.partialorder %v390_v29, 0.0  ;;  %v764_v31 = vmul.f32 0.2, %v390_v29  ;;  %v9583_v32 = vpop.f32.mrb[4].mxu0 }
  0xec   :  { %v829_v33 = vsel %vm701_vm5, %v395_v26, %v765_v30  ;;  %v405_v34 = vadd.f32 %v9583_v32, %v11919_v17  ;;  %v399_v35 = vpop.f32.mrb[5].mxu0 }
  0xed   :  { %1040 = vst.msk [vmem:[#allocation2 + $0x41] sm:$0xff] %vm890_vm1, %v829_v33  ;;  %v828_v36 = vsel %vm700_vm6, %v390_v29, %v764_v31  ;;  %v400_v37 = vadd.f32 %v11919_v17, %v399_v35 }
  0xee   :  { %1039 = vst.msk [vmem:[#allocation2 + $0x31] sm:$0xff] %vm890_vm1, %v828_v36  ;;  %vm703_vm7 = vcmp.gt.f32.partialorder %v405_v34, 0.0  ;;  %v767_v38 = vmul.f32 0.2, %v405_v34 }
  0xef   :  { %vm702_vm8 = vcmp.gt.f32.partialorder %v400_v37, 0.0  ;;  %v766_v39 = vmul.f32 0.2, %v400_v37  ;;  %v9586_v40 = vpop.f32.mrb[6].mxu0 }
  0xf0   :  { %v831_v41 = vsel %vm703_vm7, %v405_v34, %v767_v38  ;;  %v415_v42 = vadd.f32 %v9586_v40, %v11919_v17  ;;  %v409_v43 = vpop.f32.mrb[7].mxu0  ;;  %v8489_v40 = vld [vmem:[%s13800_s3 + $0x20] sm:$0xff] }
  0xf1   :  { %1042 = vst.msk [vmem:[#allocation2 + $0x61] sm:$0xff] %vm890_vm1, %v831_v41  ;;  %v830_v44 = vsel %vm702_vm8, %v400_v37, %v766_v39  ;;  %v410_v45 = vadd.f32 %v11919_v17, %v409_v43  ;;  %v8490_v41 = vld [vmem:[%s13800_s3 + $0x28] sm:$0xff] }
  0xf2   :  { %1041 = vst.msk [vmem:[#allocation2 + $0x51] sm:$0xff] %vm890_vm1, %v830_v44  ;;  %vm705_vm9 = vcmp.gt.f32.partialorder %v415_v42, 0.0  ;;  %v769_v46 = vmul.f32 0.2, %v415_v42 }
  0xf3   :  { %vm704_vm10 = vcmp.gt.f32.partialorder %v410_v45, 0.0  ;;  %v768_v47 = vmul.f32 0.2, %v410_v45  ;;  %v9589_v48 = vpop.f32.mrb[8].mxu0 }
  0xf4   :  { %v833_v49 = vsel %vm705_vm9, %v415_v42, %v769_v46  ;;  %v425_v50 = vadd.f32 %v9589_v48, %v11919_v17  ;;  %v419_v51 = vpop.f32.mrb[9].mxu0  ;;  %v11970_v48 = vpack.c.bf16 %v8490_v41, %v8489_v40 }
  0xf5   :  { %1044 = vst.msk [vmem:[#allocation2 + $0x81] sm:$0xff] %vm890_vm1, %v833_v49  ;;  %v832_v52 = vsel %vm704_vm10, %v410_v45, %v768_v47  ;;  %v420_v53 = vadd.f32 %v11919_v17, %v419_v51 }
  0xf6   :  { %1043 = vst.msk [vmem:[#allocation2 + $0x71] sm:$0xff] %vm890_vm1, %v832_v52  ;;  %vm707_vm11 = vcmp.gt.f32.partialorder %v425_v50, 0.0  ;;  %v771_v54 = vmul.f32 0.2, %v425_v50 }
  0xf7   :  { %vm706_vm12 = vcmp.gt.f32.partialorder %v420_v53, 0.0  ;;  %v770_v55 = vmul.f32 0.2, %v420_v53  ;;  %v9592_v56 = vpop.f32.mrb[10].mxu0 }
  0xf8   :  { %v835_v57 = vsel %vm707_vm11, %v425_v50, %v771_v54  ;;  %v435_v58 = vadd.f32 %v9592_v56, %v11919_v17  ;;  %v429_v59 = vpop.f32.mrb[11].mxu0 }
  0xf9   :  { %1046 = vst.msk [vmem:[#allocation2 + $0xb1] sm:$0xff] %vm890_vm1, %v835_v57  ;;  %v834_v60 = vsel %vm706_vm12, %v420_v53, %v770_v55  ;;  %v430_v61 = vadd.f32 %v11919_v17, %v429_v59 }
  0xfa   :  { %1045 = vst.msk [vmem:[#allocation2 + $0xa1] sm:$0xff] %vm890_vm1, %v834_v60  ;;  %vm709_vm13 = vcmp.gt.f32.partialorder %v435_v58, 0.0  ;;  %v773_v62 = vmul.f32 0.2, %v435_v58 }
  0xfb   :  { %vm708_vm14 = vcmp.gt.f32.partialorder %v430_v61, 0.0  ;;  %v772_v63 = vmul.f32 0.2, %v430_v61  ;;  %v9595_v0 = vpop.f32.mrb[12].mxu0 }
  0xfc   :  { %v837_v1 = vsel %vm709_vm13, %v435_v58, %v773_v62  ;;  %v445_v2 = vadd.f32 %v9595_v0, %v11919_v17  ;;  %v439_v3 = vpop.f32.mrb[13].mxu0 }
  0xfd   :  { %1048 = vst.msk [vmem:[#allocation2 + $0xd1] sm:$0xff] %vm890_vm1, %v837_v1  ;;  %v836_v4 = vsel %vm708_vm14, %v430_v61, %v772_v63  ;;  %v440_v5 = vadd.f32 %v11919_v17, %v439_v3 }
  0xfe   :  { %1047 = vst.msk [vmem:[#allocation2 + $0xc1] sm:$0xff] %vm890_vm1, %v836_v4  ;;  %vm711_vm15 = vcmp.gt.f32.partialorder %v445_v2, 0.0  ;;  %v775_v6 = vmul.f32 0.2, %v445_v2 }
  0xff   :  { %vm710_vm0 = vcmp.gt.f32.partialorder %v440_v5, 0.0  ;;  %v774_v7 = vmul.f32 0.2, %v440_v5  ;;  %v9598_v8 = vpop.f32.mrb[14].mxu0 }
 0x100   :  { %v839_v9 = vsel %vm711_vm15, %v445_v2, %v775_v6  ;;  %v455_v10 = vadd.f32 %v9598_v8, %v11919_v17  ;;  %v449_v11 = vpop.f32.mrb[15].mxu0 }
 0x101   :  { %1050 = vst.msk [vmem:[#allocation2 + $0xf1] sm:$0xff] %vm890_vm1, %v839_v9  ;;  %v838_v12 = vsel %vm710_vm0, %v440_v5, %v774_v7  ;;  %v450_v13 = vadd.f32 %v11919_v17, %v449_v11 }
 0x102   :  { %1049 = vst.msk [vmem:[#allocation2 + $0xe1] sm:$0xff] %vm890_vm1, %v838_v12  ;;  %vm713_vm2 = vcmp.gt.f32.partialorder %v455_v10, 0.0  ;;  %v777_v14 = vmul.f32 0.2, %v455_v10 }
 0x103   :  { %vm712_vm3 = vcmp.gt.f32.partialorder %v450_v13, 0.0  ;;  %v776_v15 = vmul.f32 0.2, %v450_v13  ;;  %v9601_v18 = vpop.f32.mrb[16].mxu0 }
 0x104   :  { %v841_v19 = vsel %vm713_vm2, %v455_v10, %v777_v14  ;;  %v465_v20 = vadd.f32 %v9601_v18, %v11919_v17  ;;  %v459_v21 = vpop.f32.mrb[17].mxu0  ;;  %v1131_v14 = vld [vmem:[#allocation2 + $0x1b0] sm:$0xff] }
 0x105   :  { %1052 = vst.msk [vmem:[#allocation2 + $0x111] sm:$0xff] %vm890_vm1, %v841_v19  ;;  %v840_v22 = vsel %vm712_vm3, %v450_v13, %v776_v15  ;;  %v460_v23 = vadd.f32 %v11919_v17, %v459_v21 }
 0x106   :  { %1051 = vst.msk [vmem:[#allocation2 + $0x101] sm:$0xff] %vm890_vm1, %v840_v22  ;;  %vm715_vm4 = vcmp.gt.f32.partialorder %v465_v20, 0.0  ;;  %v779_v24 = vmul.f32 0.2, %v465_v20 }
 0x107   :  { %vm714_vm5 = vcmp.gt.f32.partialorder %v460_v23, 0.0  ;;  %v778_v25 = vmul.f32 0.2, %v460_v23  ;;  %v9604_v26 = vpop.f32.mrb[18].mxu0 }
 0x108   :  { %v843_v27 = vsel %vm715_vm4, %v465_v20, %v779_v24  ;;  %v475_v28 = vadd.f32 %v9604_v26, %v11919_v17  ;;  %v469_v29 = vpop.f32.mrb[19].mxu0 }
 0x109   :  { %1055 = vst.msk [vmem:[#allocation2 + $0x140] sm:$0xff] %vm890_vm1, %v843_v27  ;;  %v842_v30 = vsel %vm714_vm5, %v460_v23, %v778_v25  ;;  %v470_v31 = vadd.f32 %v11919_v17, %v469_v29 }
 0x10a   :  { %1054 = vst.msk [vmem:[#allocation2 + $0x130] sm:$0xff] %vm890_vm1, %v842_v30  ;;  %vm717_vm6 = vcmp.gt.f32.partialorder %v475_v28, 0.0  ;;  %v781_v32 = vmul.f32 0.2, %v475_v28 }
 0x10b   :  { %vm716_vm7 = vcmp.gt.f32.partialorder %v470_v31, 0.0  ;;  %v780_v33 = vmul.f32 0.2, %v470_v31  ;;  %v9607_v34 = vpop.f32.mrb[20].mxu0 }
 0x10c   :  { %v845_v35 = vsel %vm717_vm6, %v475_v28, %v781_v32  ;;  %v485_v36 = vadd.f32 %v9607_v34, %v11919_v17  ;;  %v479_v37 = vpop.f32.mrb[21].mxu0 }
 0x10d   :  { %1057 = vst.msk [vmem:[#allocation2 + $0x160] sm:$0xff] %vm890_vm1, %v845_v35  ;;  %v844_v38 = vsel %vm716_vm7, %v470_v31, %v780_v33  ;;  %v480_v39 = vadd.f32 %v11919_v17, %v479_v37 }
 0x10e   :  { %1056 = vst.msk [vmem:[#allocation2 + $0x150] sm:$0xff] %vm890_vm1, %v844_v38  ;;  %vm719_vm8 = vcmp.gt.f32.partialorder %v485_v36, 0.0  ;;  %v783_v42 = vmul.f32 0.2, %v485_v36 }
 0x10f   :  { %vm718_vm9 = vcmp.gt.f32.partialorder %v480_v39, 0.0  ;;  %v782_v43 = vmul.f32 0.2, %v480_v39  ;;  %v9610_v44 = vpop.f32.mrb[22].mxu0 }
 0x110   :  { %v847_v45 = vsel %vm719_vm8, %v485_v36, %v783_v42  ;;  %v495_v46 = vadd.f32 %v9610_v44, %v11919_v17  ;;  %v489_v47 = vpop.f32.mrb[23].mxu0  ;;  %v1125_v53 = vld [vmem:[#allocation2 + $0x140] sm:$0xff] }
 0x111   :  { %1059 = vst.msk [vmem:[#allocation2 + $0x180] sm:$0xff] %vm890_vm1, %v847_v45  ;;  %v846_v49 = vsel %vm718_vm9, %v480_v39, %v782_v43  ;;  %v490_v50 = vadd.f32 %v11919_v17, %v489_v47  ;;  %v1124_v51 = vld [vmem:[#allocation2 + $0x130] sm:$0xff] }
 0x112   :  { %1058 = vst.msk [vmem:[#allocation2 + $0x170] sm:$0xff] %vm890_vm1, %v846_v49  ;;  %vm721_vm10 = vcmp.gt.f32.partialorder %v495_v46, 0.0  ;;  %v785_v52 = vmul.f32 0.2, %v495_v46  ;;  %9676 = vmatmul.mubr.msk.f32.vlgmr.msra.gmra.mrb[0].mxu1 %vm890_vm1, %v1124_v51 }
 0x113   :  { %vm720_vm11 = vcmp.gt.f32.partialorder %v490_v50, 0.0  ;;  %v784_v54 = vmul.f32 0.2, %v490_v50  ;;  %v9613_v55 = vpop.f32.mrb[24].mxu0  ;;  %9678 = vmatprep.mubr.msk.f32.mxu1 %vm890_vm1, %v1125_v53  ;;  %10618 = vmatpush3.bf16.msra.mxu1 %v11913_v16 }
 0x114   :  { %v849_v56 = vsel %vm721_vm10, %v495_v46, %v785_v52  ;;  %v505_v57 = vadd.f32 %v9613_v55, %v11919_v17  ;;  %v499_v58 = vpop.f32.mrb[25].mxu0  ;;  %10620 = vmatprep.subr.bf16.mxu1 %v11970_v48  ;;  %v1127_v63 = vld [vmem:[#allocation2 + $0x160] sm:$0xff] }
 0x115   :  { %1061 = vst.msk [vmem:[#allocation2 + $0x1a0] sm:$0xff] %vm890_vm1, %v849_v56  ;;  %v848_v59 = vsel %vm720_vm11, %v490_v50, %v784_v54  ;;  %v500_v60 = vadd.f32 %v11919_v17, %v499_v58  ;;  %v1126_v61 = vld [vmem:[#allocation2 + $0x150] sm:$0xff]  ;;  %v1104_v54 = vld [vmem:[#allocation2] sm:$0xff] }
 0x116   :  { %1060 = vst.msk [vmem:[#allocation2 + $0x190] sm:$0xff] %vm890_vm1, %v848_v59  ;;  %vm723_vm12 = vcmp.gt.f32.partialorder %v505_v57, 0.0  ;;  %v787_v62 = vmul.f32 0.2, %v505_v57  ;;  %9679 = vmatmul.mubr.msk.f32.gmra.mrb[2].mxu1 %vm890_vm1, %v1126_v61  ;;  %v8507_v61 = vld [vmem:[%s13800_s3 + $0x30] sm:$0xff] }
 0x117   :  { %vm722_vm13 = vcmp.gt.f32.partialorder %v500_v60, 0.0  ;;  %v786_v16 = vmul.f32 0.2, %v500_v60  ;;  %v9616_v0 = vpop.f32.mrb[26].mxu0  ;;  %9681 = vmatprep.mubr.msk.f32.mxu1 %vm890_vm1, %v1127_v63 }
 0x118   :  { %v851_v1 = vsel %vm723_vm12, %v505_v57, %v787_v62  ;;  %v515_v2 = vadd.f32 %v9616_v0, %v11919_v17  ;;  %v509_v3 = vpop.f32.mrb[27].mxu0  ;;  %v1129_v8 = vld [vmem:[#allocation2 + $0x180] sm:$0xff]  ;;  %v8508_v62 = vld [vmem:[%s13800_s3 + $0x38] sm:$0xff] }
 0x119   :  { %1063 = vst.msk [vmem:[#allocation2 + $0x1d0] sm:$0xff] %vm890_vm1, %v851_v1  ;;  %v850_v4 = vsel %vm722_vm13, %v500_v60, %v786_v16  ;;  %v510_v5 = vadd.f32 %v11919_v17, %v509_v3  ;;  %v1128_v6 = vld [vmem:[#allocation2 + $0x170] sm:$0xff] }
 0x11a   :  { %1062 = vst.msk [vmem:[#allocation2 + $0x1c0] sm:$0xff] %vm890_vm1, %v850_v4  ;;  %vm725_vm14 = vcmp.gt.f32.partialorder %v515_v2, 0.0  ;;  %v789_v7 = vmul.f32 0.2, %v515_v2  ;;  %9682 = vmatmul.mubr.msk.f32.gmra.mrb[4].mxu1 %vm890_vm1, %v1128_v6  ;;  %v12028_v4 = vpack.c.bf16 %v8508_v62, %v8507_v61 }
 0x11b   :  { %vm724_vm15 = vcmp.gt.f32.partialorder %v510_v5, 0.0  ;;  %v788_v9 = vmul.f32 0.2, %v510_v5  ;;  %v9619_v10 = vpop.f32.mrb[28].mxu0  ;;  %9684 = vmatprep.mubr.msk.f32.mxu1 %vm890_vm1, %v1129_v8  ;;  %v12036_v8 = vld [vmem:[#allocation2 + $0x20] sm:$0xff] }
 0x11c   :  { %v853_v11 = vsel %vm725_vm14, %v515_v2, %v789_v7  ;;  %v525_v12 = vadd.f32 %v9619_v10, %v11919_v17  ;;  %v519_v13 = vpop.f32.mrb[29].mxu0 }
 0x11d   :  { %1065 = vst.msk [vmem:[#allocation2 + $0x1f0] sm:$0xff] %vm890_vm1, %v853_v11  ;;  %v852_v15 = vsel %vm724_vm15, %v510_v5, %v788_v9  ;;  %v520_v18 = vadd.f32 %v11919_v17, %v519_v13  ;;  %v1130_v19 = vld [vmem:[#allocation2 + $0x190] sm:$0xff] }
 0x11e   :  { %1064 = vst.msk [vmem:[#allocation2 + $0x1e0] sm:$0xff] %vm890_vm1, %v852_v15  ;;  %vm727_vm0 = vcmp.gt.f32.partialorder %v525_v12, 0.0  ;;  %v791_v20 = vmul.f32 0.2, %v525_v12  ;;  %9685 = vmatmul.mubr.msk.f32.gmra.mrb[6].mxu1 %vm890_vm1, %v1130_v19  ;;  %v12030_v5 = vld [vmem:[#allocation2 + $0x10] sm:$0xff] }
 0x11f   :  { %vm726_vm2 = vcmp.gt.f32.partialorder %v520_v18, 0.0  ;;  %v790_v21 = vmul.f32 0.2, %v520_v18  ;;  %v9622_v22 = vpop.f32.mrb[30].mxu0  ;;  %9687 = vmatprep.mubr.msk.f32.mxu1 %vm890_vm1, %v1131_v14  ;;  %v12044_v15 = vld [vmem:[#allocation2 + $0x30] sm:$0xff] }
 0x120   :  { %v855_v23 = vsel %vm727_vm0, %v525_v12, %v791_v20  ;;  %v535_v24 = vadd.f32 %v9622_v22, %v11919_v17  ;;  %v529_v25 = vpop.f32.mrb[31].mxu0  ;;  %v1133_v30 = vld [vmem:[#allocation2 + $0x1d0] sm:$0xff]  ;;  %v12050_v20 = vld [vmem:[#allocation2 + $0x40] sm:$0xff] }
 0x121   :  { %1067 = vst.msk [vmem:[#allocation2 + $0x210] sm:$0xff] %vm890_vm1, %v855_v23  ;;  %v854_v26 = vsel %vm726_vm2, %v520_v18, %v790_v21  ;;  %v530_v27 = vadd.f32 %v11919_v17, %v529_v25  ;;  %v1132_v28 = vld [vmem:[#allocation2 + $0x1c0] sm:$0xff] }
 0x122   :  { %1066 = vst.msk [vmem:[#allocation2 + $0x200] sm:$0xff] %vm890_vm1, %v854_v26  ;;  %vm729_vm3 = vcmp.gt.f32.partialorder %v535_v24, 0.0  ;;  %v793_v29 = vmul.f32 0.2, %v535_v24  ;;  %9688 = vmatmul.mubr.msk.f32.gmra.mrb[8].mxu1 %vm890_vm1, %v1132_v28  ;;  %v12056_v26 = vld [vmem:[#allocation2 + $0x50] sm:$0xff] }
 0x123   :  { %vm728_vm4 = vcmp.gt.f32.partialorder %v530_v27, 0.0  ;;  %v792_v31 = vmul.f32 0.2, %v530_v27  ;;  %9690 = vmatprep.mubr.msk.f32.mxu1 %vm890_vm1, %v1133_v30  ;;  %v9625_v32 = vpop.f32.mrb[32].mxu0 }
 0x124   :  { %v857_v33 = vsel %vm729_vm3, %v535_v24, %v793_v29  ;;  %v545_v34 = vadd.f32 %v9625_v32, %v11919_v17  ;;  %v539_v35 = vpop.f32.mrb[33].mxu0  ;;  %v1135_v39 = vld [vmem:[#allocation2 + $0x1f0] sm:$0xff]  ;;  %v12062_v29 = vld [vmem:[#allocation2 + $0x60] sm:$0xff] }
 0x125   :  { %1069 = vst.msk [vmem:[#allocation2 + $0x230] sm:$0xff] %vm890_vm1, %v857_v33  ;;  %v856_v36 = vsel %vm728_vm4, %v530_v27, %v792_v31  ;;  %v1134_v37 = vld [vmem:[#allocation2 + $0x1e0] sm:$0xff]  ;;  %v540_v38 = vadd.f32 %v11919_v17, %v539_v35  ;;  %v1112_v33 = vld [vmem:[#allocation2 + $0x90] sm:$0xff] }
 0x126   :  { %1068 = vst.msk [vmem:[#allocation2 + $0x220] sm:$0xff] %vm890_vm1, %v856_v36  ;;  %9691 = vmatmul.mubr.msk.f32.gmra.mrb[10].mxu1 %vm890_vm1, %v1134_v37  ;;  %vm731_vm5 = vcmp.gt.f32.partialorder %v545_v34, 0.0  ;;  %v795_v40 = vmul.f32 0.2, %v545_v34  ;;  %v12068_v37 = vld [vmem:[#allocation2 + $0x70] sm:$0xff] }
 0x127   :  { %9693 = vmatprep.mubr.msk.f32.mxu1 %vm890_vm1, %v1135_v39  ;;  %vm730_vm6 = vcmp.gt.f32.partialorder %v540_v38, 0.0  ;;  %v794_v41 = vmul.f32 0.2, %v540_v38  ;;  %v9628_v42 = vpop.f32.mrb[34].mxu0 }
 0x128   :  { %v859_v43 = vsel %vm731_vm5, %v545_v34, %v795_v40  ;;  %v555_v44 = vadd.f32 %v9628_v42, %v11919_v17  ;;  %v549_v45 = vpop.f32.mrb[35].mxu0  ;;  %v1137_v50 = vld [vmem:[#allocation2 + $0x210] sm:$0xff] }
 0x129   :  { %v1136_v46 = vld [vmem:[#allocation2 + $0x200] sm:$0xff]  ;;  %1072 = vst.msk [vmem:[#allocation2 + $0x251] sm:$0xff] %vm890_vm1, %v859_v43  ;;  %v858_v47 = vsel %vm730_vm6, %v540_v38, %v794_v41  ;;  %v550_v49 = vadd.f32 %v11919_v17, %v549_v45 }
 0x12a   :  { %9694 = vmatmul.mubr.msk.f32.gmra.mrb[12].mxu1 %vm890_vm1, %v1136_v46  ;;  %1071 = vst.msk [vmem:[#allocation2 + $0x241] sm:$0xff] %vm890_vm1, %v858_v47  ;;  %vm733_vm7 = vcmp.gt.f32.partialorder %v555_v44, 0.0  ;;  %v797_v51 = vmul.f32 0.2, %v555_v44  ;;  %v12077_v46 = vld [vmem:[#allocation2 + $0xa0] sm:$0xff] }
 0x12b   :  { %9696 = vmatprep.mubr.msk.f32.mxu1 %vm890_vm1, %v1137_v50  ;;  %vm732_vm8 = vcmp.gt.f32.partialorder %v550_v49, 0.0  ;;  %v796_v52 = vmul.f32 0.2, %v550_v49  ;;  %v9631_v53 = vpop.f32.mrb[36].mxu0  ;;  %v12083_v50 = vld [vmem:[#allocation2 + $0xb0] sm:$0xff] }
 0x12c   :  { %v861_v55 = vsel %vm733_vm7, %v555_v44, %v797_v51  ;;  %v565_v56 = vadd.f32 %v9631_v53, %v11919_v17  ;;  %v559_v57 = vpop.f32.mrb[37].mxu0 }
 0x12d   :  { %v1138_v58 = vld [vmem:[#allocation2 + $0x220] sm:$0xff]  ;;  %1074 = vst.msk [vmem:[#allocation2 + $0x271] sm:$0xff] %vm890_vm1, %v861_v55  ;;  %v860_v59 = vsel %vm732_vm8, %v550_v49, %v796_v52  ;;  %v560_v60 = vadd.f32 %v11919_v17, %v559_v57 }
 0x12e   :  { %9697 = vmatmul.mubr.msk.f32.gmra.mrb[14].mxu1 %vm890_vm1, %v1138_v58  ;;  %1073 = vst.msk [vmem:[#allocation2 + $0x261] sm:$0xff] %vm890_vm1, %v860_v59  ;;  %vm735_vm9 = vcmp.gt.f32.partialorder %v565_v56, 0.0  ;;  %v799_v63 = vmul.f32 0.2, %v565_v56  ;;  %v12089_v57 = vld [vmem:[#allocation2 + $0xc0] sm:$0xff] }
 0x12f   :  { %9703 = vmatprep.mubr.msk.f32.mxu1 %vm890_vm1, %v1104_v54  ;;  %vm734_vm10 = vcmp.gt.f32.partialorder %v560_v60, 0.0  ;;  %v798_v16 = vmul.f32 0.2, %v560_v60  ;;  %v9634_v0 = vpop.f32.mrb[38].mxu0 }
 0x130   :  { %v863_v1 = vsel %vm735_vm9, %v565_v56, %v799_v63  ;;  %v575_v2 = vadd.f32 %v9634_v0, %v11919_v17  ;;  %v569_v3 = vpop.f32.mrb[39].mxu0 }
 0x131   :  { %1076 = vst.msk [vmem:[#allocation2 + $0x291] sm:$0xff] %vm890_vm1, %v863_v1  ;;  %v862_v6 = vsel %vm734_vm10, %v560_v60, %v798_v16  ;;  %v570_v7 = vadd.f32 %v11919_v17, %v569_v3  ;;  %v12095_v60 = vld [vmem:[#allocation2 + $0xd0] sm:$0xff] }
 0x132   :  { %9704 = vmatmul.mubr.msk.f32.vlgmr.msra.gmra.mrb[0].mxu1 %vm890_vm1, %v12030_v5  ;;  %1075 = vst.msk [vmem:[#allocation2 + $0x281] sm:$0xff] %vm890_vm1, %v862_v6  ;;  %vm737_vm11 = vcmp.gt.f32.partialorder %v575_v2, 0.0  ;;  %v801_v9 = vmul.f32 0.2, %v575_v2 }
 0x133   :  { %9706 = vmatprep.mubr.msk.f32.mxu1 %vm890_vm1, %v12036_v8  ;;  %vm736_vm12 = vcmp.gt.f32.partialorder %v570_v7, 0.0  ;;  %v800_v10 = vmul.f32 0.2, %v570_v7  ;;  %v9637_v11 = vpop.f32.mrb[40].mxu0  ;;  %10622 = vmatpush3.bf16.msra.mxu1 %v11970_v48 }
 0x134   :  { %v865_v12 = vsel %vm737_vm11, %v575_v2, %v801_v9  ;;  %v585_v13 = vadd.f32 %v9637_v11, %v11919_v17  ;;  %v579_v14 = vpop.f32.mrb[41].mxu0  ;;  %10624 = vmatprep.subr.bf16.mxu1 %v12028_v4  ;;  %v12101_v2 = vld [vmem:[#allocation2 + $0xe0] sm:$0xff] }
 0x135   :  { %1078 = vst.msk [vmem:[#allocation2 + $0x2b1] sm:$0xff] %vm890_vm1, %v865_v12  ;;  %v864_v18 = vsel %vm736_vm12, %v570_v7, %v800_v10  ;;  %v580_v19 = vadd.f32 %v11919_v17, %v579_v14  ;;  %v12107_v7 = vld [vmem:[#allocation2 + $0xf0] sm:$0xff]  ;;  %v1528_v12 = vld [vmem:[#allocation2 + $0x240] sm:$0xff] }
 0x136   :  { %9707 = vmatmul.mubr.msk.f32.gmra.mrb[2].mxu1 %vm890_vm1, %v12044_v15  ;;  %1077 = vst.msk [vmem:[#allocation2 + $0x2a1] sm:$0xff] %vm890_vm1, %v864_v18  ;;  %vm739_vm13 = vcmp.gt.f32.partialorder %v585_v13, 0.0  ;;  %v803_v48 = vmul.f32 0.2, %v585_v13 }
 0x137   :  { %9709 = vmatprep.mubr.msk.f32.mxu1 %vm890_vm1, %v12050_v20  ;;  %vm738_vm14 = vcmp.gt.f32.partialorder %v580_v19, 0.0  ;;  %v802_v21 = vmul.f32 0.2, %v580_v19  ;;  %v9640_v22 = vpop.f32.mrb[42].mxu0 }
 0x138   :  { %v867_v23 = vsel %vm739_vm13, %v585_v13, %v803_v48  ;;  %v595_v24 = vadd.f32 %v9640_v22, %v11919_v17  ;;  %v589_v25 = vpop.f32.mrb[43].mxu0  ;;  %v8525_v22 = vld [vmem:[%s13800_s3 + $0x40] sm:$0xff] }
 0x139   :  { %1080 = vst.msk [vmem:[#allocation2 + $0x2e1] sm:$0xff] %vm890_vm1, %v867_v23  ;;  %v866_v27 = vsel %vm738_vm14, %v580_v19, %v802_v21  ;;  %v590_v28 = vadd.f32 %v11919_v17, %v589_v25  ;;  %v12113_v19 = vld [vmem:[#allocation2 + $0x100] sm:$0xff]  ;;  %v8526_v23 = vld [vmem:[%s13800_s3 + $0x48] sm:$0xff] }
 0x13a   :  { %9710 = vmatmul.mubr.msk.f32.gmra.mrb[4].mxu1 %vm890_vm1, %v12056_v26  ;;  %1079 = vst.msk [vmem:[#allocation2 + $0x2d1] sm:$0xff] %vm890_vm1, %v866_v27  ;;  %vm741_vm15 = vcmp.gt.f32.partialorder %v595_v24, 0.0  ;;  %v805_v30 = vmul.f32 0.2, %v595_v24 }
 0x13b   :  { %9712 = vmatprep.mubr.msk.f32.mxu1 %vm890_vm1, %v12062_v29  ;;  %vm740_vm0 = vcmp.gt.f32.partialorder %v590_v28, 0.0  ;;  %v804_v31 = vmul.f32 0.2, %v590_v28  ;;  %v9643_v32 = vpop.f32.mrb[44].mxu0 }
 0x13c   :  { %v869_v34 = vsel %vm741_vm15, %v595_v24, %v805_v30  ;;  %v605_v35 = vadd.f32 %v9643_v32, %v11919_v17  ;;  %v599_v36 = vpop.f32.mrb[45].mxu0 }
 0x13d   :  { %1082 = vst.msk [vmem:[#allocation2 + $0x301] sm:$0xff] %vm890_vm1, %v869_v34  ;;  %v868_v38 = vsel %vm740_vm0, %v590_v28, %v804_v31  ;;  %v600_v39 = vadd.f32 %v11919_v17, %v599_v36  ;;  %v12127_v28 = vld [vmem:[#allocation2 + $0x260] sm:$0xff]  ;;  %v12132_v34 = vld [vmem:[#allocation2 + $0x250] sm:$0xff] }
 0x13e   :  { %9713 = vmatmul.mubr.msk.f32.gmra.mrb[6].mxu1 %vm890_vm1, %v12068_v37  ;;  %1081 = vst.msk [vmem:[#allocation2 + $0x2f1] sm:$0xff] %vm890_vm1, %v868_v38  ;;  %vm743_vm2 = vcmp.gt.f32.partialorder %v605_v35, 0.0  ;;  %v807_v40 = vmul.f32 0.2, %v605_v35 }
 0x13f   :  { %9715 = vmatprep.mubr.msk.f32.mxu1 %vm890_vm1, %v1112_v33  ;;  %vm742_vm3 = vcmp.gt.f32.partialorder %v600_v39, 0.0  ;;  %v806_v41 = vmul.f32 0.2, %v600_v39  ;;  %v9646_v42 = vpop.f32.mrb[46].mxu0  ;;  %v12130_v33 = vpack.c.bf16 %v8526_v23, %v8525_v22 }
 0x140   :  { %v871_v43 = vsel %vm743_vm2, %v605_v35, %v807_v40  ;;  %v615_v44 = vadd.f32 %v9646_v42, %v11919_v17  ;;  %v609_v45 = vpop.f32.mrb[47].mxu0  ;;  %v12179_v23 = vld [vmem:[#allocation2 + $0x2e0] sm:$0xff] }
 0x141   :  { %1084 = vst.msk [vmem:[#allocation2 + $0x321] sm:$0xff] %vm890_vm1, %v871_v43  ;;  %v870_v47 = vsel %vm742_vm3, %v600_v39, %v806_v41  ;;  %v610_v49 = vadd.f32 %v11919_v17, %v609_v45  ;;  %v12142_v41 = vld [vmem:[#allocation2 + $0x280] sm:$0xff]  ;;  %v12146_v45 = vld [vmem:[#allocation2 + $0x270] sm:$0xff] }
 0x142   :  { %9716 = vmatmul.mubr.msk.f32.gmra.mrb[8].mxu1 %vm890_vm1, %v12077_v46  ;;  %1083 = vst.msk [vmem:[#allocation2 + $0x311] sm:$0xff] %vm890_vm1, %v870_v47  ;;  %vm745_vm4 = vcmp.gt.f32.partialorder %v615_v44, 0.0  ;;  %v809_v51 = vmul.f32 0.2, %v615_v44 }
 0x143   :  { %9718 = vmatprep.mubr.msk.f32.mxu1 %vm890_vm1, %v12083_v50  ;;  %vm744_vm5 = vcmp.gt.f32.partialorder %v610_v49, 0.0  ;;  %v808_v52 = vmul.f32 0.2, %v610_v49  ;;  %v9649_v53 = vpop.f32.mrb[48].mxu0 }
 0x144   :  { %v873_v54 = vsel %vm745_vm4, %v615_v44, %v809_v51  ;;  %v625_v55 = vadd.f32 %v9649_v53, %v11919_v17  ;;  %v619_v56 = vpop.f32.mrb[49].mxu0  ;;  %v12155_v53 = vld [vmem:[#allocation2 + $0x2a0] sm:$0xff] }
 0x145   :  { %1086 = vst.msk [vmem:[#allocation2 + $0x341] sm:$0xff] %vm890_vm1, %v873_v54  ;;  %v872_v58 = vsel %vm744_vm5, %v610_v49, %v808_v52  ;;  %v620_v59 = vadd.f32 %v11919_v17, %v619_v56 }
 0x146   :  { %9719 = vmatmul.mubr.msk.f32.gmra.mrb[10].mxu1 %vm890_vm1, %v12089_v57  ;;  %1085 = vst.msk [vmem:[#allocation2 + $0x331] sm:$0xff] %vm890_vm1, %v872_v58  ;;  %vm747_vm6 = vcmp.gt.f32.partialorder %v625_v55, 0.0  ;;  %v811_v61 = vmul.f32 0.2, %v625_v55  ;;  %v12158_v58 = vld [vmem:[#allocation2 + $0x290] sm:$0xff] }
 0x147   :  { %9721 = vmatprep.mubr.msk.f32.mxu1 %vm890_vm1, %v12095_v60  ;;  %vm746_vm7 = vcmp.gt.f32.partialorder %v620_v59, 0.0  ;;  %v810_v62 = vmul.f32 0.2, %v620_v59  ;;  %v9652_v63 = vpop.f32.mrb[50].mxu0 }
 0x148   :  { %v875_v16 = vsel %vm747_vm6, %v625_v55, %v811_v61  ;;  %v635_v0 = vadd.f32 %v9652_v63, %v11919_v17  ;;  %v629_v1 = vpop.f32.mrb[51].mxu0 }
 0x149   :  { %1089 = vst.msk [vmem:[#allocation2 + $0x370] sm:$0xff] %vm890_vm1, %v875_v16  ;;  %v874_v3 = vsel %vm746_vm7, %v620_v59, %v810_v62  ;;  %v630_v6 = vadd.f32 %v11919_v17, %v629_v1  ;;  %vm4722_vm7 = vcmask 261120  }
 0x14a   :  { %9722 = vmatmul.mubr.msk.f32.gmra.mrb[12].mxu1 %vm890_vm1, %v12101_v2  ;;  %1088 = vst.msk [vmem:[#allocation2 + $0x360] sm:$0xff] %vm890_vm1, %v874_v3  ;;  %vm749_vm8 = vcmp.gt.f32.partialorder %v635_v0, 0.0  ;;  %v813_v9 = vmul.f32 0.2, %v635_v0 }
 0x14b   :  { %9724 = vmatprep.mubr.msk.f32.mxu1 %vm890_vm1, %v12107_v7  ;;  %vm748_vm9 = vcmp.gt.f32.partialorder %v630_v6, 0.0  ;;  %v812_v10 = vmul.f32 0.2, %v630_v6  ;;  %v9655_v11 = vpop.f32.mrb[52].mxu0 }
 0x14c   :  { %v877_v13 = vsel %vm749_vm8, %v635_v0, %v813_v9  ;;  %v645_v14 = vadd.f32 %v9655_v11, %v11919_v17  ;;  %v639_v18 = vpop.f32.mrb[53].mxu0  ;;  %v1536_v0 = vld [vmem:[#allocation2 + $0x2d0] sm:$0xff] }
 0x14d   :  { %1091 = vst.msk [vmem:[#allocation2 + $0x390] sm:$0xff] %vm890_vm1, %v877_v13  ;;  %v876_v48 = vsel %vm748_vm9, %v630_v6, %v812_v10  ;;  %v640_v21 = vadd.f32 %v11919_v17, %v639_v18  ;;  %v12168_v9 = vld [vmem:[#allocation2 + $0x2b0] sm:$0xff] }
 0x14e   :  { %9725 = vmatmul.mubr.msk.f32.gmra.mrb[14].mxu1 %vm890_vm1, %v12113_v19  ;;  %1090 = vst.msk [vmem:[#allocation2 + $0x380] sm:$0xff] %vm890_vm1, %v876_v48  ;;  %vm751_vm10 = vcmp.gt.f32.partialorder %v645_v14, 0.0  ;;  %v815_v24 = vmul.f32 0.2, %v645_v14  ;;  %v12176_v18 = vld [vmem:[#allocation2 + $0x2f0] sm:$0xff] }
 0x14f   :  { %9731 = vmatprep.mubr.msk.f32.mxu1 %vm890_vm1, %v1528_v12  ;;  %vm750_vm11 = vcmp.gt.f32.partialorder %v640_v21, 0.0  ;;  %v814_v25 = vmul.f32 0.2, %v640_v21  ;;  %v9658_v27 = vpop.f32.mrb[54].mxu0 }
 0x150   :  { %v879_v30 = vsel %vm751_vm10, %v645_v14, %v815_v24  ;;  %v655_v31 = vadd.f32 %v9658_v27, %v11919_v17  ;;  %v649_v32 = vpop.f32.mrb[55].mxu0 }
 0x151   :  { %1093 = vst.msk [vmem:[#allocation2 + $0x3b0] sm:$0xff] %vm890_vm1, %v879_v30  ;;  %v878_v35 = vsel %vm750_vm11, %v640_v21, %v814_v25  ;;  %v650_v36 = vadd.f32 %v11919_v17, %v649_v32 }
 0x152   :  { %9732 = vmatmul.mubr.msk.f32.vlgmr.msra.gmra.mrb[0].mxu1 %vm890_vm1, %v12132_v34  ;;  %1092 = vst.msk [vmem:[#allocation2 + $0x3a0] sm:$0xff] %vm890_vm1, %v878_v35  ;;  %vm753_vm12 = vcmp.gt.f32.partialorder %v655_v31, 0.0  ;;  %v817_v38 = vmul.f32 0.2, %v655_v31  ;;  %v12190_v35 = vld [vmem:[#allocation2 + $0x300] sm:$0xff] }
 0x153   :  { %9734 = vmatprep.mubr.msk.f32.mxu1 %vm890_vm1, %v12127_v28  ;;  %vm752_vm13 = vcmp.gt.f32.partialorder %v650_v36, 0.0  ;;  %v816_v39 = vmul.f32 0.2, %v650_v36  ;;  %v9661_v40 = vpop.f32.mrb[56].mxu0  ;;  %10626 = vmatpush3.bf16.msra.mxu1 %v12028_v4 }
 0x154   :  { %v881_v42 = vsel %vm753_vm12, %v655_v31, %v817_v38  ;;  %v665_v43 = vadd.f32 %v9661_v40, %v11919_v17  ;;  %v659_v44 = vpop.f32.mrb[57].mxu0  ;;  %10628 = vmatprep.subr.bf16.mxu1 %v12130_v33  ;;  %v12188_v31 = vld [vmem:[#allocation2 + $0x310] sm:$0xff]  ;;  %v12200_v38 = vld [vmem:[#allocation2 + $0x320] sm:$0xff] }
 0x155   :  { %1095 = vst.msk [vmem:[#allocation2 + $0x3d0] sm:$0xff] %vm890_vm1, %v881_v42  ;;  %v880_v47 = vsel %vm752_vm13, %v650_v36, %v816_v39  ;;  %v660_v49 = vadd.f32 %v11919_v17, %v659_v44  ;;  %v12198_v36 = vld [vmem:[#allocation2 + $0x330] sm:$0xff]  ;;  %v1756_v39 = vld [vmem:[#allocation2 + $0x360] sm:$0xff] }
 0x156   :  { %9735 = vmatmul.mubr.msk.f32.gmra.mrb[2].mxu1 %vm890_vm1, %v12146_v45  ;;  %1094 = vst.msk [vmem:[#allocation2 + $0x3c0] sm:$0xff] %vm890_vm1, %v880_v47  ;;  %vm755_vm14 = vcmp.gt.f32.partialorder %v665_v43, 0.0  ;;  %v819_v4 = vmul.f32 0.2, %v665_v43  ;;  %v12206_v40 = vld [vmem:[#allocation2 + $0x340] sm:$0xff]  ;;  %v8543_v42 = vld [vmem:[%s13800_s3 + $0x50] sm:$0xff] }
 0x157   :  { %9737 = vmatprep.mubr.msk.f32.mxu1 %vm890_vm1, %v12142_v41  ;;  %vm754_vm15 = vcmp.gt.f32.partialorder %v660_v49, 0.0  ;;  %v818_v51 = vmul.f32 0.2, %v660_v49  ;;  %v9664_v52 = vpop.f32.mrb[58].mxu0  ;;  %v12217_v44 = vld [vmem:[#allocation2 + $0x380] sm:$0xff] }
 0x158   :  { %v883_v54 = vsel %vm755_vm14, %v665_v43, %v819_v4  ;;  %v675_v55 = vadd.f32 %v9664_v52, %v11919_v17  ;;  %v669_v56 = vpop.f32.mrb[59].mxu0  ;;  %v8544_v43 = vld [vmem:[%s13800_s3 + $0x58] sm:$0xff] }
 0x159   :  { %1097 = vst.msk [vmem:[#allocation2 + $0x400] sm:$0xff] %vm890_vm1, %v883_v54  ;;  %v882_v59 = vsel %vm754_vm15, %v660_v49, %v818_v51  ;;  %v670_v61 = vadd.f32 %v11919_v17, %v669_v56  ;;  %v10631_v47 = vpack.c.bf16 %v8544_v43, %v8543_v42  ;;  %v12219_v49 = vld [vmem:[#allocation2 + $0x370] sm:$0xff]  ;;  %v12226_v4 = vld [vmem:[#allocation2 + $0x3a0] sm:$0xff] }
 0x15a   :  { %9738 = vmatmul.mubr.msk.f32.gmra.mrb[4].mxu1 %vm890_vm1, %v12158_v58  ;;  %1096 = vst.msk [vmem:[#allocation2 + $0x3f0] sm:$0xff] %vm890_vm1, %v882_v59  ;;  %vm757_vm0 = vcmp.gt.f32.partialorder %v675_v55, 0.0  ;;  %v821_v62 = vmul.f32 0.2, %v675_v55  ;;  %v12228_v51 = vld [vmem:[#allocation2 + $0x390] sm:$0xff]  ;;  %v2212_v42 = vld [vmem:[#allocation2 + $0x121] sm:$0xff] }
 0x15b   :  { %9740 = vmatprep.mubr.msk.f32.mxu1 %vm890_vm1, %v12155_v53  ;;  %vm756_vm2 = vcmp.gt.f32.partialorder %v670_v61, 0.0  ;;  %v820_v63 = vmul.f32 0.2, %v670_v61  ;;  %v9667_v16 = vpop.f32.mrb[60].mxu0  ;;  %v12236_v54 = vld [vmem:[#allocation2 + $0x3b0] sm:$0xff]  ;;  %v12335_v43 = vld [vmem:[#allocation2 + $0x101] sm:$0xff] }
 0x15c   :  { %v885_v1 = vsel %vm757_vm0, %v675_v55, %v821_v62  ;;  %v685_v3 = vadd.f32 %v9667_v16, %v11919_v17  ;;  %v679_v6 = vpop.f32.mrb[61].mxu0  ;;  %v12242_v55 = vld [vmem:[#allocation2 + $0x3d0] sm:$0xff]  ;;  %13871 = vst [vmem:[#allocation4_spill] sm:$0xff] %v12335_v43 }
 0x15d   :  { %1099 = vst.msk [vmem:[#allocation2 + $0x420] sm:$0xff] %vm890_vm1, %v885_v1  ;;  %v884_v10 = vsel %vm756_vm2, %v670_v61, %v820_v63  ;;  %v680_v11 = vadd.f32 %v11919_v17, %v679_v6  ;;  %v12234_v52 = vld [vmem:[#allocation2 + $0x3c0] sm:$0xff]  ;;  %v8562_v6 = vld [vmem:[%s13800_s3 + $0x68] sm:$0xff] }
 0x15e   :  { %9741 = vmatmul.mubr.msk.f32.gmra.mrb[6].mxu1 %vm890_vm1, %v12168_v9  ;;  %1098 = vst.msk [vmem:[#allocation2 + $0x410] sm:$0xff] %vm890_vm1, %v884_v10  ;;  %vm759_vm3 = vcmp.gt.f32.partialorder %v685_v3, 0.0  ;;  %v823_v12 = vmul.f32 0.2, %v685_v3 }
 0x15f   :  { %9743 = vmatprep.mubr.msk.f32.mxu1 %vm890_vm1, %v1536_v0  ;;  %vm758_vm4 = vcmp.gt.f32.partialorder %v680_v11, 0.0  ;;  %v822_v13 = vmul.f32 0.2, %v680_v11  ;;  %v9670_v14 = vpop.f32.mrb[62].mxu0  ;;  %v1984_v0 = vld [vmem:[#allocation2 + $0x1] sm:$0xff] }
 0x160   :  { %v887_v48 = vsel %vm759_vm3, %v685_v3, %v823_v12  ;;  %v695_v21 = vadd.f32 %v9670_v14, %v11919_v17  ;;  %v689_v22 = vpop.f32.mrb[63].mxu0  ;;  %v12249_v59 = vld [vmem:[#allocation2 + $0x400] sm:$0xff] }
 0x161   :  { %1101 = vst.msk [vmem:[#allocation2 + $0x440] sm:$0xff] %vm890_vm1, %v887_v48  ;;  %v886_v24 = vsel %vm758_vm4, %v680_v11, %v822_v13  ;;  %v690_v25 = vadd.f32 %v11919_v17, %v689_v22  ;;  %v8561_v3 = vld [vmem:[%s13800_s3 + $0x60] sm:$0xff]  ;;  %v12282_v11 = vld [vmem:[#allocation2 + $0x11] sm:$0xff] }
 0x162   :  { %9744 = vmatmul.mubr.msk.f32.gmra.mrb[8].mxu1 %vm890_vm1, %v12179_v23  ;;  %1100 = vst.msk [vmem:[#allocation2 + $0x430] sm:$0xff] %vm890_vm1, %v886_v24  ;;  %vm761_vm5 = vcmp.gt.f32.partialorder %v695_v21, 0.0  ;;  %v825_v27 = vmul.f32 0.2, %v695_v21  ;;  %v10635_v10 = vpack.c.bf16 %v8562_v6, %v8561_v3  ;;  %v12286_v12 = vld [vmem:[#allocation2 + $0x21] sm:$0xff]  ;;  %v12290_v13 = vld [vmem:[#allocation2 + $0x31] sm:$0xff] }
 0x163   :  { %9746 = vmatprep.mubr.msk.f32.mxu1 %vm890_vm1, %v12176_v18  ;;  %vm760_vm6 = vcmp.gt.f32.partialorder %v690_v25, 0.0  ;;  %v824_v30 = vmul.f32 0.2, %v690_v25  ;;  %v12294_v14 = vld [vmem:[#allocation2 + $0x41] sm:$0xff]  ;;  %v12298_v48 = vld [vmem:[#allocation2 + $0x51] sm:$0xff] }
 0x164   :  { %v889_v32 = vsel %vm761_vm5, %v695_v21, %v825_v27  ;;  %v12257_v62 = vld [vmem:[#allocation2 + $0x420] sm:$0xff]  ;;  %v1992_v22 = vld [vmem:[#allocation2 + $0x91] sm:$0xff] }
 0x165   :  { %1103 = vst.msk [vmem:[#allocation2 + $0x460] sm:$0xff] %vm890_vm1, %v889_v32  ;;  %v888_v17 = vsel %vm760_vm6, %v690_v25, %v824_v30  ;;  %v12247_v56 = vld [vmem:[#allocation2 + $0x410] sm:$0xff]  ;;  %v12302_v21 = vld [vmem:[#allocation2 + $0x61] sm:$0xff] }
 0x166   :  { %9747 = vmatmul.mubr.msk.f32.gmra.mrb[10].mxu1 %vm890_vm1, %v12190_v35  ;;  %1102 = vst.msk [vmem:[#allocation2 + $0x450] sm:$0xff] %vm890_vm1, %v888_v17  ;;  %v12306_v24 = vld [vmem:[#allocation2 + $0x71] sm:$0xff]  ;;  %v12311_v25 = vld [vmem:[#allocation2 + $0xa1] sm:$0xff] }
 0x167   :  { %9749 = vmatprep.mubr.msk.f32.mxu1 %vm890_vm1, %v12188_v31  ;;  %v12315_v27 = vld [vmem:[#allocation2 + $0xb1] sm:$0xff]  ;;  %v12319_v30 = vld [vmem:[#allocation2 + $0xc1] sm:$0xff] }
 0x168   :  { %v12265_v16 = vld [vmem:[#allocation2 + $0x440] sm:$0xff]  ;;  %v12323_v32 = vld [vmem:[#allocation2 + $0xd1] sm:$0xff] }
 0x169   :  { %v12255_v61 = vld [vmem:[#allocation2 + $0x430] sm:$0xff]  ;;  %v12327_v17 = vld [vmem:[#allocation2 + $0xe1] sm:$0xff] }
 0x16a   :  { %9750 = vmatmul.mubr.msk.f32.gmra.mrb[12].mxu1 %vm890_vm1, %v12200_v38  ;;  %v12346_v3 = vld [vmem:[#allocation2 + $0x131] sm:$0xff]  ;;  %v12350_v6 = vld [vmem:[#allocation2 + $0x141] sm:$0xff] }
 0x16b   :  { %9752 = vmatprep.mubr.msk.f32.mxu1 %vm890_vm1, %v12198_v36  ;;  %13872 = vst [vmem:[#allocation5_spill] sm:$0xff] %v12346_v3  ;;  %13873 = vst [vmem:[#allocation6_spill] sm:$0xff] %v12350_v6 }
 0x16c   :  { %v12271_v1 = vld [vmem:[#allocation2 + $0x460] sm:$0xff] }
 0x16d   :  { %v12263_v63 = vld [vmem:[#allocation2 + $0x450] sm:$0xff] }
 0x16e   :  { %9753 = vmatmul.mubr.msk.f32.gmra.mrb[14].mxu1 %vm890_vm1, %v12206_v40 }
 0x16f   :  { %9759 = vmatprep.mubr.msk.f32.mxu1 %vm890_vm1, %v1756_v39  ;;  %v12331_v39 = vld [vmem:[#allocation2 + $0xf1] sm:$0xff] }
 0x172   :  { %9760 = vmatmul.mubr.msk.f32.vlgmr.msra.gmra.mrb[0].mxu1 %vm890_vm1, %v12219_v49 }
 0x173   :  { %9762 = vmatprep.mubr.msk.f32.mxu1 %vm890_vm1, %v12217_v44  ;;  %10630 = vmatpush3.bf16.msra.mxu1 %v12130_v33  ;;  %v1764_v33 = vld [vmem:[#allocation2 + $0x3f0] sm:$0xff] }
 0x174   :  { %10632 = vmatprep.subr.bf16.mxu1 %v10631_v47 }
 0x176   :  { %9763 = vmatmul.mubr.msk.f32.gmra.mrb[2].mxu1 %vm890_vm1, %v12228_v51 }
 0x177   :  { %9765 = vmatprep.mubr.msk.f32.mxu1 %vm890_vm1, %v12226_v4 }
 0x17a   :  { %9766 = vmatmul.mubr.msk.f32.gmra.mrb[4].mxu1 %vm890_vm1, %v12236_v54 }
 0x17b   :  { %9768 = vmatprep.mubr.msk.f32.mxu1 %vm890_vm1, %v12234_v52 }
 0x17e   :  { %9769 = vmatmul.mubr.msk.f32.gmra.mrb[6].mxu1 %vm890_vm1, %v12242_v55 }
 0x17f   :  { %9771 = vmatprep.mubr.msk.f32.mxu1 %vm890_vm1, %v1764_v33  ;;  %v8580_v33 = vld [vmem:[%s13800_s3 + $0x78] sm:$0xff] }
 0x182   :  { %9772 = vmatmul.mubr.msk.f32.gmra.mrb[8].mxu1 %vm890_vm1, %v12249_v59 }
 0x183   :  { %9774 = vmatprep.mubr.msk.f32.mxu1 %vm890_vm1, %v12247_v56 }
 0x186   :  { %9775 = vmatmul.mubr.msk.f32.gmra.mrb[10].mxu1 %vm890_vm1, %v12257_v62 }
 0x187   :  { %9777 = vmatprep.mubr.msk.f32.mxu1 %vm890_vm1, %v12255_v61 }
 0x18a   :  { %9778 = vmatmul.mubr.msk.f32.gmra.mrb[12].mxu1 %vm890_vm1, %v12265_v16 }
 0x18b   :  { %9780 = vmatprep.mubr.msk.f32.mxu1 %vm890_vm1, %v12263_v63 }
 0x18e   :  { %9781 = vmatmul.mubr.msk.f32.gmra.mrb[14].mxu1 %vm890_vm1, %v12271_v1 }
 0x18f   :  { %9787 = vmatprep.mubr.msk.f32.mxu1 %vm890_vm1, %v1984_v0 }
 0x192   :  { %9788 = vmatmul.mubr.msk.f32.vlgmr.msra.gmra.mrb[0].mxu1 %vm890_vm1, %v12282_v11 }
 0x193   :  { %9790 = vmatprep.mubr.msk.f32.mxu1 %vm890_vm1, %v12286_v12  ;;  %10634 = vmatpush3.bf16.msra.mxu1 %v10631_v47  ;;  %v8579_v47 = vld [vmem:[%s13800_s3 + $0x70] sm:$0xff] }
 0x194   :  { %10636 = vmatprep.subr.bf16.mxu1 %v10635_v10  ;;  %v10639_v0 = vpack.c.bf16 %v8580_v33, %v8579_v47  ;;  %v12366_v47 = vld [vmem:[#allocation2 + $0x181] sm:$0xff]  ;;  %v12370_v33 = vld [vmem:[#allocation2 + $0x191] sm:$0xff] }
 0x195   :  { %13877 = vst [vmem:[#allocation10_spill] sm:$0xff] %v12366_v47  ;;  %13878 = vst [vmem:[#allocation11_spill] sm:$0xff] %v12370_v33 }
 0x196   :  { %9791 = vmatmul.mubr.msk.f32.gmra.mrb[2].mxu1 %vm890_vm1, %v12290_v13 }
 0x197   :  { %9793 = vmatprep.mubr.msk.f32.mxu1 %vm890_vm1, %v12294_v14 }
 0x19a   :  { %9794 = vmatmul.mubr.msk.f32.gmra.mrb[4].mxu1 %vm890_vm1, %v12298_v48 }
 0x19b   :  { %9796 = vmatprep.mubr.msk.f32.mxu1 %vm890_vm1, %v12302_v21 }
 0x19e   :  { %9797 = vmatmul.mubr.msk.f32.gmra.mrb[6].mxu1 %vm890_vm1, %v12306_v24 }
 0x19f   :  { %9799 = vmatprep.mubr.msk.f32.mxu1 %vm890_vm1, %v1992_v22  ;;  %v12354_v22 = vld [vmem:[#allocation2 + $0x151] sm:$0xff] }
 0x1a0   :  { %13874 = vst [vmem:[#allocation7_spill] sm:$0xff] %v12354_v22 }
 0x1a2   :  { %9800 = vmatmul.mubr.msk.f32.gmra.mrb[8].mxu1 %vm890_vm1, %v12311_v25 }
 0x1a3   :  { %9802 = vmatprep.mubr.msk.f32.mxu1 %vm890_vm1, %v12315_v27 }
 0x1a6   :  { %9803 = vmatmul.mubr.msk.f32.gmra.mrb[10].mxu1 %vm890_vm1, %v12319_v30 }
 0x1a7   :  { %9805 = vmatprep.mubr.msk.f32.mxu1 %vm890_vm1, %v12323_v32 }
 0x1aa   :  { %9806 = vmatmul.mubr.msk.f32.gmra.mrb[12].mxu1 %vm890_vm1, %v12327_v17 }
 0x1ab   :  { %9808 = vmatprep.mubr.msk.f32.mxu1 %vm890_vm1, %v12331_v39 }
 0x1ae   :  { %9809 = vmatmul.mubr.msk.f32.gmra.mrb[14].mxu1 %vm890_vm1, %v12335_v43  ;;  %v12358_v43 = vld [vmem:[#allocation2 + $0x161] sm:$0xff] }
 0x1af   :  { %9815 = vmatprep.mubr.msk.f32.mxu1 %vm890_vm1, %v2212_v42  ;;  %13875 = vst [vmem:[#allocation8_spill] sm:$0xff] %v12358_v43  ;;  %v12362_v42 = vld [vmem:[#allocation2 + $0x171] sm:$0xff] }
 0x1b0   :  { %13876 = vst [vmem:[#allocation9_spill] sm:$0xff] %v12362_v42 }
 0x1b2   :  { %9816 = vmatmul.mubr.msk.f32.vlgmr.msra.gmra.mrb[0].mxu1 %vm890_vm1, %v12346_v3  ;;  %v12418_v3 = vld [vmem:[#allocation2 + $0x271] sm:$0xff] }
 0x1b3   :  { %9818 = vmatprep.mubr.msk.f32.mxu1 %vm890_vm1, %v12350_v6  ;;  %10638 = vmatpush3.bf16.msra.mxu1 %v10635_v10  ;;  %v2220_v10 = vld [vmem:[#allocation2 + $0x1b1] sm:$0xff]  ;;  %13888 = vst [vmem:[#allocation21_spill] sm:$0xff] %v12418_v3 }
 0x1b4   :  { %10640 = vmatprep.subr.bf16.mxu1 %v10639_v0  ;;  %v12410_v6 = vld [vmem:[#allocation2 + $0x251] sm:$0xff] }
 0x1b5   :  { %13886 = vst [vmem:[#allocation19_spill] sm:$0xff] %v12410_v6 }
 0x1b6   :  { %9819 = vmatmul.mubr.msk.f32.gmra.mrb[2].mxu1 %vm890_vm1, %v12354_v22  ;;  %v12375_v22 = vld [vmem:[#allocation2 + $0x1c1] sm:$0xff] }
 0x1b7   :  { %9821 = vmatprep.mubr.msk.f32.mxu1 %vm890_vm1, %v12358_v43  ;;  %13879 = vst [vmem:[#allocation12_spill] sm:$0xff] %v12375_v22  ;;  %v12379_v43 = vld [vmem:[#allocation2 + $0x1d1] sm:$0xff] }
 0x1b8   :  { %13880 = vst [vmem:[#allocation13_spill] sm:$0xff] %v12379_v43 }
 0x1ba   :  { %9822 = vmatmul.mubr.msk.f32.gmra.mrb[4].mxu1 %vm890_vm1, %v12362_v42  ;;  %v12383_v42 = vld [vmem:[#allocation2 + $0x1e1] sm:$0xff] }
 0x1bb   :  { %9824 = vmatprep.mubr.msk.f32.mxu1 %vm890_vm1, %v12366_v47  ;;  %13881 = vst [vmem:[#allocation14_spill] sm:$0xff] %v12383_v42  ;;  %v12387_v47 = vld [vmem:[#allocation2 + $0x1f1] sm:$0xff] }
 0x1bc   :  { %13882 = vst [vmem:[#allocation15_spill] sm:$0xff] %v12387_v47 }
 0x1be   :  { %9825 = vmatmul.mubr.msk.f32.gmra.mrb[6].mxu1 %vm890_vm1, %v12370_v33  ;;  %v2440_v33 = vld [vmem:[#allocation2 + $0x241] sm:$0xff] }
 0x1bf   :  { %9827 = vmatprep.mubr.msk.f32.mxu1 %vm890_vm1, %v2220_v10  ;;  %v12391_v10 = vld [vmem:[#allocation2 + $0x201] sm:$0xff] }
 0x1c0   :  { %13883 = vst [vmem:[#allocation16_spill] sm:$0xff] %v12391_v10 }
 0x1c2   :  { %9828 = vmatmul.mubr.msk.f32.gmra.mrb[8].mxu1 %vm890_vm1, %v12375_v22  ;;  %v12395_v22 = vld [vmem:[#allocation2 + $0x211] sm:$0xff] }
 0x1c3   :  { %9830 = vmatprep.mubr.msk.f32.mxu1 %vm890_vm1, %v12379_v43  ;;  %13884 = vst [vmem:[#allocation17_spill] sm:$0xff] %v12395_v22  ;;  %v12399_v43 = vld [vmem:[#allocation2 + $0x221] sm:$0xff] }
 0x1c4   :  { %13885 = vst [vmem:[#allocation18_spill] sm:$0xff] %v12399_v43 }
 0x1c6   :  { %9831 = vmatmul.mubr.msk.f32.gmra.mrb[10].mxu1 %vm890_vm1, %v12383_v42  ;;  %v8597_v42 = vld [vmem:[%s13800_s3 + $0x80] sm:$0xff] }
 0x1c7   :  { %9833 = vmatprep.mubr.msk.f32.mxu1 %vm890_vm1, %v12387_v47  ;;  %v8598_v47 = vld [vmem:[%s13800_s3 + $0x88] sm:$0xff] }
 0x1ca   :  { %9834 = vmatmul.mubr.msk.f32.gmra.mrb[12].mxu1 %vm890_vm1, %v12391_v10  ;;  %v10643_v10 = vpack.c.bf16 %v8598_v47, %v8597_v42  ;;  %v12426_v42 = vld [vmem:[#allocation2 + $0x291] sm:$0xff]  ;;  %v12430_v47 = vld [vmem:[#allocation2 + $0x2a1] sm:$0xff] }
 0x1cb   :  { %9836 = vmatprep.mubr.msk.f32.mxu1 %vm890_vm1, %v12395_v22  ;;  %v12414_v22 = vld [vmem:[#allocation2 + $0x261] sm:$0xff]  ;;  %13890 = vst [vmem:[#allocation23_spill] sm:$0xff] %v12426_v42  ;;  %13891 = vst [vmem:[#allocation24_spill] sm:$0xff] %v12430_v47 }
 0x1cc   :  { %13887 = vst [vmem:[#allocation20_spill] sm:$0xff] %v12414_v22 }
 0x1ce   :  { %9837 = vmatmul.mubr.msk.f32.gmra.mrb[14].mxu1 %vm890_vm1, %v12399_v43  ;;  %v12422_v43 = vld [vmem:[#allocation2 + $0x281] sm:$0xff] }
 0x1cf   :  { %9843 = vmatprep.mubr.msk.f32.mxu1 %vm890_vm1, %v2440_v33  ;;  %13889 = vst [vmem:[#allocation22_spill] sm:$0xff] %v12422_v43  ;;  %v2448_v33 = vld [vmem:[#allocation2 + $0x2d1] sm:$0xff] }
 0x1d2   :  { %9844 = vmatmul.mubr.msk.f32.vlgmr.msra.gmra.mrb[0].mxu1 %vm890_vm1, %v12410_v6  ;;  %v12482_v6 = vld [vmem:[#allocation2 + $0x391] sm:$0xff] }
 0x1d3   :  { %9846 = vmatprep.mubr.msk.f32.mxu1 %vm890_vm1, %v12414_v22  ;;  %10642 = vmatpush3.bf16.msra.mxu1 %v10639_v0  ;;  %v12434_v0 = vld [vmem:[#allocation2 + $0x2b1] sm:$0xff]  ;;  %13900 = vst [vmem:[#allocation33_spill] sm:$0xff] %v12482_v6 }
 0x1d4   :  { %10644 = vmatprep.subr.bf16.mxu1 %v10643_v10  ;;  %13892 = vst [vmem:[#allocation25_spill] sm:$0xff] %v12434_v0  ;;  %v12474_v22 = vld [vmem:[#allocation2 + $0x371] sm:$0xff] }
 0x1d6   :  { %9847 = vmatmul.mubr.msk.f32.gmra.mrb[2].mxu1 %vm890_vm1, %v12418_v3  ;;  %v12439_v3 = vld [vmem:[#allocation2 + $0x2e1] sm:$0xff] }
 0x1d7   :  { %9849 = vmatprep.mubr.msk.f32.mxu1 %vm890_vm1, %v12422_v43  ;;  %13893 = vst [vmem:[#allocation26_spill] sm:$0xff] %v12439_v3  ;;  %v12443_v43 = vld [vmem:[#allocation2 + $0x2f1] sm:$0xff] }
 0x1d8   :  { %13894 = vst [vmem:[#allocation27_spill] sm:$0xff] %v12443_v43 }
 0x1da   :  { %9850 = vmatmul.mubr.msk.f32.gmra.mrb[4].mxu1 %vm890_vm1, %v12426_v42  ;;  %v12447_v42 = vld [vmem:[#allocation2 + $0x301] sm:$0xff] }
 0x1db   :  { %9852 = vmatprep.mubr.msk.f32.mxu1 %vm890_vm1, %v12430_v47  ;;  %13895 = vst [vmem:[#allocation28_spill] sm:$0xff] %v12447_v42  ;;  %v12451_v47 = vld [vmem:[#allocation2 + $0x311] sm:$0xff] }
 0x1dc   :  { %13896 = vst [vmem:[#allocation29_spill] sm:$0xff] %v12451_v47 }
 0x1de   :  { %9853 = vmatmul.mubr.msk.f32.gmra.mrb[6].mxu1 %vm890_vm1, %v12434_v0  ;;  %v2668_v0 = vld [vmem:[#allocation2 + $0x361] sm:$0xff] }
 0x1df   :  { %9855 = vmatprep.mubr.msk.f32.mxu1 %vm890_vm1, %v2448_v33  ;;  %v12455_v33 = vld [vmem:[#allocation2 + $0x321] sm:$0xff] }
 0x1e0   :  { %13897 = vst [vmem:[#allocation30_spill] sm:$0xff] %v12455_v33 }
 0x1e2   :  { %9856 = vmatmul.mubr.msk.f32.gmra.mrb[8].mxu1 %vm890_vm1, %v12439_v3  ;;  %v12459_v3 = vld [vmem:[#allocation2 + $0x331] sm:$0xff] }
 0x1e3   :  { %9858 = vmatprep.mubr.msk.f32.mxu1 %vm890_vm1, %v12443_v43  ;;  %13898 = vst [vmem:[#allocation31_spill] sm:$0xff] %v12459_v3  ;;  %v12463_v43 = vld [vmem:[#allocation2 + $0x341] sm:$0xff] }
 0x1e4   :  { %13899 = vst [vmem:[#allocation32_spill] sm:$0xff] %v12463_v43 }
 0x1e6   :  { %9859 = vmatmul.mubr.msk.f32.gmra.mrb[10].mxu1 %vm890_vm1, %v12447_v42  ;;  %v8615_v42 = vld [vmem:[%s13800_s3 + $0x90] sm:$0xff] }
 0x1e7   :  { %9861 = vmatprep.mubr.msk.f32.mxu1 %vm890_vm1, %v12451_v47  ;;  %v8616_v47 = vld [vmem:[%s13800_s3 + $0x98] sm:$0xff] }
 0x1ea   :  { %9862 = vmatmul.mubr.msk.f32.gmra.mrb[12].mxu1 %vm890_vm1, %v12455_v33  ;;  %v10647_v33 = vpack.c.bf16 %v8616_v47, %v8615_v42  ;;  %v12490_v42 = vld [vmem:[#allocation2 + $0x3b1] sm:$0xff]  ;;  %v12494_v47 = vld [vmem:[#allocation2 + $0x3c1] sm:$0xff] }
 0x1eb   :  { %9864 = vmatprep.mubr.msk.f32.mxu1 %vm890_vm1, %v12459_v3  ;;  %v12478_v3 = vld [vmem:[#allocation2 + $0x381] sm:$0xff]  ;;  %13902 = vst [vmem:[#allocation35_spill] sm:$0xff] %v12490_v42  ;;  %13903 = vst [vmem:[#allocation36_spill] sm:$0xff] %v12494_v47 }
 0x1ee   :  { %9865 = vmatmul.mubr.msk.f32.gmra.mrb[14].mxu1 %vm890_vm1, %v12463_v43  ;;  %v12486_v43 = vld [vmem:[#allocation2 + $0x3a1] sm:$0xff] }
 0x1ef   :  { %9871 = vmatprep.mubr.msk.f32.mxu1 %vm890_vm1, %v2668_v0  ;;  %13901 = vst [vmem:[#allocation34_spill] sm:$0xff] %v12486_v43  ;;  %v2676_v0 = vld [vmem:[#allocation2 + $0x3f1] sm:$0xff] }
 0x1f2   :  { %9872 = vmatmul.mubr.msk.f32.vlgmr.msra.gmra.mrb[0].mxu1 %vm890_vm1, %v12474_v22 }
 0x1f3   :  { %9874 = vmatprep.mubr.msk.f32.mxu1 %vm890_vm1, %v12478_v3  ;;  %10646 = vmatpush3.bf16.msra.mxu1 %v10643_v10  ;;  %v12498_v10 = vld [vmem:[#allocation2 + $0x3d1] sm:$0xff] }
 0x1f4   :  { %10648 = vmatprep.subr.bf16.mxu1 %v10647_v33 }
 0x1f6   :  { %9875 = vmatmul.mubr.msk.f32.gmra.mrb[2].mxu1 %vm890_vm1, %v12482_v6  ;;  %v12503_v6 = vld [vmem:[#allocation2 + $0x401] sm:$0xff] }
 0x1f7   :  { %9877 = vmatprep.mubr.msk.f32.mxu1 %vm890_vm1, %v12486_v43  ;;  %13904 = vst [vmem:[#allocation37_spill] sm:$0xff] %v12503_v6  ;;  %v12507_v43 = vld [vmem:[#allocation2 + $0x411] sm:$0xff] }
 0x1f8   :  { %13905 = vst [vmem:[#allocation38_spill] sm:$0xff] %v12507_v43 }
 0x1fa   :  { %9878 = vmatmul.mubr.msk.f32.gmra.mrb[4].mxu1 %vm890_vm1, %v12490_v42  ;;  %v12511_v42 = vld [vmem:[#allocation2 + $0x421] sm:$0xff] }
 0x1fb   :  { %9880 = vmatprep.mubr.msk.f32.mxu1 %vm890_vm1, %v12494_v47  ;;  %13906 = vst [vmem:[#allocation39_spill] sm:$0xff] %v12511_v42  ;;  %v12515_v47 = vld [vmem:[#allocation2 + $0x431] sm:$0xff] }
 0x1fc   :  { %13907 = vst [vmem:[#allocation40_spill] sm:$0xff] %v12515_v47 }
 0x1fe   :  { %9881 = vmatmul.mubr.msk.f32.gmra.mrb[6].mxu1 %vm890_vm1, %v12498_v10 }
 0x1ff   :  { %9883 = vmatprep.mubr.msk.f32.mxu1 %vm890_vm1, %v2676_v0  ;;  %v12519_v0 = vld [vmem:[#allocation2 + $0x441] sm:$0xff] }
 0x200   :  { %13908 = vst [vmem:[#allocation41_spill] sm:$0xff] %v12519_v0 }
 0x202   :  { %9884 = vmatmul.mubr.msk.f32.gmra.mrb[8].mxu1 %vm890_vm1, %v12503_v6  ;;  %v12523_v6 = vld [vmem:[#allocation2 + $0x451] sm:$0xff] }
 0x203   :  { %9886 = vmatprep.mubr.msk.f32.mxu1 %vm890_vm1, %v12507_v43  ;;  %v12527_v43 = vld [vmem:[#allocation2 + $0x461] sm:$0xff] }
 0x206   :  { %9887 = vmatmul.mubr.msk.f32.gmra.mrb[10].mxu1 %vm890_vm1, %v12511_v42  ;;  %v8633_v42 = vld [vmem:[%s13800_s3 + $0xa0] sm:$0xff] }
 0x207   :  { %9889 = vmatprep.mubr.msk.f32.mxu1 %vm890_vm1, %v12515_v47  ;;  %v8634_v47 = vld [vmem:[%s13800_s3 + $0xa8] sm:$0xff] }
 0x20a   :  { %9890 = vmatmul.mubr.msk.f32.gmra.mrb[12].mxu1 %vm890_vm1, %v12519_v0  ;;  %v10651_v0 = vpack.c.bf16 %v8634_v47, %v8633_v42  ;;  %v3134_v42 = vld [vmem:[#allocation2 + $0x1e0] sm:$0xff]  ;;  %v3135_v47 = vld [vmem:[#allocation2 + $0x1f0] sm:$0xff] }
 0x20b   :  { %9892 = vmatprep.mubr.msk.f32.mxu1 %vm890_vm1, %v12523_v6 }
 0x20e   :  { %9893 = vmatmul.mubr.msk.f32.gmra.mrb[14].mxu1 %vm890_vm1, %v12527_v43 }
 0x20f   :  { %9899 = vmatprep.mubr.msk.f32.mxu1 %vm890_vm1, %v12030_v5  ;;  %v2903_v5 = vld [vmem:[#allocation2 + $0x80] sm:$0xff] }
 0x212   :  { %9900 = vmatmul.mubr.msk.f32.vlgmr.msra.gmra.mrb[0].mxu1 %vm890_vm1, %v12036_v8  ;;  %v2911_v8 = vld [vmem:[#allocation2 + $0x110] sm:$0xff] }
 0x213   :  { %9902 = vmatprep.mubr.msk.f32.mxu1 %vm890_vm1, %v12044_v15  ;;  %10650 = vmatpush3.bf16.msra.mxu1 %v10647_v33  ;;  %v8651_v15 = vld [vmem:[%s13800_s3 + $0xb0] sm:$0xff] }
 0x214   :  { %10652 = vmatprep.subr.bf16.mxu1 %v10651_v0  ;;  %v3133_v33 = vld [vmem:[#allocation2 + $0x1d0] sm:$0xff] }
 0x216   :  { %9903 = vmatmul.mubr.msk.f32.gmra.mrb[2].mxu1 %vm890_vm1, %v12050_v20  ;;  %v8652_v20 = vld [vmem:[%s13800_s3 + $0xb8] sm:$0xff] }
 0x217   :  { %9905 = vmatprep.mubr.msk.f32.mxu1 %vm890_vm1, %v12056_v26  ;;  %v3124_v26 = vld [vmem:[#allocation2 + $0x130] sm:$0xff] }
 0x21a   :  { %9906 = vmatmul.mubr.msk.f32.gmra.mrb[4].mxu1 %vm890_vm1, %v12062_v29  ;;  %v10655_v29 = vpack.c.bf16 %v8652_v20, %v8651_v15  ;;  %v3139_v15 = vld [vmem:[#allocation2 + $0x230] sm:$0xff]  ;;  %v8669_v20 = vld [vmem:[%s13800_s3 + $0xc0] sm:$0xff] }
 0x21b   :  { %9908 = vmatprep.mubr.msk.f32.mxu1 %vm890_vm1, %v12068_v37  ;;  %v3125_v37 = vld [vmem:[#allocation2 + $0x140] sm:$0xff] }
 0x21e   :  { %9909 = vmatmul.mubr.msk.f32.gmra.mrb[6].mxu1 %vm890_vm1, %v2903_v5  ;;  %v3137_v5 = vld [vmem:[#allocation2 + $0x210] sm:$0xff] }
 0x21f   :  { %9911 = vmatprep.mubr.msk.f32.mxu1 %vm890_vm1, %v12077_v46  ;;  %v3126_v46 = vld [vmem:[#allocation2 + $0x150] sm:$0xff] }
 0x222   :  { %9912 = vmatmul.mubr.msk.f32.gmra.mrb[8].mxu1 %vm890_vm1, %v12083_v50  ;;  %v3127_v50 = vld [vmem:[#allocation2 + $0x160] sm:$0xff] }
 0x223   :  { %9914 = vmatprep.mubr.msk.f32.mxu1 %vm890_vm1, %v12089_v57  ;;  %v3128_v57 = vld [vmem:[#allocation2 + $0x170] sm:$0xff] }
 0x226   :  { %9915 = vmatmul.mubr.msk.f32.gmra.mrb[10].mxu1 %vm890_vm1, %v12095_v60  ;;  %v3129_v60 = vld [vmem:[#allocation2 + $0x180] sm:$0xff] }
 0x227   :  { %9917 = vmatprep.mubr.msk.f32.mxu1 %vm890_vm1, %v12101_v2  ;;  %v3130_v2 = vld [vmem:[#allocation2 + $0x190] sm:$0xff] }
 0x22a   :  { %9918 = vmatmul.mubr.msk.f32.gmra.mrb[12].mxu1 %vm890_vm1, %v12107_v7  ;;  %v3131_v7 = vld [vmem:[#allocation2 + $0x1a0] sm:$0xff] }
 0x22b   :  { %9920 = vmatprep.mubr.msk.f32.mxu1 %vm890_vm1, %v12113_v19  ;;  %v3132_v19 = vld [vmem:[#allocation2 + $0x1c0] sm:$0xff] }
 0x22e   :  { %9921 = vmatmul.mubr.msk.f32.gmra.mrb[14].mxu1 %vm890_vm1, %v2911_v8  ;;  %v3138_v8 = vld [vmem:[#allocation2 + $0x220] sm:$0xff] }
 0x22f   :  { %9927 = vmatprep.mubr.msk.f32.mxu1 %vm890_vm1, %v3124_v26  ;;  %v8670_v26 = vld [vmem:[%s13800_s3 + $0xc8] sm:$0xff] }
 0x232   :  { %9928 = vmatmul.mubr.msk.f32.vlgmr.msra.gmra.mrb[0].mxu1 %vm890_vm1, %v3125_v37  ;;  %v10659_v37 = vpack.c.bf16 %v8670_v26, %v8669_v20 }
 0x233   :  { %9930 = vmatprep.mubr.msk.f32.mxu1 %vm890_vm1, %v3126_v46  ;;  %10654 = vmatpush3.bf16.msra.mxu1 %v10651_v0  ;;  %v3136_v0 = vld [vmem:[#allocation2 + $0x200] sm:$0xff] }
 0x234   :  { %10656 = vmatprep.subr.bf16.mxu1 %v10655_v29  ;;  %v13933_v46 = vld [vmem:[#allocation28_spill] sm:$0xff] }
 0x236   :  { %9931 = vmatmul.mubr.msk.f32.gmra.mrb[2].mxu1 %vm890_vm1, %v3127_v50  ;;  %v13934_v50 = vld [vmem:[#allocation29_spill] sm:$0xff] }
 0x237   :  { %9933 = vmatprep.mubr.msk.f32.mxu1 %vm890_vm1, %v3128_v57  ;;  %v13935_v57 = vld [vmem:[#allocation30_spill] sm:$0xff] }
 0x23a   :  { %9934 = vmatmul.mubr.msk.f32.gmra.mrb[4].mxu1 %vm890_vm1, %v3129_v60  ;;  %v13936_v60 = vld [vmem:[#allocation31_spill] sm:$0xff] }
 0x23b   :  { %9936 = vmatprep.mubr.msk.f32.mxu1 %vm890_vm1, %v3130_v2  ;;  %v13937_v2 = vld [vmem:[#allocation32_spill] sm:$0xff] }
 0x23e   :  { %9937 = vmatmul.mubr.msk.f32.gmra.mrb[6].mxu1 %vm890_vm1, %v3131_v7  ;;  %v4281_v7 = vld [vmem:[#allocation2 + $0x351] sm:$0xff] }
 0x23f   :  { %9939 = vmatprep.mubr.msk.f32.mxu1 %vm890_vm1, %v3132_v19  ;;  %v13938_v19 = vld [vmem:[#allocation33_spill] sm:$0xff] }
 0x242   :  { %9940 = vmatmul.mubr.msk.f32.gmra.mrb[8].mxu1 %vm890_vm1, %v3133_v33  ;;  %v13939_v33 = vld [vmem:[#allocation34_spill] sm:$0xff] }
 0x243   :  { %9942 = vmatprep.mubr.msk.f32.mxu1 %vm890_vm1, %v3134_v42  ;;  %v13940_v42 = vld [vmem:[#allocation35_spill] sm:$0xff] }
 0x246   :  { %9943 = vmatmul.mubr.msk.f32.gmra.mrb[10].mxu1 %vm890_vm1, %v3135_v47  ;;  %v13941_v47 = vld [vmem:[#allocation36_spill] sm:$0xff] }
 0x247   :  { %9945 = vmatprep.mubr.msk.f32.mxu1 %vm890_vm1, %v3136_v0  ;;  %v4501_v0 = vld [vmem:[#allocation2 + $0x3e1] sm:$0xff] }
 0x24a   :  { %9946 = vmatmul.mubr.msk.f32.gmra.mrb[12].mxu1 %vm890_vm1, %v3137_v5  ;;  %v13944_v5 = vld [vmem:[#allocation39_spill] sm:$0xff] }
 0x24b   :  { %9948 = vmatprep.mubr.msk.f32.mxu1 %vm890_vm1, %v3138_v8  ;;  %v13945_v8 = vld [vmem:[#allocation40_spill] sm:$0xff] }
 0x24e   :  { %9949 = vmatmul.mubr.msk.f32.gmra.mrb[14].mxu1 %vm890_vm1, %v3139_v15  ;;  %v13946_v15 = vld [vmem:[#allocation41_spill] sm:$0xff] }
 0x24f   :  { %9955 = vmatprep.mubr.msk.f32.mxu1 %vm890_vm1, %v12132_v34  ;;  %v3360_v34 = vld [vmem:[#allocation2 + $0x2c0] sm:$0xff] }
 0x252   :  { %9956 = vmatmul.mubr.msk.f32.vlgmr.msra.gmra.mrb[0].mxu1 %vm890_vm1, %v12127_v28  ;;  %v3368_v28 = vld [vmem:[#allocation2 + $0x350] sm:$0xff] }
 0x253   :  { %9958 = vmatprep.mubr.msk.f32.mxu1 %vm890_vm1, %v12146_v45  ;;  %10658 = vmatpush3.bf16.msra.mxu1 %v10655_v29  ;;  %v8688_v45 = vld [vmem:[%s13800_s3 + $0xd8] sm:$0xff] }
 0x254   :  { %10660 = vmatprep.subr.bf16.mxu1 %v10659_v37  ;;  %v13932_v29 = vld [vmem:[#allocation27_spill] sm:$0xff] }
 0x256   :  { %9959 = vmatmul.mubr.msk.f32.gmra.mrb[2].mxu1 %vm890_vm1, %v12142_v41  ;;  %v8687_v41 = vld [vmem:[%s13800_s3 + $0xd0] sm:$0xff] }
 0x257   :  { %9961 = vmatprep.mubr.msk.f32.mxu1 %vm890_vm1, %v12158_v58  ;;  %v3589_v58 = vld [vmem:[#allocation2 + $0x3e0] sm:$0xff] }
 0x25a   :  { %9962 = vmatmul.mubr.msk.f32.gmra.mrb[4].mxu1 %vm890_vm1, %v12155_v53  ;;  %v10663_v53 = vpack.c.bf16 %v8688_v45, %v8687_v41 }
 0x25b   :  { %9964 = vmatprep.mubr.msk.f32.mxu1 %vm890_vm1, %v12168_v9  ;;  %v3597_v9 = vld [vmem:[#allocation2 + $0x470] sm:$0xff] }
 0x25e   :  { %9965 = vmatmul.mubr.msk.f32.gmra.mrb[6].mxu1 %vm890_vm1, %v3360_v34 }
 0x25f   :  { %9967 = vmatprep.mubr.msk.f32.mxu1 %vm890_vm1, %v12179_v23  ;;  %v8706_v23 = vld [vmem:[%s13800_s3 + $0xe8] sm:$0xff] }
 0x262   :  { %9968 = vmatmul.mubr.msk.f32.gmra.mrb[8].mxu1 %vm890_vm1, %v12176_v18  ;;  %v8705_v18 = vld [vmem:[%s13800_s3 + $0xe0] sm:$0xff] }
 0x263   :  { %9970 = vmatprep.mubr.msk.f32.mxu1 %vm890_vm1, %v12190_v35  ;;  %v3817_v35 = vld [vmem:[#allocation2 + $0x81] sm:$0xff] }
 0x266   :  { %9971 = vmatmul.mubr.msk.f32.gmra.mrb[10].mxu1 %vm890_vm1, %v12188_v31  ;;  %v10667_v31 = vpack.c.bf16 %v8706_v23, %v8705_v18 }
 0x267   :  { %9973 = vmatprep.mubr.msk.f32.mxu1 %vm890_vm1, %v12200_v38  ;;  %v3825_v38 = vld [vmem:[#allocation2 + $0x111] sm:$0xff] }
 0x26a   :  { %9974 = vmatmul.mubr.msk.f32.gmra.mrb[12].mxu1 %vm890_vm1, %v12198_v36  ;;  %v13909_v36 = vld [vmem:[#allocation4_spill] sm:$0xff] }
 0x26b   :  { %9976 = vmatprep.mubr.msk.f32.mxu1 %vm890_vm1, %v12206_v40  ;;  %v8723_v40 = vld [vmem:[%s13800_s3 + $0xf0] sm:$0xff] }
 0x26e   :  { %9977 = vmatmul.mubr.msk.f32.gmra.mrb[14].mxu1 %vm890_vm1, %v3368_v28 }
 0x26f   :  { %9983 = vmatprep.mubr.msk.f32.mxu1 %vm890_vm1, %v12219_v49  ;;  %v13910_v49 = vld [vmem:[#allocation5_spill] sm:$0xff] }
 0x272   :  { %9984 = vmatmul.mubr.msk.f32.vlgmr.msra.gmra.mrb[0].mxu1 %vm890_vm1, %v12217_v44  ;;  %v8724_v44 = vld [vmem:[%s13800_s3 + $0xf8] sm:$0xff] }
 0x273   :  { %9986 = vmatprep.mubr.msk.f32.mxu1 %vm890_vm1, %v12228_v51  ;;  %10662 = vmatpush3.bf16.msra.mxu1 %v10659_v37  ;;  %v13911_v51 = vld [vmem:[#allocation6_spill] sm:$0xff] }
 0x274   :  { %10664 = vmatprep.subr.bf16.mxu1 %v10663_v53 }
 0x276   :  { %9987 = vmatmul.mubr.msk.f32.gmra.mrb[2].mxu1 %vm890_vm1, %v12226_v4  ;;  %v10671_v4 = vpack.c.bf16 %v8724_v44, %v8723_v40 }
 0x277   :  { %9989 = vmatprep.mubr.msk.f32.mxu1 %vm890_vm1, %v12236_v54  ;;  %v13913_v54 = vld [vmem:[#allocation8_spill] sm:$0xff] }
 0x27a   :  { %9990 = vmatmul.mubr.msk.f32.gmra.mrb[4].mxu1 %vm890_vm1, %v12234_v52  ;;  %v13912_v52 = vld [vmem:[#allocation7_spill] sm:$0xff] }
 0x27b   :  { %9992 = vmatprep.mubr.msk.f32.mxu1 %vm890_vm1, %v12242_v55  ;;  %v13914_v55 = vld [vmem:[#allocation9_spill] sm:$0xff] }
 0x27e   :  { %9993 = vmatmul.mubr.msk.f32.gmra.mrb[6].mxu1 %vm890_vm1, %v3589_v58 }
 0x27f   :  { %9995 = vmatprep.mubr.msk.f32.mxu1 %vm890_vm1, %v12249_v59  ;;  %v13916_v59 = vld [vmem:[#allocation11_spill] sm:$0xff] }
 0x282   :  { %9996 = vmatmul.mubr.msk.f32.gmra.mrb[8].mxu1 %vm890_vm1, %v12247_v56  ;;  %v13915_v56 = vld [vmem:[#allocation10_spill] sm:$0xff] }
 0x283   :  { %9998 = vmatprep.mubr.msk.f32.mxu1 %vm890_vm1, %v12257_v62  ;;  %v13917_v62 = vld [vmem:[#allocation12_spill] sm:$0xff] }
 0x286   :  { %9999 = vmatmul.mubr.msk.f32.gmra.mrb[10].mxu1 %vm890_vm1, %v12255_v61  ;;  %v4045_v61 = vld [vmem:[#allocation2 + $0x1a1] sm:$0xff] }
 0x287   :  { %10001 = vmatprep.mubr.msk.f32.mxu1 %vm890_vm1, %v12265_v16  ;;  %v13919_v16 = vld [vmem:[#allocation14_spill] sm:$0xff] }
 0x28a   :  { %10002 = vmatmul.mubr.msk.f32.gmra.mrb[12].mxu1 %vm890_vm1, %v12263_v63  ;;  %v13918_v63 = vld [vmem:[#allocation13_spill] sm:$0xff] }
 0x28b   :  { %10004 = vmatprep.mubr.msk.f32.mxu1 %vm890_vm1, %v12271_v1  ;;  %v13920_v1 = vld [vmem:[#allocation15_spill] sm:$0xff] }
 0x28e   :  { %10005 = vmatmul.mubr.msk.f32.gmra.mrb[14].mxu1 %vm890_vm1, %v3597_v9 }
 0x28f   :  { %10011 = vmatprep.mubr.msk.f32.mxu1 %vm890_vm1, %v12282_v11  ;;  %v13921_v11 = vld [vmem:[#allocation16_spill] sm:$0xff] }
 0x292   :  { %10012 = vmatmul.mubr.msk.f32.vlgmr.msra.gmra.mrb[0].mxu1 %vm890_vm1, %v12286_v12  ;;  %v13922_v12 = vld [vmem:[#allocation17_spill] sm:$0xff] }
 0x293   :  { %10014 = vmatprep.mubr.msk.f32.mxu1 %vm890_vm1, %v12290_v13  ;;  %10666 = vmatpush3.bf16.msra.mxu1 %v10663_v53  ;;  %v13923_v13 = vld [vmem:[#allocation18_spill] sm:$0xff] }
 0x294   :  { %10668 = vmatprep.subr.bf16.mxu1 %v10667_v31 }
 0x296   :  { %10015 = vmatmul.mubr.msk.f32.gmra.mrb[2].mxu1 %vm890_vm1, %v12294_v14  ;;  %v4053_v14 = vld [vmem:[#allocation2 + $0x231] sm:$0xff] }
 0x297   :  { %10017 = vmatprep.mubr.msk.f32.mxu1 %vm890_vm1, %v12298_v48  ;;  %v13924_v48 = vld [vmem:[#allocation19_spill] sm:$0xff] }
 0x29a   :  { %10018 = vmatmul.mubr.msk.f32.gmra.mrb[4].mxu1 %vm890_vm1, %v12302_v21  ;;  %v13925_v21 = vld [vmem:[#allocation20_spill] sm:$0xff] }
 0x29b   :  { %10020 = vmatprep.mubr.msk.f32.mxu1 %vm890_vm1, %v12306_v24  ;;  %v13926_v24 = vld [vmem:[#allocation21_spill] sm:$0xff] }
 0x29e   :  { %10021 = vmatmul.mubr.msk.f32.gmra.mrb[6].mxu1 %vm890_vm1, %v3817_v35 }
 0x29f   :  { %10023 = vmatprep.mubr.msk.f32.mxu1 %vm890_vm1, %v12311_v25  ;;  %v13927_v25 = vld [vmem:[#allocation22_spill] sm:$0xff] }
 0x2a2   :  { %10024 = vmatmul.mubr.msk.f32.gmra.mrb[8].mxu1 %vm890_vm1, %v12315_v27  ;;  %v13928_v27 = vld [vmem:[#allocation23_spill] sm:$0xff] }
 0x2a3   :  { %10026 = vmatprep.mubr.msk.f32.mxu1 %vm890_vm1, %v12319_v30  ;;  %v13929_v30 = vld [vmem:[#allocation24_spill] sm:$0xff] }
 0x2a6   :  { %10027 = vmatmul.mubr.msk.f32.gmra.mrb[10].mxu1 %vm890_vm1, %v12323_v32  ;;  %v13930_v32 = vld [vmem:[#allocation25_spill] sm:$0xff] }
 0x2a7   :  { %10029 = vmatprep.mubr.msk.f32.mxu1 %vm890_vm1, %v12327_v17  ;;  %v4273_v17 = vld [vmem:[#allocation2 + $0x2c1] sm:$0xff] }
 0x2aa   :  { %10030 = vmatmul.mubr.msk.f32.gmra.mrb[12].mxu1 %vm890_vm1, %v12331_v39  ;;  %v13931_v39 = vld [vmem:[#allocation26_spill] sm:$0xff] }
 0x2ab   :  { %10032 = vmatprep.mubr.msk.f32.mxu1 %vm890_vm1, %v13909_v36 }
 0x2ae   :  { %10033 = vmatmul.mubr.msk.f32.gmra.mrb[14].mxu1 %vm890_vm1, %v3825_v38  ;;  %v4944_v38 = vld [vmem:[%s13802_s6] sm:$0xff] }
 0x2af   :  { %10039 = vmatprep.mubr.msk.f32.mxu1 %vm890_vm1, %v13910_v49 }
 0x2b2   :  { %10040 = vmatmul.mubr.msk.f32.vlgmr.msra.gmra.mrb[0].mxu1 %vm890_vm1, %v13911_v51 }
 0x2b3   :  { %10042 = vmatprep.mubr.msk.f32.mxu1 %vm890_vm1, %v13912_v52  ;;  %10670 = vmatpush3.bf16.msra.mxu1 %v10667_v31 }
 0x2b4   :  { %10672 = vmatprep.subr.bf16.mxu1 %v10671_v4 }
 0x2b6   :  { %10043 = vmatmul.mubr.msk.f32.gmra.mrb[2].mxu1 %vm890_vm1, %v13913_v54 }
 0x2b7   :  { %10045 = vmatprep.mubr.msk.f32.mxu1 %vm890_vm1, %v13914_v55 }
 0x2ba   :  { %10046 = vmatmul.mubr.msk.f32.gmra.mrb[4].mxu1 %vm890_vm1, %v13915_v56 }
 0x2bb   :  { %10048 = vmatprep.mubr.msk.f32.mxu1 %vm890_vm1, %v13916_v59 }
 0x2be   :  { %10049 = vmatmul.mubr.msk.f32.gmra.mrb[6].mxu1 %vm890_vm1, %v4045_v61 }
 0x2bf   :  { %10051 = vmatprep.mubr.msk.f32.mxu1 %vm890_vm1, %v13917_v62 }
 0x2c2   :  { %10052 = vmatmul.mubr.msk.f32.gmra.mrb[8].mxu1 %vm890_vm1, %v13918_v63 }
 0x2c3   :  { %10054 = vmatprep.mubr.msk.f32.mxu1 %vm890_vm1, %v13919_v16 }
 0x2c6   :  { %10055 = vmatmul.mubr.msk.f32.gmra.mrb[10].mxu1 %vm890_vm1, %v13920_v1 }
 0x2c7   :  { %10057 = vmatprep.mubr.msk.f32.mxu1 %vm890_vm1, %v13921_v11 }
 0x2ca   :  { %10058 = vmatmul.mubr.msk.f32.gmra.mrb[12].mxu1 %vm890_vm1, %v13922_v12 }
 0x2cb   :  { %10060 = vmatprep.mubr.msk.f32.mxu1 %vm890_vm1, %v13923_v13 }
 0x2ce   :  { %10061 = vmatmul.mubr.msk.f32.gmra.mrb[14].mxu1 %vm890_vm1, %v4053_v14 }
 0x2cf   :  { %10067 = vmatprep.mubr.msk.f32.mxu1 %vm890_vm1, %v13924_v48 }
 0x2d2   :  { %10068 = vmatmul.mubr.msk.f32.vlgmr.msra.gmra.mrb[0].mxu1 %vm890_vm1, %v13925_v21 }
 0x2d3   :  { %10070 = vmatprep.mubr.msk.f32.mxu1 %vm890_vm1, %v13926_v24  ;;  %10674 = vmatpush3.bf16.msra.mxu1 %v10671_v4 }
 0x2d6   :  { %10071 = vmatmul.mubr.msk.f32.gmra.mrb[2].mxu1 %vm890_vm1, %v13927_v25 }
 0x2d7   :  { %10073 = vmatprep.mubr.msk.f32.mxu1 %vm890_vm1, %v13928_v27 }
 0x2da   :  { %10074 = vmatmul.mubr.msk.f32.gmra.mrb[4].mxu1 %vm890_vm1, %v13929_v30 }
 0x2db   :  { %10076 = vmatprep.mubr.msk.f32.mxu1 %vm890_vm1, %v13930_v32 }
 0x2de   :  { %10077 = vmatmul.mubr.msk.f32.gmra.mrb[6].mxu1 %vm890_vm1, %v4273_v17 }
 0x2df   :  { %10079 = vmatprep.mubr.msk.f32.mxu1 %vm890_vm1, %v13931_v39 }
 0x2e2   :  { %10080 = vmatmul.mubr.msk.f32.gmra.mrb[8].mxu1 %vm890_vm1, %v13932_v29 }
 0x2e3   :  { %10082 = vmatprep.mubr.msk.f32.mxu1 %vm890_vm1, %v13933_v46 }
 0x2e6   :  { %10083 = vmatmul.mubr.msk.f32.gmra.mrb[10].mxu1 %vm890_vm1, %v13934_v50 }
 0x2e7   :  { %10085 = vmatprep.mubr.msk.f32.mxu1 %vm890_vm1, %v13935_v57 }
 0x2ea   :  { %10086 = vmatmul.mubr.msk.f32.gmra.mrb[12].mxu1 %vm890_vm1, %v13936_v60 }
 0x2eb   :  { %10088 = vmatprep.mubr.msk.f32.mxu1 %vm890_vm1, %v13937_v2 }
 0x2ee   :  { %10089 = vmatmul.mubr.msk.f32.gmra.mrb[14].mxu1 %vm890_vm1, %v4281_v7 }
 0x2ef   :  { %10095 = vmatprep.mubr.msk.f32.mxu1 %vm890_vm1, %v12474_v22  ;;  %v13942_v22 = vld [vmem:[#allocation37_spill] sm:$0xff] }
 0x2f2   :  { %10096 = vmatmul.mubr.msk.f32.vlgmr.msra.gmra.mrb[0].mxu1 %vm890_vm1, %v12478_v3  ;;  %v13943_v3 = vld [vmem:[#allocation38_spill] sm:$0xff] }
 0x2f3   :  { %10098 = vmatprep.mubr.msk.f32.mxu1 %vm890_vm1, %v13938_v19 }
 0x2f6   :  { %10099 = vmatmul.mubr.msk.f32.gmra.mrb[2].mxu1 %vm890_vm1, %v13939_v33 }
 0x2f7   :  { %10101 = vmatprep.mubr.msk.f32.mxu1 %vm890_vm1, %v13940_v42 }
 0x2fa   :  { %10102 = vmatmul.mubr.msk.f32.gmra.mrb[4].mxu1 %vm890_vm1, %v13941_v47 }
 0x2fb   :  { %10104 = vmatprep.mubr.msk.f32.mxu1 %vm890_vm1, %v12498_v10  ;;  %v4509_v10 = vld [vmem:[#allocation2 + $0x471] sm:$0xff] }
 0x2fe   :  { %10105 = vmatmul.mubr.msk.f32.gmra.mrb[6].mxu1 %vm890_vm1, %v4501_v0 }
 0x2ff   :  { %10107 = vmatprep.mubr.msk.f32.mxu1 %vm890_vm1, %v13942_v22 }
 0x302   :  { %10108 = vmatmul.mubr.msk.f32.gmra.mrb[8].mxu1 %vm890_vm1, %v13943_v3 }
 0x303   :  { %10110 = vmatprep.mubr.msk.f32.mxu1 %vm890_vm1, %v13944_v5 }
 0x306   :  { %10111 = vmatmul.mubr.msk.f32.gmra.mrb[10].mxu1 %vm890_vm1, %v13945_v8 }
 0x307   :  { %10113 = vmatprep.mubr.msk.f32.mxu1 %vm890_vm1, %v13946_v15 }
 0x30a   :  { %10114 = vmatmul.mubr.msk.f32.gmra.mrb[12].mxu1 %vm890_vm1, %v12523_v6 }
 0x30b   :  { %10116 = vmatprep.mubr.msk.f32.mxu1 %vm890_vm1, %v12527_v43 }
 0x30e   :  { %10117 = vmatmul.mubr.msk.f32.gmra.mrb[14].mxu1 %vm890_vm1, %v4509_v10  ;;  %vm4976_vm1 = vcmask 523264  }
 0x30f   :  { %10135 = vmatprep.mubr.msk.f32.mxu0 %vm4976_vm1, %v4944_v38 }
 0x3c5   :  { %v10097_v20 = vpop.f32.mrb[0].mxu1 }
 0x3c6   :  { %v4724_v26 = vsel %vm4722_vm7, %v10097_v20, 0.0  ;;  %v4627_v37 = vpop.f32.mrb[1].mxu1 }
 0x3c7   :  { %v4723_v34 = vsel %vm4722_vm7, %v4627_v37, 0.0 }
 0x3c8   :  { %v4725_v28 = vadd.f32 %v4724_v26, %v4723_v34 }
 0x3c9   :  { %v10100_v41 = vpop.f32.mrb[2].mxu1 }
 0x3ca   :  { %v4637_v45 = vpop.f32.mrb[3].mxu1  ;;  %v4728_v6 = vsel %vm4722_vm7, %v10100_v41, 0.0 }
 0x3cb   :  { %v4726_v53 = vsel %vm4722_vm7, %v4637_v45, 0.0 }
 0x3cc   :  { %v4727_v58 = vadd.f32 %v4726_v53, %v4725_v28 }
 0x3cd   :  { %v10103_v9 = vpop.f32.mrb[4].mxu1 }
 0x3ce   :  { %v4647_v43 = vpop.f32.mrb[5].mxu1  ;;  %v4729_v18 = vadd.f32 %v4728_v6, %v4727_v58  ;;  %v4732_v35 = vsel %vm4722_vm7, %v10103_v9, 0.0 }
 0x3cf   :  { %v4730_v23 = vsel %vm4722_vm7, %v4647_v43, 0.0 }
 0x3d0   :  { %v4731_v31 = vadd.f32 %v4730_v23, %v4729_v18 }
 0x3d1   :  { %v10106_v36 = vpop.f32.mrb[6].mxu1 }
 0x3d2   :  { %v4657_v40 = vpop.f32.mrb[7].mxu1  ;;  %v4733_v44 = vadd.f32 %v4732_v35, %v4731_v31  ;;  %v4736_v51 = vsel %vm4722_vm7, %v10106_v36, 0.0 }
 0x3d3   :  { %v4734_v49 = vsel %vm4722_vm7, %v4657_v40, 0.0 }
 0x3d4   :  { %v4735_v4 = vadd.f32 %v4734_v49, %v4733_v44 }
 0x3d5   :  { %v10109_v52 = vpop.f32.mrb[8].mxu1 }
 0x3d6   :  { %v4667_v54 = vpop.f32.mrb[9].mxu1  ;;  %v4737_v55 = vadd.f32 %v4736_v51, %v4735_v4  ;;  %v4740_v61 = vsel %vm4722_vm7, %v10109_v52, 0.0 }
 0x3d7   :  { %v4738_v56 = vsel %vm4722_vm7, %v4667_v54, 0.0 }
 0x3d8   :  { %v4739_v59 = vadd.f32 %v4738_v56, %v4737_v55 }
 0x3d9   :  { %v10112_v62 = vpop.f32.mrb[10].mxu1 }
 0x3da   :  { %v4677_v63 = vpop.f32.mrb[11].mxu1  ;;  %v4741_v16 = vadd.f32 %v4740_v61, %v4739_v59  ;;  %v4744_v12 = vsel %vm4722_vm7, %v10112_v62, 0.0 }
 0x3db   :  { %v4742_v1 = vsel %vm4722_vm7, %v4677_v63, 0.0 }
 0x3dc   :  { %v4743_v11 = vadd.f32 %v4742_v1, %v4741_v16 }
 0x3dd   :  { %v10115_v13 = vpop.f32.mrb[12].mxu1 }
 0x3de   :  { %v4687_v14 = vpop.f32.mrb[13].mxu1  ;;  %v4745_v48 = vadd.f32 %v4744_v12, %v4743_v11  ;;  %v4748_v25 = vsel %vm4722_vm7, %v10115_v13, 0.0 }
 0x3df   :  { %v4746_v21 = vsel %vm4722_vm7, %v4687_v14, 0.0 }
 0x3e0   :  { %v4747_v24 = vadd.f32 %v4746_v21, %v4745_v48 }
 0x3e1   :  { %v10118_v27 = vpop.f32.mrb[14].mxu1 }
 0x3e2   :  { %v4697_v30 = vpop.f32.mrb[15].mxu1  ;;  %v4749_v32 = vadd.f32 %v4748_v25, %v4747_v24  ;;  %v4752_v29 = vsel %vm4722_vm7, %v10118_v27, 0.0 }
 0x3e3   :  { %v4750_v17 = vsel %vm4722_vm7, %v4697_v30, 0.0 }
 0x3e4   :  { %v4751_v39 = vadd.f32 %v4750_v17, %v4749_v32 }
 0x3e6   :  { %v4753_v46 = vadd.f32 %v4752_v29, %v4751_v39 }
 0x3e8   :  { %v4754_v50 = vrot.slane %v4753_v46, 4 }
 0x3ea   :  { %v4755_v57 = vadd.f32 %v4754_v50, %v4753_v46 }
 0x3ec   :  { %v4756_v60 = vrot.slane %v4755_v57, 2 }
 0x3ee   :  { %v4757_v2 = vadd.f32 %v4756_v60, %v4755_v57 }
 0x3f0   :  { %v4758_v7 = vrot.slane %v4757_v2, 1 }
 0x3f2   :  { %v4759_v19 = vadd.f32 %v4758_v7, %v4757_v2 }
 0x3f4   :  { %v4761_v33 = vmul.f32 0.0078125, %v4759_v19 }
 0x3f6   :  { %v12813_v42 = vsub.f32 %v4627_v37, %v4761_v33  ;;  %v12815_v47 = vsub.f32 %v10097_v20, %v4761_v33  ;;  %v12817_v0 = vsub.f32 %v4637_v45, %v4761_v33  ;;  %v12819_v22 = vsub.f32 %v10100_v41, %v4761_v33 }
 0x3f7   :  { %v12821_v3 = vsub.f32 %v4647_v43, %v4761_v33  ;;  %v12823_v5 = vsub.f32 %v10103_v9, %v4761_v33  ;;  %v12825_v8 = vsub.f32 %v4657_v40, %v4761_v33  ;;  %v12827_v15 = vsub.f32 %v10106_v36, %v4761_v33 }
 0x3f8   :  { %v12829_v10 = vsub.f32 %v4667_v54, %v4761_v33  ;;  %v12831_v26 = vsub.f32 %v10109_v52, %v4761_v33  ;;  %v12833_v37 = vsub.f32 %v4677_v63, %v4761_v33  ;;  %v12835_v20 = vsub.f32 %v10112_v62, %v4761_v33 }
 0x3f9   :  { %v12837_v34 = vsub.f32 %v4687_v14, %v4761_v33  ;;  %v12839_v28 = vsub.f32 %v10115_v13, %v4761_v33  ;;  %v12841_v41 = vsub.f32 %v4697_v30, %v4761_v33  ;;  %v12843_v45 = vsub.f32 %v10118_v27, %v4761_v33 }
 0x3fa   :  { %v4778_v53 = vmul.f32 %v12813_v42, %v12813_v42  ;;  %v4779_v58 = vmul.f32 %v12815_v47, %v12815_v47  ;;  %v4780_v6 = vmul.f32 %v12817_v0, %v12817_v0  ;;  %v4781_v9 = vmul.f32 %v12819_v22, %v12819_v22 }
 0x3fb   :  { %v4782_v31 = vmul.f32 %v12821_v3, %v12821_v3  ;;  %v4783_v38 = vmul.f32 %v12823_v5, %v12823_v5  ;;  %v4784_v49 = vmul.f32 %v12825_v8, %v12825_v8  ;;  %v4785_v52 = vmul.f32 %v12827_v15, %v12827_v15 }
 0x3fc   :  { %v4794_v43 = vsel %vm4722_vm7, %v4778_v53, 0.0  ;;  %v4795_v18 = vsel %vm4722_vm7, %v4779_v58, 0.0  ;;  %v4797_v35 = vsel %vm4722_vm7, %v4780_v6, 0.0  ;;  %v4799_v40 = vsel %vm4722_vm7, %v4781_v9, 0.0 }
 0x3fd   :  { %v4796_v23 = vadd.f32 %v4795_v18, %v4794_v43  ;;  %v4801_v4 = vsel %vm4722_vm7, %v4782_v31, 0.0  ;;  %v4803_v54 = vsel %vm4722_vm7, %v4783_v38, 0.0  ;;  %v4786_v56 = vmul.f32 %v12829_v10, %v12829_v10  ;;  %v5298_v31 = vld [vmem:[%s13803_s7] sm:$0xff] }
 0x3fe   :  { %v4805_v59 = vsel %vm4722_vm7, %v4784_v49, 0.0  ;;  %v4787_v62 = vmul.f32 %v12831_v26, %v12831_v26  ;;  %v4807_v63 = vsel %vm4722_vm7, %v4785_v52, 0.0  ;;  %v4788_v1 = vmul.f32 %v12833_v37, %v12833_v37  ;;  %v12904_v38 = vld [vmem:[%s13804_s4] ss:$0 sm:$0xff] }
 0x3ff   :  { %v4798_v36 = vadd.f32 %v4797_v35, %v4796_v23  ;;  %v4809_v11 = vsel %vm4722_vm7, %v4786_v56, 0.0  ;;  %v4789_v13 = vmul.f32 %v12835_v20, %v12835_v20  ;;  %v4790_v21 = vmul.f32 %v12837_v34, %v12837_v34  ;;  %v5299_v35 = vld [vmem:[%s13803_s7 + $0x8] sm:$0xff]  ;;  %v12919_v52 = vld [vmem:[%s13805_s5] ss:$0 sm:$0xff] }
 0x400   :  { %v4811_v14 = vsel %vm4722_vm7, %v4787_v62, 0.0  ;;  %v4813_v24 = vsel %vm4722_vm7, %v4788_v1, 0.0  ;;  %v4791_v27 = vmul.f32 %v12839_v28, %v12839_v28  ;;  %v4792_v17 = vmul.f32 %v12841_v41, %v12841_v41 }
 0x401   :  { %v4800_v44 = vadd.f32 %v4799_v40, %v4798_v36  ;;  %v4815_v30 = vsel %vm4722_vm7, %v4789_v13, 0.0  ;;  %v4817_v39 = vsel %vm4722_vm7, %v4790_v21, 0.0  ;;  %v4793_v46 = vmul.f32 %v12843_v45, %v12843_v45 }
 0x402   :  { %v4819_v50 = vsel %vm4722_vm7, %v4791_v27, 0.0  ;;  %v4821_v60 = vsel %vm4722_vm7, %v4792_v17, 0.0  ;;  %v12906_v40 = vpack.c.bf16 %v5299_v35, %v5298_v31 }
 0x403   :  { %v4802_v51 = vadd.f32 %v4801_v4, %v4800_v44  ;;  %v4823_v7 = vsel %vm4722_vm7, %v4793_v46, 0.0 }
 0x405   :  { %v4804_v55 = vadd.f32 %v4803_v54, %v4802_v51 }
 0x407   :  { %v4806_v61 = vadd.f32 %v4805_v59, %v4804_v55 }
 0x409   :  { %v4808_v16 = vadd.f32 %v4807_v63, %v4806_v61 }
 0x40b   :  { %v4810_v12 = vadd.f32 %v4809_v11, %v4808_v16 }
 0x40d   :  { %v4812_v48 = vadd.f32 %v4811_v14, %v4810_v12 }
 0x40f   :  { %v4814_v25 = vadd.f32 %v4813_v24, %v4812_v48 }
 0x411   :  { %v4816_v32 = vadd.f32 %v4815_v30, %v4814_v25 }
 0x413   :  { %v4818_v29 = vadd.f32 %v4817_v39, %v4816_v32 }
 0x415   :  { %v4820_v57 = vadd.f32 %v4819_v50, %v4818_v29 }
 0x417   :  { %v4822_v2 = vadd.f32 %v4821_v60, %v4820_v57 }
 0x419   :  { %v4824_v19 = vadd.f32 %v4823_v7, %v4822_v2 }
 0x41b   :  { %v4825_v33 = vrot.slane %v4824_v19, 4 }
 0x41d   :  { %v4826_v53 = vadd.f32 %v4825_v33, %v4824_v19 }
 0x41f   :  { %v4827_v58 = vrot.slane %v4826_v53, 2 }
 0x421   :  { %v4828_v6 = vadd.f32 %v4827_v58, %v4826_v53 }
 0x423   :  { %v4829_v9 = vrot.slane %v4828_v6, 1 }
 0x425   :  { %v4830_v43 = vadd.f32 %v4829_v9, %v4828_v6 }
 0x427   :  { %v4831_v18 = vmul.f32 0.0078125, %v4830_v43 }
 0x429   :  { %v4832_v23 = vadd.f32 1e-05, %v4831_v18 }
 0x42b   :  { %11264 = vrsqrt.f32 %v4832_v23 }
 0x435   :  { %v12899_v36 = vpop.eup %11264 }
 0x436   :  { %v4848_v44 = vmul.f32 %v12899_v36, %v12841_v41  ;;  %v4834_v49 = vmul.f32 %v12899_v36, %v12813_v42  ;;  %v4835_v4 = vmul.f32 %v12899_v36, %v12815_v47  ;;  %v4836_v51 = vmul.f32 %v12899_v36, %v12817_v0 }
 0x437   :  { %v4837_v54 = vmul.f32 %v12899_v36, %v12819_v22  ;;  %v4838_v41 = vmul.f32 %v12899_v36, %v12821_v3  ;;  %v4839_v42 = vmul.f32 %v12899_v36, %v12823_v5  ;;  %v4840_v47 = vmul.f32 %v12899_v36, %v12825_v8 }
 0x438   :  { %v4871_v55 = vmul.f32 %v12904_v38, %v4848_v44  ;;  %v4857_v0 = vmul.f32 %v12904_v38, %v4834_v49  ;;  %v4858_v56 = vmul.f32 %v12904_v38, %v4835_v4  ;;  %v4859_v59 = vmul.f32 %v12904_v38, %v4836_v51 }
 0x439   :  { %v4860_v61 = vmul.f32 %v12904_v38, %v4837_v54  ;;  %v4861_v22 = vmul.f32 %v12904_v38, %v4838_v41  ;;  %v4862_v3 = vmul.f32 %v12904_v38, %v4839_v42  ;;  %v4841_v5 = vmul.f32 %v12899_v36, %v12827_v15 }
 0x43a   :  { %v12939_v62 = vadd.f32 %v12919_v52, %v4871_v55  ;;  %v4880_v8 = vadd.f32 %v12919_v52, %v4857_v0  ;;  %v4881_v63 = vadd.f32 %v12919_v52, %v4858_v56  ;;  %v4882_v16 = vadd.f32 %v12919_v52, %v4859_v59 }
 0x43b   :  { %v4883_v1 = vadd.f32 %v12919_v52, %v4860_v61  ;;  %v4884_v11 = vadd.f32 %v12919_v52, %v4861_v22  ;;  %v4885_v12 = vadd.f32 %v12919_v52, %v4862_v3  ;;  %v4863_v13 = vmul.f32 %v12904_v38, %v4840_v47 }
 0x43c   :  { %vm4896_vm8 = vcmp.gt.f32.partialorder %v4880_v8, 0.0  ;;  %vm4897_vm9 = vcmp.gt.f32.partialorder %v4881_v63, 0.0  ;;  %v4912_v15 = vmul.f32 0.2, %v4880_v8  ;;  %v4913_v14 = vmul.f32 0.2, %v4881_v63 }
 0x43d   :  { %vm4898_vm10 = vcmp.gt.f32.partialorder %v4882_v16, 0.0  ;;  %vm4899_vm11 = vcmp.gt.f32.partialorder %v4883_v1, 0.0  ;;  %v4914_v48 = vmul.f32 0.2, %v4882_v16  ;;  %v4915_v21 = vmul.f32 0.2, %v4883_v1 }
 0x43e   :  { %v4928_v24 = vsel %vm4896_vm8, %v4880_v8, %v4912_v15  ;;  %v4929_v25 = vsel %vm4897_vm9, %v4881_v63, %v4913_v14  ;;  %vm4900_vm12 = vcmp.gt.f32.partialorder %v4884_v11, 0.0  ;;  %vm4901_vm13 = vcmp.gt.f32.partialorder %v4885_v12, 0.0  ;;  %v13000_v15 = vld [vmem:[%s13802_s6 + $0x10] sm:$0xff] }
 0x43f   :  { %v10675_v27 = vpack.c.bf16 %v4929_v25, %v4928_v24  ;;  %v4930_v30 = vsel %vm4898_vm10, %v4882_v16, %v4914_v48  ;;  %v4931_v32 = vsel %vm4899_vm11, %v4883_v1, %v4915_v21  ;;  %v4916_v17 = vmul.f32 0.2, %v4884_v11 }
 0x440   :  { %v10679_v39 = vpack.c.bf16 %v4931_v32, %v4930_v30  ;;  %v4917_v29 = vmul.f32 0.2, %v4885_v12  ;;  %v4864_v46 = vmul.f32 %v12904_v38, %v4841_v5  ;;  %v4886_v50 = vadd.f32 %v12919_v52, %v4863_v13  ;;  %v5300_v5 = vld [vmem:[%s13803_s7 + $0x10] sm:$0xff]  ;;  %v13022_v30 = vld [vmem:[%s13802_s6 + $0x20] sm:$0xff]  ;;  %v13032_v32 = vld [vmem:[%s13802_s6 + $0x28] sm:$0xff] }
 0x441   :  { %10676 = vmatprep.subr.bf16.mxu0 %v10675_v27  ;;  %v4932_v57 = vsel %vm4900_vm12, %v4884_v11, %v4916_v17  ;;  %v4842_v60 = vmul.f32 %v12899_v36, %v12829_v10  ;;  %v4843_v2 = vmul.f32 %v12899_v36, %v12831_v26  ;;  %v4844_v7 = vmul.f32 %v12899_v36, %v12833_v37  ;;  %v13038_v17 = vld [vmem:[%s13802_s6 + $0x30] sm:$0xff] }
 0x442   :  { %10678 = vmatpush3.bf16.msra.mxu0 %v10675_v27  ;;  %v4933_v19 = vsel %vm4901_vm13, %v4885_v12, %v4917_v29  ;;  %v4887_v33 = vadd.f32 %v12919_v52, %v4864_v46  ;;  %vm4902_vm14 = vcmp.gt.f32.partialorder %v4886_v50, 0.0  ;;  %v4918_v53 = vmul.f32 0.2, %v4886_v50  ;;  %v13052_v29 = vld [vmem:[%s13802_s6 + $0x40] sm:$0xff]  ;;  %v13061_v46 = vld [vmem:[%s13802_s6 + $0x48] sm:$0xff] }
 0x443   :  { %10680 = vmatprep.subr.bf16.mxu0 %v10679_v39  ;;  %v10683_v58 = vpack.c.bf16 %v4933_v19, %v4932_v57  ;;  %v4865_v6 = vmul.f32 %v12904_v38, %v4842_v60  ;;  %v4866_v9 = vmul.f32 %v12904_v38, %v4843_v2  ;;  %v4845_v10 = vmul.f32 %v12899_v36, %v12835_v20  ;;  %v13075_v57 = vld [vmem:[%s13802_s6 + $0x58] sm:$0xff]  ;;  %v13080_v60 = vld [vmem:[%s13802_s6 + $0x60] sm:$0xff]  ;;  %v13089_v2 = vld [vmem:[%s13802_s6 + $0x68] sm:$0xff] }
 0x444   :  { %vm4903_vm15 = vcmp.gt.f32.partialorder %v4887_v33, 0.0  ;;  %v4919_v26 = vmul.f32 0.2, %v4887_v33  ;;  %v4934_v43 = vsel %vm4902_vm14, %v4886_v50, %v4918_v53  ;;  %v4867_v37 = vmul.f32 %v12904_v38, %v4844_v7  ;;  %v13066_v50 = vld [vmem:[%s13802_s6 + $0x50] sm:$0xff]  ;;  %v13103_v19 = vld [vmem:[%s13802_s6 + $0x78] sm:$0xff]  ;;  %v13117_v53 = vld [vmem:[%s13802_s6 + $0x88] sm:$0xff] }
 0x445   :  { %v4888_v18 = vadd.f32 %v12919_v52, %v4865_v6  ;;  %v4889_v23 = vadd.f32 %v12919_v52, %v4866_v9  ;;  %v4868_v31 = vmul.f32 %v12904_v38, %v4845_v10  ;;  %v4846_v35 = vmul.f32 %v12899_v36, %v12837_v34  ;;  %v13094_v7 = vld [vmem:[%s13802_s6 + $0x70] sm:$0xff]  ;;  %v13131_v6 = vld [vmem:[%s13802_s6 + $0x98] sm:$0xff]  ;;  %v13136_v9 = vld [vmem:[%s13802_s6 + $0xa0] sm:$0xff] }
 0x446   :  { %10682 = vmatpush3.bf16.msra.mxu0 %v10679_v39  ;;  %v4935_v44 = vsel %vm4903_vm15, %v4887_v33, %v4919_v26  ;;  %v4890_v49 = vadd.f32 %v12919_v52, %v4867_v37  ;;  %v4847_v20 = vmul.f32 %v12899_v36, %v12839_v28  ;;  %v4849_v4 = vmul.f32 %v12899_v36, %v12843_v45  ;;  %v13047_v39 = vld [vmem:[%s13802_s6 + $0x38] sm:$0xff]  ;;  %v13108_v33 = vld [vmem:[%s13802_s6 + $0x80] sm:$0xff]  ;;  %v13145_v10 = vld [vmem:[%s13802_s6 + $0xa8] sm:$0xff] }
 0x447   :  { %10684 = vmatprep.subr.bf16.mxu0 %v10683_v58  ;;  %v10687_v51 = vpack.c.bf16 %v4935_v44, %v4934_v43  ;;  %vm4904_vm0 = vcmp.gt.f32.partialorder %v4888_v18, 0.0  ;;  %vm4905_vm2 = vcmp.gt.f32.partialorder %v4889_v23, 0.0  ;;  %v4920_v54 = vmul.f32 0.2, %v4888_v18  ;;  %v13150_v26 = vld [vmem:[%s13802_s6 + $0xb0] sm:$0xff]  ;;  %v13159_v43 = vld [vmem:[%s13802_s6 + $0xb8] sm:$0xff] }
 0x448   :  { %v4921_v41 = vmul.f32 0.2, %v4889_v23  ;;  %v4891_v42 = vadd.f32 %v12919_v52, %v4868_v31  ;;  %vm4906_vm3 = vcmp.gt.f32.partialorder %v4890_v49, 0.0  ;;  %v4922_v34 = vmul.f32 0.2, %v4890_v49  ;;  %v13164_v37 = vld [vmem:[%s13802_s6 + $0xc0] sm:$0xff] }
 0x449   :  { %v4936_v47 = vsel %vm4904_vm0, %v4888_v18, %v4920_v54  ;;  %v4869_v55 = vmul.f32 %v12904_v38, %v4846_v35  ;;  %v4870_v0 = vmul.f32 %v12904_v38, %v4847_v20  ;;  %v4872_v28 = vmul.f32 %v12904_v38, %v4849_v4  ;;  %v5301_v38 = vld [vmem:[%s13803_s7 + $0x18] sm:$0xff]  ;;  %v13173_v18 = vld [vmem:[%s13802_s6 + $0xc8] sm:$0xff]  ;;  %v13192_v35 = vld [vmem:[%s13802_s6 + $0xe0] sm:$0xff] }
 0x44a   :  { %10686 = vmatpush3.bf16.msra.mxu0 %v10683_v58  ;;  %v4937_v56 = vsel %vm4905_vm2, %v4889_v23, %v4921_v41  ;;  %vm4907_vm4 = vcmp.gt.f32.partialorder %v4891_v42, 0.0  ;;  %v4923_v45 = vmul.f32 0.2, %v4891_v42  ;;  %v4938_v36 = vsel %vm4906_vm3, %v4890_v49, %v4922_v34  ;;  %v13122_v58 = vld [vmem:[%s13802_s6 + $0x90] sm:$0xff]  ;;  %v13187_v31 = vld [vmem:[%s13802_s6 + $0xd8] sm:$0xff]  ;;  %v13201_v44 = vld [vmem:[%s13802_s6 + $0xe8] sm:$0xff] }
 0x44b   :  { %10688 = vmatprep.subr.bf16.mxu0 %v10687_v51  ;;  %v12976_v59 = vpack.c.bf16 %v4937_v56, %v4936_v47  ;;  %v4892_v61 = vadd.f32 %v12919_v52, %v4869_v55  ;;  %v4893_v22 = vadd.f32 %v12919_v52, %v4870_v0  ;;  %v4895_v3 = vadd.f32 %v12919_v52, %v4872_v28  ;;  %v12994_v52 = vld [vmem:[%s13802_s6 + $0x8] sm:$0xff]  ;;  %v13178_v23 = vld [vmem:[%s13802_s6 + $0xd0] sm:$0xff]  ;;  %v13215_v20 = vld [vmem:[%s13802_s6 + $0xf8] sm:$0xff] }
 0x44c   :  { %v4939_v8 = vsel %vm4907_vm4, %v4891_v42, %v4923_v45  ;;  %vm4910_vm5 = vcmp.gt.f32.partialorder %v12939_v62, 0.0  ;;  %v4926_v63 = vmul.f32 0.2, %v12939_v62  ;;  %v13003_v14 = vpack.c.bf16 %v5301_v38, %v5300_v5  ;;  %v13206_v49 = vld [vmem:[%s13802_s6 + $0xf0] sm:$0xff]  ;;  %v8783_v4 = vld [vmem:[%s13803_s7 + $0x40] sm:$0xff]  ;;  %v8776_v42 = vld [vmem:[%s13803_s7 + $0x28] sm:$0xff] }
 0x44d   :  { %v12989_v16 = vpack.c.bf16 %v4939_v8, %v4938_v36  ;;  %vm4908_vm6 = vcmp.gt.f32.partialorder %v4892_v61, 0.0  ;;  %vm4909_vm8 = vcmp.gt.f32.partialorder %v4893_v22, 0.0  ;;  %v4924_v1 = vmul.f32 0.2, %v4892_v61  ;;  %v8775_v41 = vld [vmem:[%s13803_s7 + $0x20] sm:$0xff]  ;;  %v8777_v47 = vld [vmem:[%s13803_s7 + $0x30] sm:$0xff] }
 0x44e   :  { %10690 = vmatpush3.bf16.msra.mxu0 %v10687_v51  ;;  %v4925_v11 = vmul.f32 0.2, %v4893_v22  ;;  %vm4911_vm9 = vcmp.gt.f32.partialorder %v4895_v3, 0.0  ;;  %v4927_v12 = vmul.f32 0.2, %v4895_v3  ;;  %v4942_v13 = vsel %vm4910_vm5, %v12939_v62, %v4926_v63  ;;  %v13016_v62 = vld [vmem:[%s13802_s6 + $0x18] sm:$0xff] }
 0x44f   :  { %10700 = vmatprep.subr.bf16.mxu0 %v12906_v40  ;;  %v4940_v48 = vsel %vm4908_vm6, %v4892_v61, %v4924_v1  ;;  %v8784_v51 = vld [vmem:[%s13803_s7 + $0x48] sm:$0xff]  ;;  %v13234_v34 = vpack.c.bf16 %v8776_v42, %v8775_v41  ;;  %v8778_v55 = vld [vmem:[%s13803_s7 + $0x38] sm:$0xff]  ;;  %v8785_v28 = vld [vmem:[%s13803_s7 + $0x50] sm:$0xff] }
 0x450   :  { %v4941_v21 = vsel %vm4909_vm8, %v4893_v22, %v4925_v11  ;;  %v4943_v24 = vsel %vm4911_vm9, %v4895_v3, %v4927_v12  ;;  %v13225_v54 = vpack.c.bf16 %v8784_v51, %v8783_v4  ;;  %v13244_v0 = vpack.c.bf16 %v8778_v55, %v8777_v47  ;;  %v8786_v56 = vld [vmem:[%s13803_s7 + $0x58] sm:$0xff]  ;;  %v8789_v22 = vld [vmem:[%s13803_s7 + $0x60] sm:$0xff]  ;;  %v8790_v3 = vld [vmem:[%s13803_s7 + $0x68] sm:$0xff] }
 0x451   :  { %10136 = vmatmul.mubr.msk.f32.vlgmr.msra.gmra.mrb[64].mxu0 %vm4976_vm1, %v12994_v52  ;;  %v13007_v25 = vpack.c.bf16 %v4941_v21, %v4940_v48  ;;  %v13009_v27 = vpack.c.bf16 %v4943_v24, %v4942_v13  ;;  %10692 = vmatprep.subr.bf16.mxu1 %v13234_v34  ;;  %v13254_v61 = vpack.c.bf16 %v8786_v56, %v8785_v28  ;;  %v8791_v63 = vld [vmem:[%s13803_s7 + $0x70] sm:$0xff]  ;;  %v8792_v1 = vld [vmem:[%s13803_s7 + $0x78] sm:$0xff]  ;;  %v8795_v48 = vld [vmem:[%s13803_s7 + $0x80] sm:$0xff] }
 0x452   :  { %10138 = vmatprep.mubr.msk.f32.mxu0 %vm4976_vm1, %v13000_v15  ;;  %10702 = vmatpush3.bf16.msra.mxu0 %v12906_v40  ;;  %v13266_v8 = vpack.c.bf16 %v8790_v3, %v8789_v22  ;;  %v13278_v13 = vpack.c.bf16 %v8792_v1, %v8791_v63  ;;  %v8796_v21 = vld [vmem:[%s13803_s7 + $0x88] sm:$0xff]  ;;  %v8797_v41 = vld [vmem:[%s13803_s7 + $0x90] sm:$0xff]  ;;  %v8798_v42 = vld [vmem:[%s13803_s7 + $0x98] sm:$0xff] }
 0x453   :  { %10704 = vmatprep.subr.bf16.mxu0 %v13003_v14  ;;  %10694 = vmatpush3.bf16.msra.mxu1 %v13234_v34  ;;  %v13290_v51 = vpack.c.bf16 %v8796_v21, %v8795_v48  ;;  %v13301_v55 = vpack.c.bf16 %v8798_v42, %v8797_v41  ;;  %v8801_v56 = vld [vmem:[%s13803_s7 + $0xa0] sm:$0xff]  ;;  %v8808_v48 = vld [vmem:[%s13803_s7 + $0xc8] sm:$0xff]  ;;  %v8809_v41 = vld [vmem:[%s13803_s7 + $0xd0] sm:$0xff] }
 0x454   :  { %10696 = vmatprep.subr.bf16.mxu1 %v13244_v0  ;;  %v8810_v42 = vld [vmem:[%s13803_s7 + $0xd8] sm:$0xff] }
 0x455   :  { %10139 = vmatmul.mubr.msk.f32.gmra.mrb[66].mxu0 %vm4976_vm1, %v13016_v62  ;;  %13947 = vst [vmem:[#allocation4_spill] sm:$0xff] %v13290_v51  ;;  %13948 = vst [vmem:[#allocation5_spill] sm:$0xff] %v13301_v55 }
 0x456   :  { %10141 = vmatprep.mubr.msk.f32.mxu0 %vm4976_vm1, %v13022_v30  ;;  %10706 = vmatpush3.bf16.msra.mxu0 %v13003_v14 }
 0x457   :  { %10708 = vmatprep.subr.bf16.mxu0 %v13225_v54  ;;  %10698 = vmatpush3.bf16.msra.mxu1 %v13244_v0 }
 0x459   :  { %10142 = vmatmul.mubr.msk.f32.gmra.mrb[68].mxu0 %vm4976_vm1, %v13032_v32 }
 0x45a   :  { %10144 = vmatprep.mubr.msk.f32.mxu0 %vm4976_vm1, %v13038_v17 }
 0x45d   :  { %10145 = vmatmul.mubr.msk.f32.gmra.mrb[70].mxu0 %vm4976_vm1, %v13047_v39 }
 0x45e   :  { %10147 = vmatprep.mubr.msk.f32.mxu0 %vm4976_vm1, %v13052_v29 }
 0x461   :  { %10148 = vmatmul.mubr.msk.f32.gmra.mrb[72].mxu0 %vm4976_vm1, %v13061_v46 }
 0x462   :  { %10150 = vmatprep.mubr.msk.f32.mxu0 %vm4976_vm1, %v13066_v50 }
 0x465   :  { %10151 = vmatmul.mubr.msk.f32.gmra.mrb[74].mxu0 %vm4976_vm1, %v13075_v57 }
 0x466   :  { %10153 = vmatprep.mubr.msk.f32.mxu0 %vm4976_vm1, %v13080_v60 }
 0x469   :  { %10154 = vmatmul.mubr.msk.f32.gmra.mrb[76].mxu0 %vm4976_vm1, %v13089_v2 }
 0x46a   :  { %10156 = vmatprep.mubr.msk.f32.mxu0 %vm4976_vm1, %v13094_v7 }
 0x46d   :  { %10157 = vmatmul.mubr.msk.f32.gmra.mrb[78].mxu0 %vm4976_vm1, %v13103_v19 }
 0x46e   :  { %10159 = vmatprep.mubr.msk.f32.mxu0 %vm4976_vm1, %v13108_v33 }
 0x471   :  { %10160 = vmatmul.mubr.msk.f32.gmra.mrb[80].mxu0 %vm4976_vm1, %v13117_v53 }
 0x472   :  { %10162 = vmatprep.mubr.msk.f32.mxu0 %vm4976_vm1, %v13122_v58 }
 0x475   :  { %10163 = vmatmul.mubr.msk.f32.gmra.mrb[82].mxu0 %vm4976_vm1, %v13131_v6 }
 0x476   :  { %10165 = vmatprep.mubr.msk.f32.mxu0 %vm4976_vm1, %v13136_v9 }
 0x479   :  { %10166 = vmatmul.mubr.msk.f32.gmra.mrb[84].mxu0 %vm4976_vm1, %v13145_v10 }
 0x47a   :  { %10168 = vmatprep.mubr.msk.f32.mxu0 %vm4976_vm1, %v13150_v26 }
 0x47d   :  { %10169 = vmatmul.mubr.msk.f32.gmra.mrb[86].mxu0 %vm4976_vm1, %v13159_v43 }
 0x47e   :  { %10171 = vmatprep.mubr.msk.f32.mxu0 %vm4976_vm1, %v13164_v37 }
 0x481   :  { %10172 = vmatmul.mubr.msk.f32.gmra.mrb[88].mxu0 %vm4976_vm1, %v13173_v18 }
 0x482   :  { %10174 = vmatprep.mubr.msk.f32.mxu0 %vm4976_vm1, %v13178_v23 }
 0x485   :  { %10175 = vmatmul.mubr.msk.f32.gmra.mrb[90].mxu0 %vm4976_vm1, %v13187_v31 }
 0x486   :  { %10177 = vmatprep.mubr.msk.f32.mxu0 %vm4976_vm1, %v13192_v35 }
 0x489   :  { %10178 = vmatmul.mubr.msk.f32.gmra.mrb[92].mxu0 %vm4976_vm1, %v13201_v44 }
 0x48a   :  { %10180 = vmatprep.mubr.msk.f32.mxu0 %vm4976_vm1, %v13206_v49 }
 0x48d   :  { %10181 = vmatmul.mubr.msk.f32.gmra.mrb[94].mxu0 %vm4976_vm1, %v13215_v20 }
 0x524   :  { %v10137_v45 = vpop.f32.mrb[64].mxu0 }
 0x525   :  { %v5139_v36 = vpop.f32.mrb[65].mxu0 }
 0x526   :  { %10202 = vmatprep.mubr.msk.f32.mxu0 %vm4722_vm7, %v5139_v36 }
 0x527   :  { %10203 = vmatmul.mubr.msk.f32.vlgmr.msra.gmra.mrb[96].mxu0 %vm4722_vm7, %v10137_v45  ;;  %v8802_v45 = vld [vmem:[%s13803_s7 + $0xa8] sm:$0xff] }
 0x528   :  { %10710 = vmatpush3.bf16.msra.mxu0 %v13225_v54  ;;  %v10140_v5 = vpop.f32.mrb[66].mxu0  ;;  %v13313_v22 = vpack.c.bf16 %v8802_v45, %v8801_v56  ;;  %v8813_v45 = vld [vmem:[%s13803_s7 + $0xe0] sm:$0xff] }
 0x529   :  { %10712 = vmatprep.subr.bf16.mxu0 %v13254_v61  ;;  %v5149_v38 = vpop.f32.mrb[67].mxu0 }
 0x52a   :  { %10191 = vmatprep.mubr.msk.f32.mxu1 %vm4722_vm7, %v5149_v38  ;;  %13949 = vst [vmem:[#allocation6_spill] sm:$0xff] %v13313_v22  ;;  %v8804_v38 = vld [vmem:[%s13803_s7 + $0xb8] sm:$0xff] }
 0x52b   :  { %10192 = vmatmul.mubr.msk.f32.vlgmr.msra.gmra.mrb[16].mxu1 %vm4722_vm7, %v10140_v5  ;;  %v8803_v5 = vld [vmem:[%s13803_s7 + $0xb0] sm:$0xff] }
 0x52c   :  { %10714 = vmatpush3.bf16.msra.mxu0 %v13254_v61  ;;  %v10143_v11 = vpop.f32.mrb[68].mxu0  ;;  %v13323_v1 = vpack.c.bf16 %v8804_v38, %v8803_v5 }
 0x52d   :  { %v5159_v12 = vpop.f32.mrb[69].mxu0  ;;  %10716 = vmatprep.subr.bf16.mxu0 %v13266_v8 }
 0x52e   :  { %10213 = vmatprep.mubr.msk.f32.mxu0 %vm4722_vm7, %v5159_v12  ;;  %13950 = vst [vmem:[#allocation7_spill] sm:$0xff] %v13323_v1  ;;  %v8807_v12 = vld [vmem:[%s13803_s7 + $0xc0] sm:$0xff] }
 0x52f   :  { %10214 = vmatmul.mubr.msk.f32.vlgmr.msra.gmra.mrb[96].mxu0 %vm4722_vm7, %v10143_v11 }
 0x530   :  { %10718 = vmatpush3.bf16.msra.mxu0 %v13266_v8  ;;  %v10146_v24 = vpop.f32.mrb[70].mxu0 }
 0x531   :  { %10720 = vmatprep.subr.bf16.mxu0 %v13278_v13  ;;  %v5169_v4 = vpop.f32.mrb[71].mxu0 }
 0x532   :  { %10224 = vmatprep.mubr.msk.f32.mxu0 %vm4722_vm7, %v5169_v4 }
 0x534   :  { %10722 = vmatpush3.bf16.msra.mxu0 %v13278_v13  ;;  %v10149_v47 = vpop.f32.mrb[72].mxu0 }
 0x535   :  { %10724 = vmatprep.subr.bf16.mxu0 %v13290_v51  ;;  %v5179_v28 = vpop.f32.mrb[73].mxu0 }
 0x537   :  { %10225 = vmatmul.mubr.msk.f32.vlgmr.msra.gmra.mrb[96].mxu0 %vm4722_vm7, %v10146_v24  ;;  %v13335_v24 = vpack.c.bf16 %v8808_v48, %v8807_v12  ;;  %v8815_v48 = vld [vmem:[%s13803_s7 + $0xf0] sm:$0xff] }
 0x538   :  { %10726 = vmatpush3.bf16.msra.mxu0 %v13290_v51  ;;  %10235 = vmatprep.mubr.msk.f32.mxu0 %vm4722_vm7, %v5179_v28  ;;  %v10152_v36 = vpop.f32.mrb[74].mxu0  ;;  %v13345_v28 = vpack.c.bf16 %v8810_v42, %v8809_v41  ;;  %v8816_v41 = vld [vmem:[%s13803_s7 + $0xf8] sm:$0xff]  ;;  %v8833_v51 = vld [vmem:[%s13803_s7 + $0x150] sm:$0xff] }
 0x539   :  { %10728 = vmatprep.subr.bf16.mxu0 %v13301_v55  ;;  %v5189_v3 = vpop.f32.mrb[75].mxu0  ;;  %13951 = vst [vmem:[#allocation8_spill] sm:$0xff] %v13335_v24 }
 0x53a   :  { %13952 = vst [vmem:[#allocation9_spill] sm:$0xff] %v13345_v28 }
 0x53c   :  { %10730 = vmatpush3.bf16.msra.mxu0 %v13301_v55  ;;  %v10155_v63 = vpop.f32.mrb[76].mxu0  ;;  %v8828_v55 = vld [vmem:[%s13803_s7 + $0x138] sm:$0xff] }
 0x53d   :  { %10732 = vmatprep.subr.bf16.mxu0 %v13313_v22  ;;  %v5199_v11 = vpop.f32.mrb[77].mxu0 }
 0x53f   :  { %10236 = vmatmul.mubr.msk.f32.vlgmr.msra.gmra.mrb[96].mxu0 %vm4722_vm7, %v10149_v47 }
 0x540   :  { %10734 = vmatpush3.bf16.msra.mxu0 %v13313_v22  ;;  %10246 = vmatprep.mubr.msk.f32.mxu0 %vm4722_vm7, %v5189_v3  ;;  %v10158_v21 = vpop.f32.mrb[78].mxu0  ;;  %v8814_v3 = vld [vmem:[%s13803_s7 + $0xe8] sm:$0xff]  ;;  %v8827_v22 = vld [vmem:[%s13803_s7 + $0x130] sm:$0xff] }
 0x541   :  { %10736 = vmatprep.subr.bf16.mxu0 %v13323_v1  ;;  %v5209_v4 = vpop.f32.mrb[79].mxu0  ;;  %v13357_v38 = vpack.c.bf16 %v8814_v3, %v8813_v45  ;;  %v8819_v45 = vld [vmem:[%s13803_s7 + $0x100] sm:$0xff]  ;;  %v8820_v3 = vld [vmem:[%s13803_s7 + $0x108] sm:$0xff] }
 0x543   :  { %13953 = vst [vmem:[#allocation10_spill] sm:$0xff] %v13357_v38 }
 0x544   :  { %10738 = vmatpush3.bf16.msra.mxu0 %v13323_v1  ;;  %v10161_v47 = vpop.f32.mrb[80].mxu0  ;;  %v8822_v1 = vld [vmem:[%s13803_s7 + $0x118] sm:$0xff] }
 0x545   :  { %10740 = vmatprep.subr.bf16.mxu0 %v13335_v24  ;;  %v5219_v56 = vpop.f32.mrb[81].mxu0 }
 0x547   :  { %10247 = vmatmul.mubr.msk.f32.vlgmr.msra.gmra.mrb[96].mxu0 %vm4722_vm7, %v10152_v36 }
 0x548   :  { %10742 = vmatpush3.bf16.msra.mxu0 %v13335_v24  ;;  %10257 = vmatprep.mubr.msk.f32.mxu0 %vm4722_vm7, %v5199_v11  ;;  %v10164_v5 = vpop.f32.mrb[82].mxu0  ;;  %v13369_v11 = vpack.c.bf16 %v8816_v41, %v8815_v48  ;;  %v13383_v48 = vpack.c.bf16 %v8820_v3, %v8819_v45  ;;  %v8821_v24 = vld [vmem:[%s13803_s7 + $0x110] sm:$0xff]  ;;  %v8825_v45 = vld [vmem:[%s13803_s7 + $0x120] sm:$0xff]  ;;  %v8826_v3 = vld [vmem:[%s13803_s7 + $0x128] sm:$0xff] }
 0x549   :  { %10744 = vmatprep.subr.bf16.mxu0 %v13345_v28  ;;  %v5229_v12 = vpop.f32.mrb[83].mxu0 }
 0x54a   :  { %13954 = vst [vmem:[#allocation11_spill] sm:$0xff] %v13369_v11  ;;  %13955 = vst [vmem:[#allocation12_spill] sm:$0xff] %v13383_v48 }
 0x54c   :  { %10746 = vmatpush3.bf16.msra.mxu0 %v13345_v28  ;;  %v13366_v36 = vpop.f32.mrb[84].mxu0 }
 0x54d   :  { %10748 = vmatprep.subr.bf16.mxu0 %v13357_v38  ;;  %v5239_v42 = vpop.f32.mrb[85].mxu0 }
 0x54f   :  { %10258 = vmatmul.mubr.msk.f32.vlgmr.msra.gmra.mrb[96].mxu0 %vm4722_vm7, %v10155_v63 }
 0x550   :  { %10750 = vmatpush3.bf16.msra.mxu0 %v13357_v38  ;;  %10268 = vmatprep.mubr.msk.f32.mxu0 %vm4722_vm7, %v5209_v4  ;;  %v13380_v28 = vpop.f32.mrb[86].mxu0  ;;  %v13395_v4 = vpack.c.bf16 %v8822_v1, %v8821_v24  ;;  %v13409_v1 = vpack.c.bf16 %v8826_v3, %v8825_v45  ;;  %v8831_v45 = vld [vmem:[%s13803_s7 + $0x140] sm:$0xff]  ;;  %v8832_v3 = vld [vmem:[%s13803_s7 + $0x148] sm:$0xff] }
 0x551   :  { %10752 = vmatprep.subr.bf16.mxu0 %v13369_v11  ;;  %v5249_v41 = vpop.f32.mrb[87].mxu0 }
 0x552   :  { %13956 = vst [vmem:[#allocation13_spill] sm:$0xff] %v13395_v4 }
 0x554   :  { %10754 = vmatpush3.bf16.msra.mxu0 %v13369_v11  ;;  %v13392_v63 = vpop.f32.mrb[88].mxu0 }
 0x555   :  { %10756 = vmatprep.subr.bf16.mxu0 %v13383_v48  ;;  %v5259_v38 = vpop.f32.mrb[89].mxu0 }
 0x557   :  { %10269 = vmatmul.mubr.msk.f32.vlgmr.msra.gmra.mrb[96].mxu0 %vm4722_vm7, %v10158_v21 }
 0x558   :  { %10758 = vmatpush3.bf16.msra.mxu0 %v13383_v48  ;;  %10279 = vmatprep.mubr.msk.f32.mxu0 %vm4722_vm7, %v5219_v56  ;;  %v13406_v11 = vpop.f32.mrb[90].mxu0  ;;  %v13421_v56 = vpack.c.bf16 %v8828_v55, %v8827_v22  ;;  %v13437_v55 = vpack.c.bf16 %v8832_v3, %v8831_v45  ;;  %v8837_v45 = vld [vmem:[%s13803_s7 + $0x160] sm:$0xff]  ;;  %v8838_v3 = vld [vmem:[%s13803_s7 + $0x168] sm:$0xff] }
 0x559   :  { %10760 = vmatprep.subr.bf16.mxu0 %v13395_v4  ;;  %v5269_v24 = vpop.f32.mrb[91].mxu0 }
 0x55a   :  { %13957 = vst [vmem:[#allocation14_spill] sm:$0xff] %v13421_v56 }
 0x55c   :  { %10762 = vmatpush3.bf16.msra.mxu0 %v13395_v4  ;;  %v13418_v21 = vpop.f32.mrb[92].mxu0 }
 0x55d   :  { %10764 = vmatprep.subr.bf16.mxu0 %v13409_v1  ;;  %v13423_v48 = vpop.f32.mrb[93].mxu0 }
 0x55f   :  { %10280 = vmatmul.mubr.msk.f32.vlgmr.msra.gmra.mrb[96].mxu0 %vm4722_vm7, %v10161_v47  ;;  %v8834_v47 = vld [vmem:[%s13803_s7 + $0x158] sm:$0xff] }
 0x560   :  { %10766 = vmatpush3.bf16.msra.mxu0 %v13409_v1  ;;  %10290 = vmatprep.mubr.msk.f32.mxu0 %vm4722_vm7, %v5229_v12  ;;  %v13434_v4 = vpop.f32.mrb[94].mxu0  ;;  %v13449_v12 = vpack.c.bf16 %v8834_v47, %v8833_v51  ;;  %v8839_v51 = vld [vmem:[%s13803_s7 + $0x170] sm:$0xff]  ;;  %v8840_v47 = vld [vmem:[%s13803_s7 + $0x178] sm:$0xff] }
 0x561   :  { %10768 = vmatprep.subr.bf16.mxu0 %v13421_v56  ;;  %v13439_v22 = vpop.f32.mrb[95].mxu0 }
 0x564   :  { %10770 = vmatpush3.bf16.msra.mxu0 %v13421_v56  ;;  %v13461_v56 = vpack.c.bf16 %v8838_v3, %v8837_v45  ;;  %v8844_v45 = vld [vmem:[%s13803_s7 + $0x188] sm:$0xff] }
 0x565   :  { %10772 = vmatprep.subr.bf16.mxu0 %v13437_v55 }
 0x567   :  { %10291 = vmatmul.mubr.msk.f32.vlgmr.msra.gmra.mrb[96].mxu0 %vm4722_vm7, %v10164_v5  ;;  %v13471_v5 = vpack.c.bf16 %v8840_v47, %v8839_v51  ;;  %v8845_v51 = vld [vmem:[%s13803_s7 + $0x190] sm:$0xff]  ;;  %v8846_v47 = vld [vmem:[%s13803_s7 + $0x198] sm:$0xff] }
 0x568   :  { %10774 = vmatpush3.bf16.msra.mxu0 %v13437_v55  ;;  %10301 = vmatprep.mubr.msk.f32.mxu0 %vm4722_vm7, %v5239_v42  ;;  %v8843_v42 = vld [vmem:[%s13803_s7 + $0x180] sm:$0xff] }
 0x569   :  { %10776 = vmatprep.subr.bf16.mxu0 %v13449_v12  ;;  %v13484_v3 = vpack.c.bf16 %v8844_v45, %v8843_v42  ;;  %v8850_v42 = vld [vmem:[%s13803_s7 + $0x1a8] sm:$0xff] }
 0x56c   :  { %10778 = vmatpush3.bf16.msra.mxu0 %v13449_v12 }
 0x56d   :  { %10780 = vmatprep.subr.bf16.mxu0 %v13461_v56 }
 0x56f   :  { %10302 = vmatmul.mubr.msk.f32.vlgmr.msra.gmra.mrb[96].mxu0 %vm4722_vm7, %v13366_v36  ;;  %v13494_v36 = vpack.c.bf16 %v8846_v47, %v8845_v51  ;;  %v8851_v51 = vld [vmem:[%s13803_s7 + $0x1b0] sm:$0xff]  ;;  %v8852_v47 = vld [vmem:[%s13803_s7 + $0x1b8] sm:$0xff] }
 0x570   :  { %10782 = vmatpush3.bf16.msra.mxu0 %v13461_v56  ;;  %10312 = vmatprep.mubr.msk.f32.mxu0 %vm4722_vm7, %v5249_v41  ;;  %v8849_v41 = vld [vmem:[%s13803_s7 + $0x1a0] sm:$0xff] }
 0x571   :  { %10784 = vmatprep.subr.bf16.mxu0 %v13471_v5  ;;  %v13507_v45 = vpack.c.bf16 %v8850_v42, %v8849_v41  ;;  %v8856_v41 = vld [vmem:[%s13803_s7 + $0x1c8] sm:$0xff] }
 0x574   :  { %10786 = vmatpush3.bf16.msra.mxu0 %v13471_v5 }
 0x575   :  { %10788 = vmatprep.subr.bf16.mxu0 %v13484_v3 }
 0x577   :  { %10313 = vmatmul.mubr.msk.f32.vlgmr.msra.gmra.mrb[96].mxu0 %vm4722_vm7, %v13380_v28  ;;  %v13517_v28 = vpack.c.bf16 %v8852_v47, %v8851_v51  ;;  %v8857_v51 = vld [vmem:[%s13803_s7 + $0x1d0] sm:$0xff]  ;;  %v8858_v47 = vld [vmem:[%s13803_s7 + $0x1d8] sm:$0xff] }
 0x578   :  { %10790 = vmatpush3.bf16.msra.mxu0 %v13484_v3  ;;  %10323 = vmatprep.mubr.msk.f32.mxu0 %vm4722_vm7, %v5259_v38  ;;  %v8855_v38 = vld [vmem:[%s13803_s7 + $0x1c0] sm:$0xff] }
 0x579   :  { %10792 = vmatprep.subr.bf16.mxu0 %v13494_v36  ;;  %v13530_v42 = vpack.c.bf16 %v8856_v41, %v8855_v38  ;;  %v8862_v38 = vld [vmem:[%s13803_s7 + $0x1e8] sm:$0xff] }
 0x57c   :  { %10794 = vmatpush3.bf16.msra.mxu0 %v13494_v36 }
 0x57d   :  { %10796 = vmatprep.subr.bf16.mxu0 %v13507_v45 }
 0x57f   :  { %10324 = vmatmul.mubr.msk.f32.vlgmr.msra.gmra.mrb[96].mxu0 %vm4722_vm7, %v13392_v63  ;;  %v13540_v63 = vpack.c.bf16 %v8858_v47, %v8857_v51  ;;  %v8863_v51 = vld [vmem:[%s13803_s7 + $0x1f0] sm:$0xff]  ;;  %v8864_v47 = vld [vmem:[%s13803_s7 + $0x1f8] sm:$0xff] }
 0x580   :  { %10798 = vmatpush3.bf16.msra.mxu0 %v13507_v45  ;;  %10334 = vmatprep.mubr.msk.f32.mxu0 %vm4722_vm7, %v5269_v24  ;;  %v8861_v24 = vld [vmem:[%s13803_s7 + $0x1e0] sm:$0xff] }
 0x581   :  { %10800 = vmatprep.subr.bf16.mxu0 %v13517_v28  ;;  %v13554_v41 = vpack.c.bf16 %v8862_v38, %v8861_v24  ;;  %v13964_v38 = vld [vmem:[#allocation10_spill] sm:$0xff] }
 0x584   :  { %10802 = vmatpush3.bf16.msra.mxu0 %v13517_v28 }
 0x585   :  { %10804 = vmatprep.subr.bf16.mxu0 %v13530_v42 }
 0x587   :  { %10335 = vmatmul.mubr.msk.f32.vlgmr.msra.gmra.mrb[96].mxu0 %vm4722_vm7, %v13406_v11  ;;  %v13564_v11 = vpack.c.bf16 %v8864_v47, %v8863_v51 }
 0x588   :  { %10806 = vmatpush3.bf16.msra.mxu0 %v13530_v42  ;;  %10345 = vmatprep.mubr.msk.f32.mxu0 %vm4722_vm7, %v13423_v48  ;;  %v11268_v48 = vld [vmem:[%s13802_s6] sm:$0xff] }
 0x589   :  { %10808 = vmatprep.subr.bf16.mxu0 %v13540_v63 }
 0x58c   :  { %10810 = vmatpush3.bf16.msra.mxu0 %v13540_v63 }
 0x58d   :  { %10812 = vmatprep.subr.bf16.mxu0 %v13554_v41 }
 0x58f   :  { %10346 = vmatmul.mubr.msk.f32.vlgmr.msra.gmra.mrb[96].mxu0 %vm4722_vm7, %v13418_v21  ;;  %v13963_v21 = vld [vmem:[#allocation9_spill] sm:$0xff] }
 0x590   :  { %10814 = vmatpush3.bf16.msra.mxu0 %v13554_v41  ;;  %10356 = vmatprep.mubr.msk.f32.mxu0 %vm4722_vm7, %v13439_v22 }
 0x591   :  { %10816 = vmatprep.subr.bf16.mxu0 %v13564_v11 }
 0x594   :  { %10818 = vmatpush3.bf16.msra.mxu0 %v13564_v11 }
 0x595   :  { %10820 = vmatprep.subr.bf16.mxu0 %v12976_v59 }
 0x597   :  { %10357 = vmatmul.mubr.msk.f32.vlgmr.msra.gmra.mrb[96].mxu0 %vm4722_vm7, %v13434_v4 }
 0x598   :  { %10822 = vmatpush3.bf16.msra.mxu0 %v12976_v59  ;;  %10375 = vmatprep.mubr.msk.f32.mxu0 %vm4976_vm1, %v11268_v48  ;;  %v13965_v48 = vld [vmem:[#allocation11_spill] sm:$0xff] }
 0x599   :  { %10824 = vmatprep.subr.bf16.mxu0 %v12989_v16 }
 0x59c   :  { %10826 = vmatpush3.bf16.msra.mxu0 %v12989_v16 }
 0x59d   :  { %10828 = vmatprep.subr.bf16.mxu0 %v13007_v25 }
 0x5a0   :  { %10830 = vmatpush3.bf16.msra.mxu0 %v13007_v25 }
 0x5a1   :  { %10832 = vmatprep.subr.bf16.mxu0 %v13009_v27 }
 0x5a4   :  { %10834 = vmatpush3.bf16.msra.mxu0 %v13009_v27 }
 0x5a5   :  { %10836 = vmatprep.subr.bf16.mxu0 %v13234_v34 }
 0x5a7   :  { %10376 = vmatmul.mubr.msk.f32.vlgmr.msra.gmra.mrb[98].mxu0 %vm4976_vm1, %v12994_v52 }
 0x5a8   :  { %10378 = vmatprep.mubr.msk.f32.mxu0 %vm4976_vm1, %v13000_v15  ;;  %10838 = vmatpush3.bf16.msra.mxu0 %v13234_v34  ;;  %v13961_v34 = vld [vmem:[#allocation7_spill] sm:$0xff] }
 0x5a9   :  { %10840 = vmatprep.subr.bf16.mxu0 %v13244_v0 }
 0x5ab   :  { %10379 = vmatmul.mubr.msk.f32.gmra.mrb[100].mxu0 %vm4976_vm1, %v13016_v62 }
 0x5ac   :  { %10381 = vmatprep.mubr.msk.f32.mxu0 %vm4976_vm1, %v13022_v30  ;;  %10842 = vmatpush3.bf16.msra.mxu0 %v13244_v0 }
 0x5ad   :  { %10844 = vmatprep.subr.bf16.mxu0 %v12906_v40 }
 0x5af   :  { %10382 = vmatmul.mubr.msk.f32.gmra.mrb[102].mxu0 %vm4976_vm1, %v13032_v32 }
 0x5b0   :  { %10384 = vmatprep.mubr.msk.f32.mxu0 %vm4976_vm1, %v13038_v17 }
 0x5b3   :  { %10385 = vmatmul.mubr.msk.f32.gmra.mrb[104].mxu0 %vm4976_vm1, %v13047_v39 }
 0x5b4   :  { %10387 = vmatprep.mubr.msk.f32.mxu0 %vm4976_vm1, %v13052_v29 }
 0x5b7   :  { %10388 = vmatmul.mubr.msk.f32.gmra.mrb[106].mxu0 %vm4976_vm1, %v13061_v46 }
 0x5b8   :  { %10390 = vmatprep.mubr.msk.f32.mxu0 %vm4976_vm1, %v13066_v50 }
 0x5bb   :  { %10391 = vmatmul.mubr.msk.f32.gmra.mrb[108].mxu0 %vm4976_vm1, %v13075_v57 }
 0x5bc   :  { %10393 = vmatprep.mubr.msk.f32.mxu0 %vm4976_vm1, %v13080_v60 }
 0x5bf   :  { %10394 = vmatmul.mubr.msk.f32.gmra.mrb[110].mxu0 %vm4976_vm1, %v13089_v2 }
 0x5c0   :  { %10396 = vmatprep.mubr.msk.f32.mxu0 %vm4976_vm1, %v13094_v7 }
 0x5c3   :  { %10397 = vmatmul.mubr.msk.f32.gmra.mrb[112].mxu0 %vm4976_vm1, %v13103_v19 }
 0x5c4   :  { %10399 = vmatprep.mubr.msk.f32.mxu0 %vm4976_vm1, %v13108_v33 }
 0x5c7   :  { %10400 = vmatmul.mubr.msk.f32.gmra.mrb[114].mxu0 %vm4976_vm1, %v13117_v53 }
 0x5c8   :  { %10402 = vmatprep.mubr.msk.f32.mxu0 %vm4976_vm1, %v13122_v58 }
 0x5cb   :  { %10403 = vmatmul.mubr.msk.f32.gmra.mrb[116].mxu0 %vm4976_vm1, %v13131_v6 }
 0x5cc   :  { %10405 = vmatprep.mubr.msk.f32.mxu0 %vm4976_vm1, %v13136_v9 }
 0x5cf   :  { %10406 = vmatmul.mubr.msk.f32.gmra.mrb[118].mxu0 %vm4976_vm1, %v13145_v10 }
 0x5d0   :  { %10408 = vmatprep.mubr.msk.f32.mxu0 %vm4976_vm1, %v13150_v26 }
 0x5d3   :  { %10409 = vmatmul.mubr.msk.f32.gmra.mrb[120].mxu0 %vm4976_vm1, %v13159_v43 }
 0x5d4   :  { %10411 = vmatprep.mubr.msk.f32.mxu0 %vm4976_vm1, %v13164_v37  ;;  %v13958_v37 = vld [vmem:[#allocation4_spill] sm:$0xff] }
 0x5d7   :  { %10412 = vmatmul.mubr.msk.f32.gmra.mrb[122].mxu0 %vm4976_vm1, %v13173_v18 }
 0x5d8   :  { %10414 = vmatprep.mubr.msk.f32.mxu0 %vm4976_vm1, %v13178_v23 }
 0x5db   :  { %10415 = vmatmul.mubr.msk.f32.gmra.mrb[124].mxu0 %vm4976_vm1, %v13187_v31  ;;  %v13959_v31 = vld [vmem:[#allocation5_spill] sm:$0xff] }
 0x5dc   :  { %10417 = vmatprep.mubr.msk.f32.mxu0 %vm4976_vm1, %v13192_v35 }
 0x5df   :  { %10418 = vmatmul.mubr.msk.f32.gmra.mrb[126].mxu0 %vm4976_vm1, %v13201_v44 }
 0x5e0   :  { %10420 = vmatprep.mubr.msk.f32.mxu0 %vm4976_vm1, %v13206_v49  ;;  %v13960_v49 = vld [vmem:[#allocation6_spill] sm:$0xff] }
 0x5e3   :  { %10421 = vmatmul.mubr.msk.f32.gmra.mrb[128].mxu0 %vm4976_vm1, %v13215_v20 }
 0x5fe   :  { %v10193_v59 = vpop.f32.mrb[16].mxu1 }
 0x5ff   :  { %v5379_v16 = vpop.f32.mrb[17].mxu1 }
 0x66a   :  { %v10358_v52 = vpop.f32.mrb[96].mxu0 }
 0x66b   :  { %v13654_v15 = vadd.f32 %v10358_v52, %v10193_v59  ;;  %v6690_v25 = vpop.f32.mrb[97].mxu0  ;;  %v13966_v52 = vld [vmem:[#allocation12_spill] sm:$0xff] }
 0x66c   :  { %v13656_v27 = vadd.f32 %v6690_v25, %v5379_v16 }
 0x66d   :  { %v8251_v62 = vsel %vm4976_vm1, %v13654_v15, 0.0  ;;  %v8261_v30 = vmul.f32 %v13654_v15, %v13654_v15 }
 0x66e   :  { %v8250_v32 = vsel %vm4976_vm1, %v13656_v27, 0.0  ;;  %v8260_v17 = vmul.f32 %v13656_v27, %v13656_v27 }
 0x66f   :  { %v8263_v39 = vsel %vm4976_vm1, %v8261_v30, 0.0  ;;  %v13667_v29 = vadd.f32 %v8251_v62, %v8250_v32  ;;  %v13967_v62 = vld [vmem:[#allocation13_spill] sm:$0xff]  ;;  %v13968_v30 = vld [vmem:[#allocation14_spill] sm:$0xff] }
 0x670   :  { %v8262_v46 = vsel %vm4976_vm1, %v8260_v17, 0.0 }
 0x671   :  { %v13670_v50 = vadd.f32 %v8263_v39, %v8262_v46 }
 0x67a   :  { %v10377_v57 = vpop.f32.mrb[98].mxu0 }
 0x67b   :  { %v6767_v60 = vpop.f32.mrb[99].mxu0 }
 0x67e   :  { %v10380_v2 = vpop.f32.mrb[100].mxu0 }
 0x67f   :  { %v6777_v7 = vpop.f32.mrb[101].mxu0 }
 0x680   :  { %10431 = vmatprep.mubr.msk.f32.mxu0 %vm4722_vm7, %v6777_v7 }
 0x681   :  { %10432 = vmatmul.mubr.msk.f32.vlgmr.msra.gmra.mrb[130].mxu0 %vm4722_vm7, %v10380_v2 }
 0x682   :  { %10846 = vmatpush3.bf16.msra.mxu0 %v12906_v40  ;;  %10442 = vmatprep.mubr.msk.f32.mxu0 %vm4722_vm7, %v6767_v60  ;;  %v10383_v19 = vpop.f32.mrb[102].mxu0 }
 0x683   :  { %10848 = vmatprep.subr.bf16.mxu0 %v13003_v14  ;;  %v6787_v33 = vpop.f32.mrb[103].mxu0 }
 0x686   :  { %10850 = vmatpush3.bf16.msra.mxu0 %v13003_v14  ;;  %v10386_v53 = vpop.f32.mrb[104].mxu0 }
 0x687   :  { %10852 = vmatprep.subr.bf16.mxu0 %v13225_v54  ;;  %v6797_v58 = vpop.f32.mrb[105].mxu0 }
 0x689   :  { %10443 = vmatmul.mubr.msk.f32.vlgmr.msra.gmra.mrb[130].mxu0 %vm4722_vm7, %v10377_v57 }
 0x68a   :  { %10854 = vmatpush3.bf16.msra.mxu0 %v13225_v54  ;;  %10453 = vmatprep.mubr.msk.f32.mxu0 %vm4722_vm7, %v6787_v33  ;;  %v10389_v6 = vpop.f32.mrb[106].mxu0 }
 0x68b   :  { %10856 = vmatprep.subr.bf16.mxu0 %v13254_v61  ;;  %v6807_v40 = vpop.f32.mrb[107].mxu0 }
 0x68e   :  { %10858 = vmatpush3.bf16.msra.mxu0 %v13254_v61  ;;  %v10392_v9 = vpop.f32.mrb[108].mxu0 }
 0x68f   :  { %10860 = vmatprep.subr.bf16.mxu0 %v13266_v8  ;;  %v6817_v14 = vpop.f32.mrb[109].mxu0 }
 0x691   :  { %10454 = vmatmul.mubr.msk.f32.vlgmr.msra.gmra.mrb[130].mxu0 %vm4722_vm7, %v10383_v19 }
 0x692   :  { %10862 = vmatpush3.bf16.msra.mxu0 %v13266_v8  ;;  %10464 = vmatprep.mubr.msk.f32.mxu0 %vm4722_vm7, %v6797_v58  ;;  %v10395_v10 = vpop.f32.mrb[110].mxu0  ;;  %v13962_v8 = vld [vmem:[#allocation8_spill] sm:$0xff] }
 0x693   :  { %10864 = vmatprep.subr.bf16.mxu0 %v13278_v13  ;;  %v6827_v26 = vpop.f32.mrb[111].mxu0 }
 0x696   :  { %10866 = vmatpush3.bf16.msra.mxu0 %v13278_v13  ;;  %v10398_v43 = vpop.f32.mrb[112].mxu0 }
 0x697   :  { %10868 = vmatprep.subr.bf16.mxu0 %v13958_v37  ;;  %v6837_v18 = vpop.f32.mrb[113].mxu0 }
 0x699   :  { %10465 = vmatmul.mubr.msk.f32.vlgmr.msra.gmra.mrb[130].mxu0 %vm4722_vm7, %v10386_v53 }
 0x69a   :  { %10870 = vmatpush3.bf16.msra.mxu0 %v13958_v37  ;;  %10475 = vmatprep.mubr.msk.f32.mxu0 %vm4722_vm7, %v6807_v40  ;;  %v10401_v23 = vpop.f32.mrb[114].mxu0 }
 0x69b   :  { %10872 = vmatprep.subr.bf16.mxu0 %v13959_v31  ;;  %v6847_v35 = vpop.f32.mrb[115].mxu0 }
 0x69e   :  { %10874 = vmatpush3.bf16.msra.mxu0 %v13959_v31  ;;  %v10404_v44 = vpop.f32.mrb[116].mxu0 }
 0x69f   :  { %10876 = vmatprep.subr.bf16.mxu0 %v13960_v49  ;;  %v6857_v20 = vpop.f32.mrb[117].mxu0 }
 0x6a1   :  { %10476 = vmatmul.mubr.msk.f32.vlgmr.msra.gmra.mrb[130].mxu0 %vm4722_vm7, %v10389_v6 }
 0x6a2   :  { %10878 = vmatpush3.bf16.msra.mxu0 %v13960_v49  ;;  %10486 = vmatprep.mubr.msk.f32.mxu0 %vm4722_vm7, %v6817_v14  ;;  %v10407_v54 = vpop.f32.mrb[118].mxu0 }
 0x6a3   :  { %10880 = vmatprep.subr.bf16.mxu0 %v13961_v34  ;;  %v6867_v0 = vpop.f32.mrb[119].mxu0 }
 0x6a6   :  { %10882 = vmatpush3.bf16.msra.mxu0 %v13961_v34  ;;  %v10410_v61 = vpop.f32.mrb[120].mxu0 }
 0x6a7   :  { %10884 = vmatprep.subr.bf16.mxu0 %v13962_v8  ;;  %v6877_v13 = vpop.f32.mrb[121].mxu0 }
 0x6a9   :  { %10487 = vmatmul.mubr.msk.f32.vlgmr.msra.gmra.mrb[130].mxu0 %vm4722_vm7, %v10392_v9 }
 0x6aa   :  { %10886 = vmatpush3.bf16.msra.mxu0 %v13962_v8  ;;  %10497 = vmatprep.mubr.msk.f32.mxu0 %vm4722_vm7, %v6827_v26  ;;  %v10413_v4 = vpop.f32.mrb[122].mxu0 }
 0x6ab   :  { %10888 = vmatprep.subr.bf16.mxu0 %v13963_v21  ;;  %v6887_v22 = vpop.f32.mrb[123].mxu0 }
 0x6ae   :  { %10890 = vmatpush3.bf16.msra.mxu0 %v13963_v21  ;;  %v10416_v24 = vpop.f32.mrb[124].mxu0 }
 0x6af   :  { %10892 = vmatprep.subr.bf16.mxu0 %v13964_v38  ;;  %v6897_v51 = vpop.f32.mrb[125].mxu0 }
 0x6b1   :  { %10498 = vmatmul.mubr.msk.f32.vlgmr.msra.gmra.mrb[130].mxu0 %vm4722_vm7, %v10395_v10 }
 0x6b2   :  { %10894 = vmatpush3.bf16.msra.mxu0 %v13964_v38  ;;  %10508 = vmatprep.mubr.msk.f32.mxu0 %vm4722_vm7, %v6837_v18  ;;  %v10419_v47 = vpop.f32.mrb[126].mxu0  ;;  %v8932_v38 = vld [vmem:[%s13807_s9] ss:$0 sm:$0xff] }
 0x6b3   :  { %10896 = vmatprep.subr.bf16.mxu0 %v13965_v48  ;;  %v6907_v59 = vpop.f32.mrb[127].mxu0 }
 0x6b6   :  { %10898 = vmatpush3.bf16.msra.mxu0 %v13965_v48  ;;  %v10422_v16 = vpop.f32.mrb[128].mxu0 }
 0x6b7   :  { %10900 = vmatprep.subr.bf16.mxu0 %v13966_v52  ;;  %v6917_v25 = vpop.f32.mrb[129].mxu0 }
 0x6b9   :  { %10509 = vmatmul.mubr.msk.f32.vlgmr.msra.gmra.mrb[130].mxu0 %vm4722_vm7, %v10398_v43 }
 0x6ba   :  { %10902 = vmatpush3.bf16.msra.mxu0 %v13966_v52  ;;  %10519 = vmatprep.mubr.msk.f32.mxu0 %vm4722_vm7, %v6847_v35 }
 0x6bb   :  { %10904 = vmatprep.subr.bf16.mxu0 %v13967_v62 }
 0x6be   :  { %10906 = vmatpush3.bf16.msra.mxu0 %v13967_v62 }
 0x6bf   :  { %10908 = vmatprep.subr.bf16.mxu0 %v13409_v1 }
 0x6c1   :  { %10520 = vmatmul.mubr.msk.f32.vlgmr.msra.gmra.mrb[130].mxu0 %vm4722_vm7, %v10401_v23 }
 0x6c2   :  { %10910 = vmatpush3.bf16.msra.mxu0 %v13409_v1  ;;  %10530 = vmatprep.mubr.msk.f32.mxu0 %vm4722_vm7, %v6857_v20  ;;  %v8253_v1 = vrot.slane %v13667_v29, 4 }
 0x6c3   :  { %10912 = vmatprep.subr.bf16.mxu0 %v13968_v30 }
 0x6c6   :  { %10914 = vmatpush3.bf16.msra.mxu0 %v13968_v30 }
 0x6c7   :  { %10916 = vmatprep.subr.bf16.mxu0 %v13437_v55 }
 0x6c9   :  { %10531 = vmatmul.mubr.msk.f32.vlgmr.msra.gmra.mrb[130].mxu0 %vm4722_vm7, %v10404_v44 }
 0x6ca   :  { %10918 = vmatpush3.bf16.msra.mxu0 %v13437_v55  ;;  %10541 = vmatprep.mubr.msk.f32.mxu0 %vm4722_vm7, %v6867_v0  ;;  %v8254_v55 = vadd.f32 %v8253_v1, %v13667_v29 }
 0x6cb   :  { %10920 = vmatprep.subr.bf16.mxu0 %v13449_v12 }
 0x6ce   :  { %10922 = vmatpush3.bf16.msra.mxu0 %v13449_v12 }
 0x6cf   :  { %10924 = vmatprep.subr.bf16.mxu0 %v13461_v56 }
 0x6d1   :  { %10542 = vmatmul.mubr.msk.f32.vlgmr.msra.gmra.mrb[130].mxu0 %vm4722_vm7, %v10407_v54 }
 0x6d2   :  { %10926 = vmatpush3.bf16.msra.mxu0 %v13461_v56  ;;  %10552 = vmatprep.mubr.msk.f32.mxu0 %vm4722_vm7, %v6877_v13  ;;  %v8265_v56 = vrot.slane %v13670_v50, 4  ;;  %v8301_v13 = vld [vmem:[%s13806_s8] sm:$0x1] }
 0x6d3   :  { %10928 = vmatprep.subr.bf16.mxu0 %v13471_v5 }
 0x6d6   :  { %10930 = vmatpush3.bf16.msra.mxu0 %v13471_v5  ;;  %v8266_v5 = vadd.f32 %v8265_v56, %v13670_v50 }
 0x6d7   :  { %10932 = vmatprep.subr.bf16.mxu0 %v13484_v3 }
 0x6d8   :  { %v8267_v17 = vrot.slane %v8266_v5, 2 }
 0x6d9   :  { %10553 = vmatmul.mubr.msk.f32.vlgmr.msra.gmra.mrb[130].mxu0 %vm4722_vm7, %v10410_v61  ;;  %v8305_v61 = vlaneseq }
 0x6da   :  { %10934 = vmatpush3.bf16.msra.mxu0 %v13484_v3  ;;  %10563 = vmatprep.mubr.msk.f32.mxu0 %vm4722_vm7, %v6887_v22  ;;  %v8268_v50 = vadd.f32 %v8267_v17, %v8266_v5  ;;  %v8367_v5 = vld [vmem:[%s13808_s10 + $0x8] sm:$0xff] }
 0x6db   :  { %10936 = vmatprep.subr.bf16.mxu0 %v13494_v36  ;;  %v8306_v8 = vshrl.u32 %v8305_v61, 7 }
 0x6dc   :  { %v8269_v58 = vrot.slane %v8268_v50, 1 }
 0x6de   :  { %10938 = vmatpush3.bf16.msra.mxu0 %v13494_v36  ;;  %v8270_v26 = vadd.f32 %v8269_v58, %v8268_v50 }
 0x6df   :  { %10940 = vmatprep.subr.bf16.mxu0 %v13507_v45 }
 0x6e1   :  { %10564 = vmatmul.mubr.msk.f32.vlgmr.msra.gmra.mrb[130].mxu0 %vm4722_vm7, %v10413_v4  ;;  %v8307_v4 = vsub.s32 0, %v8306_v8 }
 0x6e2   :  { %10942 = vmatpush3.bf16.msra.mxu0 %v13507_v45  ;;  %10574 = vmatprep.mubr.msk.f32.mxu0 %vm4722_vm7, %v6897_v51 }
 0x6e3   :  { %10944 = vmatprep.subr.bf16.mxu0 %v13517_v28 }
 0x6e6   :  { %10946 = vmatpush3.bf16.msra.mxu0 %v13517_v28 }
 0x6e7   :  { %10948 = vmatprep.subr.bf16.mxu0 %v13530_v42 }
 0x6e9   :  { %10575 = vmatmul.mubr.msk.f32.vlgmr.msra.gmra.mrb[130].mxu0 %vm4722_vm7, %v10416_v24 }
 0x6ea   :  { %10950 = vmatpush3.bf16.msra.mxu0 %v13530_v42  ;;  %10585 = vmatprep.mubr.msk.f32.mxu0 %vm4722_vm7, %v6907_v59 }
 0x6eb   :  { %10952 = vmatprep.subr.bf16.mxu0 %v13540_v63 }
 0x6ee   :  { %10954 = vmatpush3.bf16.msra.mxu0 %v13540_v63  ;;  %v8255_v63 = vrot.slane %v8254_v55, 2 }
 0x6ef   :  { %10956 = vmatprep.subr.bf16.mxu0 %v13554_v41 }
 0x6f0   :  { %v8256_v29 = vadd.f32 %v8255_v63, %v8254_v55 }
 0x6f1   :  { %10586 = vmatmul.mubr.msk.f32.vlgmr.msra.gmra.mrb[130].mxu0 %vm4722_vm7, %v10419_v47 }
 0x6f2   :  { %10958 = vmatpush3.bf16.msra.mxu0 %v13554_v41  ;;  %10596 = vmatprep.mubr.msk.f32.mxu0 %vm4722_vm7, %v6917_v25  ;;  %v8257_v19 = vrot.slane %v8256_v29, 1  ;;  %v8366_v25 = vld [vmem:[%s13808_s10] sm:$0xff] }
 0x6f3   :  { %10960 = vmatprep.subr.bf16.mxu0 %v13564_v11 }
 0x6f4   :  { %v8258_v9 = vadd.f32 %v8257_v19, %v8256_v29 }
 0x6f6   :  { %10962 = vmatpush3.bf16.msra.mxu0 %v13564_v11 }
 0x6f9   :  { %10597 = vmatmul.mubr.msk.f32.vlgmr.msra.gmra.mrb[130].mxu0 %vm4722_vm7, %v10422_v16 }
 0x7cc   :  { %v10598_v12 = vpop.f32.mrb[130].mxu0 }
 0x7cd   :  { %v8273_v3 = vsel %vm4976_vm1, %v10598_v12, 0.0  ;;  %v8283_v36 = vmul.f32 %v10598_v12, %v10598_v12  ;;  %v8239_v45 = vpop.f32.mrb[131].mxu0 }
 0x7ce   :  { %v8272_v28 = vsel %vm4976_vm1, %v8239_v45, 0.0  ;;  %v8282_v42 = vmul.f32 %v8239_v45, %v8239_v45 }
 0x7cf   :  { %v8285_v41 = vsel %vm4976_vm1, %v8283_v36, 0.0  ;;  %v8274_v11 = vadd.f32 %v8273_v3, %v8272_v28 }
 0x7d0   :  { %v8284_v32 = vsel %vm4976_vm1, %v8282_v42, 0.0 }
 0x7d1   :  { %v8275_v39 = vrot.slane %v8274_v11, 4  ;;  %v8286_v46 = vadd.f32 %v8285_v41, %v8284_v32 }
 0x7d3   :  { %v8276_v57 = vadd.f32 %v8275_v39, %v8274_v11  ;;  %v8287_v60 = vrot.slane %v8286_v46, 4  ;;  %v17_v39 = vstv %s13809_s11 }
 0x7d4   :  { %18 = vst [vmem:[#allocation3] sm:$0x1] %v17_v39 }
 0x7d5   :  { %v8277_v2 = vrot.slane %v8276_v57, 2  ;;  %v8288_v7 = vadd.f32 %v8287_v60, %v8286_v46 }
 0x7d7   :  { %v8278_v33 = vadd.f32 %v8277_v2, %v8276_v57  ;;  %v8289_v53 = vrot.slane %v8288_v7, 2 }
 0x7d9   :  { %v8279_v6 = vrot.slane %v8278_v33, 1  ;;  %v8290_v40 = vadd.f32 %v8289_v53, %v8288_v7 }
 0x7db   :  { %v8280_v14 = vadd.f32 %v8279_v6, %v8278_v33  ;;  %v8291_v10 = vrot.slane %v8290_v40, 1 }
 0x7dd   :  { %v8281_v43 = vadd.f32 %v8280_v14, %v8258_v9  ;;  %v8292_v37 = vadd.f32 %v8291_v10, %v8290_v40 }
 0x7df   :  { %v8293_v18 = vadd.f32 %v8292_v37, %v8270_v26  ;;  %v8295_v23 = vmul.f32 0.03125, %v8281_v43  ;;  %v8383_v26 = vld [vmem:[#allocation3] sm:$0x1] }
 0x7e0   :  { %v8343_v43 = vld [vmem:[#allocation3] sm:$0x1] }
 0x7e1   :  { %v8296_v31 = vmul.f32 0.03125, %v8293_v18  ;;  %v8297_v35 = vmul.f32 %v8295_v23, %v8295_v23  ;;  %v8347_v44 = vsub.f32 %v8239_v45, %v8295_v23  ;;  %v8348_v49 = vsub.f32 %v10598_v12, %v8295_v23 }
 0x7e2   :  { %v8303_v20 = vsub.f32 %v13656_v27, %v8295_v23  ;;  %v8304_v54 = vsub.f32 %v13654_v15, %v8295_v23 }
 0x7e3   :  { %v8298_v34 = vsub.f32 %v8296_v31, %v8297_v35 }
 0x7e5   :  { %v8299_v0 = vadd.f32 1e-05, %v8298_v34 }
 0x7e7   :  { %11266 = vrsqrt.f32 %v8299_v0 }
 0x7f1   :  { %v11267_v21 = vpop.eup %11266 }
 0x7f2   :  { %v8302_v22 = vmul.f32 %v11267_v21, %v8301_v13 }
 0x7f4   :  { %v8308_v24 = vrot.slane %v8302_v22, %v8307_v4 }
 0x7f6   :  { %v8349_v27 = vmul.f32 %v8347_v44, %v8308_v24  ;;  %v8350_v51 = vmul.f32 %v8348_v49, %v8308_v24  ;;  %v8309_v15 = vmul.f32 %v8308_v24, %v8303_v20  ;;  %v8310_v47 = vmul.f32 %v8308_v24, %v8304_v54 }
 0x7f8   :  { %v8358_v48 = vadd.f32 %v8932_v38, %v8349_v27  ;;  %v8359_v59 = vadd.f32 %v8932_v38, %v8350_v51  ;;  %v8318_v16 = vadd.f32 %v8932_v38, %v8309_v15  ;;  %v8319_v52 = vadd.f32 %v8932_v38, %v8310_v47 }
 0x7fa   :  { %vm8360_vm7 = vcmp.gt.f32.partialorder %v8358_v48, 0.0  ;;  %v8362_v62 = vmul.f32 0.2, %v8358_v48  ;;  %vm8320_vm10 = vcmp.gt.f32.partialorder %v8318_v16, 0.0  ;;  %v8322_v30 = vmul.f32 0.2, %v8318_v16 }
 0x7fb   :  { %vm8361_vm11 = vcmp.gt.f32.partialorder %v8359_v59, 0.0  ;;  %v8363_v1 = vmul.f32 0.2, %v8359_v59  ;;  %vm8321_vm12 = vcmp.gt.f32.partialorder %v8319_v52, 0.0  ;;  %v8323_v56 = vmul.f32 0.2, %v8319_v52 }
 0x7fc   :  { %v8364_v55 = vsel %vm8360_vm7, %v8358_v48, %v8362_v62  ;;  %v8324_v12 = vsel %vm8320_vm10, %v8318_v16, %v8322_v30 }
 0x7fd   :  { %v8368_v3 = vmul.f32 %v8366_v25, %v8364_v55  ;;  %v8328_v36 = vmul.f32 %v8366_v25, %v8324_v12  ;;  %v8365_v45 = vsel %vm8361_vm11, %v8359_v59, %v8363_v1  ;;  %v8325_v28 = vsel %vm8321_vm12, %v8319_v52, %v8323_v56 }
 0x7fe   :  { %v8369_v41 = vmul.f32 %v8367_v5, %v8365_v45  ;;  %v8329_v11 = vmul.f32 %v8367_v5, %v8325_v28 }
 0x7ff   :  { %v8370_v42 = vsel %vm4976_vm1, %v8368_v3, 0.0  ;;  %v8330_v63 = vsel %vm4976_vm1, %v8328_v36, 0.0 }
 0x800   :  { %8371 = vadd.xlane.f32.xlu1 %v8370_v42  ;;  %8331 = vadd.xlane.f32.xlu0 %v8330_v63  ;;  %v8373_v32 = vsel %vm4976_vm1, %v8369_v41, 0.0  ;;  %v8333_v17 = vsel %vm4976_vm1, %v8329_v11, 0.0  ;;  %vm8345_vm1 = vcmask 0  }
 0x804   :  { %8374 = vadd.xlane.f32.xlu1 %v8373_v32  ;;  %8334 = vadd.xlane.f32.xlu0 %v8333_v17 }
 0x88d   :  { %v8372_v46 = vpop.xlane.xlu1 %8371  ;;  %v8332_v29 = vpop.xlane.xlu0 %8331 }
 0x891   :  { %v8375_v57 = vpop.xlane.xlu1 %8374  ;;  %v8335_v60 = vpop.xlane.xlu0 %8334 }
 0x892   :  { %v8376_v50 = vadd.f32 %v8375_v57, %v8372_v46  ;;  %v8336_v2 = vadd.f32 %v8335_v60, %v8332_v29 }
 0x894   :  { %v8377_v7 = vrot.slane %v8376_v50, 4  ;;  %v8337_v19 = vrot.slane %v8336_v2, 4 }
 0x896   :  { %v8378_v33 = vadd.f32 %v8377_v7, %v8376_v50  ;;  %v8338_v53 = vadd.f32 %v8337_v19, %v8336_v2 }
 0x898   :  { %v8379_v58 = vrot.slane %v8378_v33, 2  ;;  %v8339_v6 = vrot.slane %v8338_v53, 2 }
 0x89a   :  { %v8380_v40 = vadd.f32 %v8379_v58, %v8378_v33  ;;  %v8340_v9 = vadd.f32 %v8339_v6, %v8338_v53 }
 0x89c   :  { %v8381_v14 = vrot.slane %v8380_v40, 1  ;;  %v8341_v10 = vrot.slane %v8340_v9, 1 }
 0x89e   :  { %v8382_v37 = vadd.f32 %v8381_v14, %v8380_v40  ;;  %v8342_v18 = vadd.f32 %v8341_v10, %v8340_v9 }
 0x8a0   :  { %v8384_v23 = vadd.f32 %v8383_v26, %v8382_v37  ;;  %v8344_v31 = vadd.f32 %v8343_v43, %v8342_v18 }
 0x8a2   :  { %8385 = vst.msk [vmem:[%s13810_s12 + $0x1] sm:$0x1] %vm8345_vm1, %v8384_v23  ;;  %8346 = vst.msk [vmem:[%s13810_s12] sm:$0x1] %vm8345_vm1, %v8344_v31 }

</bundles_post_ra>
